<compile_context>
chip_gen: v5e
topology: v5e:2x2
jax: 0.10.0
libtpu: 0.0.40
codegen_flags: <defaults>
</compile_context>

<pallas_src>
import functools

import jax
import jax.numpy as jnp
from jax import lax
from jax.experimental import pallas as pl
from jax.experimental.pallas import tpu as pltpu


def _resblock_kernel(xp_ref, w0_ref, s0_ref, sh0_ref, w1_ref, b1_ref, o_ref,
                     *, K, H, res_scale):
    """One (batch, row-tile) step of the fused ResBlock.

    xp_ref : (1, H+4p, W+2p, Cin) f32  input zero-padded by 2p rows / p cols
                                       (same block for all row tiles of a
                                       batch element -> DMA'd once per image)
    w0_ref : (K*K*Cin,  Cmid) bf16     im2col-reshaped conv0 weight
    s0_ref : (1, Cmid) f32             folded BN scale  (gamma/sqrt(var+eps))
    sh0_ref: (1, Cmid) f32             folded BN shift  (scale*b0 + beta - scale*mean)
    w1_ref : (K*K*Cmid, Cout) bf16     im2col-reshaped conv1 weight
    b1_ref : (1, Cout) f32
    o_ref  : (1, tile_h, W*Cout) f32   lane-dense output slab
    """
    p = (K - 1) // 2
    Cin = xp_ref.shape[3]
    Cmid = w0_ref.shape[1]
    Cout = w1_ref.shape[1]
    tile_h = o_ref.shape[1]
    W = o_ref.shape[2] // Cout
    tHm = tile_h + 2 * p          # mid rows needed (incl. conv1 halo rows)
    tHi = tHm + 2 * p             # padded-input rows needed for those mid rows

    row0 = pl.multiple_of(pl.program_id(1) * tile_h, tile_h)

    # ---- input window for this row tile -------------------------------------
    xin = xp_ref[0, pl.ds(row0, tHi), :, :]                      # (tHi, Wp, Cin)

    # ---- conv0 as a single MXU matmul (im2col, contraction = K*K*Cin) -------
    taps0 = [xin[ky:ky + tHm, kx:kx + W, :]
             for ky in range(K) for kx in range(K)]              # (tHm, W, Cin)
    patch0 = jnp.concatenate(taps0, axis=-1)                     # (tHm, W, K*K*Cin)
    patch0 = patch0.reshape(tHm * W, K * K * Cin).astype(jnp.bfloat16)
    mid = jnp.dot(patch0, w0_ref[...],
                  preferred_element_type=jnp.float32)            # (tHm*W, Cmid) f32

    # ---- folded BatchNorm (eval) + ReLU, kept in f32 -------------------------
    mid = mid * s0_ref[...] + sh0_ref[...]
    mid = jnp.maximum(mid, 0.0)
    mid = mid.reshape(tHm, W, Cmid)

    # Halo rows outside the image correspond to conv1's zero padding -> zero.
    mrow = row0 - p + lax.broadcasted_iota(jnp.int32, (tHm, 1, 1), 0)
    valid = jnp.logical_and(mrow >= 0, mrow < H).astype(jnp.float32)
    mid = mid * valid

    # W-direction zero halo for conv1, built as a value (no scratch, no re-zero,
    # no misaligned partial stores).
    if p > 0:
        zpad = jnp.zeros((tHm, p, Cmid), jnp.float32)
        mid_p = jnp.concatenate([zpad, mid, zpad], axis=1)       # (tHm, Wp, Cmid)
    else:
        mid_p = mid

    # ---- conv1 as a single MXU matmul (im2col, contraction = K*K*Cmid) ------
    taps1 = [mid_p[ky:ky + tile_h, kx:kx + W, :]
             for ky in range(K) for kx in range(K)]              # (tile_h, W, Cmid)
    patch1 = jnp.concatenate(taps1, axis=-1)                     # (tile_h, W, K*K*Cmid)
    patch1 = patch1.reshape(tile_h * W, K * K * Cmid).astype(jnp.bfloat16)
    res = jnp.dot(patch1, w1_ref[...],
                  preferred_element_type=jnp.float32)            # (tile_h*W, Cout)
    res = (res + b1_ref[...]).reshape(tile_h, W, Cout)

    # ---- residual add: read x rows from the already-resident padded block ---
    x_res = xp_ref[0, pl.ds(row0 + 2 * p, tile_h), p:p + W, :]   # (tile_h, W, Cin)
    out = x_res + res_scale * res                                # Cin == Cout

    # ---- lane-dense writeback: (tile_h, W, Cout) -> (tile_h, W*Cout) ---------
    # Built with per-column slices + minor-dim concat (always lowerable); same
    # contiguous NHWC bytes as the logical (B,H,W,Cout) output.
    slab = jnp.concatenate([out[:, x, :] for x in range(W)], axis=-1)
    o_ref[...] = slab[None].astype(o_ref.dtype)


def resblock_forward(x_nchw, params, res_scale=1.0, eps=1e-5):
    """ResBlock forward. x_nchw: (B, Cin, H, W) float32, returns NCHW."""
    w0 = params["w0"]          # (K, K, Cin, Cmid)  HWIO
    b0 = params["b0"]          # (Cmid,)
    gamma = params["gamma"]    # (Cmid,)
    beta = params["beta"]      # (Cmid,)
    mean = params["mean"]      # (Cmid,)
    var = params["var"]        # (Cmid,)
    w1 = params["w1"]          # (K, K, Cmid, Cout) HWIO
    b1 = params["b1"]          # (Cout,)

    B, Cin, H, W = x_nchw.shape
    K = w0.shape[0]
    Cmid = w0.shape[3]
    Cout = w1.shape[3]
    if Cin != Cout:
        raise ValueError(
            f"ResBlock residual add requires in_channel == out_channel "
            f"(got {Cin} vs {Cout}).")
    p = (K - 1) // 2
    Wp = W + 2 * p

    # Row tiling: 8-row tiles when H allows (sublane aligned) -> more grid
    # steps to pipeline, small accumulators, bounded VMEM (v7x: 64 MiB/TC).
    tile_h = 8 if (H % 8 == 0) else H
    n_row = H // tile_h

    # NCHW -> NHWC; pad rows by 2p (conv0 halo + recomputed conv1-halo mid
    # rows) and cols by p.  A single padded copy serves conv0 AND the residual.
    x = jnp.transpose(x_nchw, (0, 2, 3, 1)).astype(jnp.float32)
    xp2 = jnp.pad(x, ((0, 0), (2 * p, 2 * p), (p, p), (0, 0)))

    # Fold eval-mode BatchNorm + conv0 bias into per-channel scale/shift.
    scale0 = (gamma / jnp.sqrt(var + eps)).astype(jnp.float32)
    shift0 = (scale0 * b0 + beta - scale0 * mean).astype(jnp.float32)
    scale0 = scale0.reshape(1, Cmid)
    shift0 = shift0.reshape(1, Cmid)
    b1r = b1.reshape(1, Cout).astype(jnp.float32)

    # im2col weight layout (row index = (ky*K + kx)*C + c), bf16 for the MXU.
    w0r = w0.reshape(K * K * Cin, Cmid).astype(jnp.bfloat16)
    w1r = w1.reshape(K * K * Cmid, Cout).astype(jnp.bfloat16)

    kernel = functools.partial(_resblock_kernel, K=K, H=H,
                               res_scale=float(res_scale))

    # Note: the weight/scale/bias operands are grid-invariant; they are tiny so
    # the default double-buffering overhead is negligible here.
    out = pl.pallas_call(
        kernel,
        out_shape=jax.ShapeDtypeStruct((B, H, W * Cout), jnp.float32),
        grid_spec=pltpu.PrefetchScalarGridSpec(
            num_scalar_prefetch=0,
            grid=(B, n_row),
            in_specs=[
                # Same block for every row tile of a batch element.
                pl.BlockSpec((1, H + 4 * p, Wp, Cin), lambda b, r: (b, 0, 0, 0)),
                pl.BlockSpec((K * K * Cin, Cmid), lambda b, r: (0, 0)),
                pl.BlockSpec((1, Cmid), lambda b, r: (0, 0)),
                pl.BlockSpec((1, Cmid), lambda b, r: (0, 0)),
                pl.BlockSpec((K * K * Cmid, Cout), lambda b, r: (0, 0)),
                pl.BlockSpec((1, Cout), lambda b, r: (0, 0)),
            ],
            out_specs=pl.BlockSpec((1, tile_h, W * Cout),
                                   lambda b, r: (b, r, 0)),
        ),
        compiler_params=pltpu.CompilerParams(
            dimension_semantics=("parallel", "parallel"),
            vmem_limit_bytes=32 * 1024 * 1024),
    )(xp2, w0r, scale0, shift0, w1r, b1r)

    out = out.reshape(B, H, W, Cout)
    return jnp.transpose(out, (0, 3, 1, 2))    # NHWC -> NCHW (module layout)


def _reference_forward(x_nchw, params, res_scale=1.0, eps=1e-5):
    """Pure-JAX f32 reference (same eval-mode BN semantics)."""
    x = jnp.transpose(x_nchw, (0, 2, 3, 1)).astype(jnp.float32)
    dn = ("NHWC", "HWIO", "NHWC")
    y = lax.conv_general_dilated(x, params["w0"], (1, 1), "SAME",
                                 dimension_numbers=dn) + params["b0"]
    scale = params["gamma"] / jnp.sqrt(params["var"] + eps)
    y = (y - params["mean"]) * scale + params["beta"]
    y = jnp.maximum(y, 0.0)
    y = lax.conv_general_dilated(y, params["w1"], (1, 1), "SAME",
                                 dimension_numbers=dn) + params["b1"]
    out = x + res_scale * y
    return jnp.transpose(out, (0, 3, 1, 2))


if __name__ == "__main__":
    # ResBlock(in_channel=4, out_channle=4, mid_channel=8, kernel_size=3)
    B, Cin, Cmid, Cout, H, W, K = 2, 4, 8, 4, 16, 16, 3
    res_scale = 1.0

    key = jax.random.PRNGKey(0)
    ks = jax.random.split(key, 8)
    params = {
        "w0": jax.random.normal(ks[0], (K, K, Cin, Cmid), jnp.float32) * 0.1,
        "b0": jax.random.normal(ks[1], (Cmid,), jnp.float32) * 0.1,
        "gamma": 1.0 + 0.1 * jax.random.normal(ks[2], (Cmid,), jnp.float32),
        "beta": 0.1 * jax.random.normal(ks[3], (Cmid,), jnp.float32),
        "mean": 0.1 * jax.random.normal(ks[4], (Cmid,), jnp.float32),
        "var": jnp.abs(1.0 + 0.1 * jax.random.normal(ks[5], (Cmid,), jnp.float32)),
        "w1": jax.random.normal(ks[6], (K, K, Cmid, Cout), jnp.float32) * 0.1,
        "b1": jax.random.normal(ks[7], (Cout,), jnp.float32) * 0.1,
    }
    x = jax.random.normal(jax.random.PRNGKey(0), (B, Cin, H, W), jnp.float32)

    out = jax.block_until_ready(resblock_forward(x, params, res_scale=res_scale))
    ref = jax.block_until_ready(_reference_forward(x, params, res_scale))

    assert out.shape == (B, Cout, H, W)
    # bf16 MXU matmuls (f32 accumulation) -> tolerance loosened vs pure f32.
    assert jnp.allclose(out, ref, atol=5e-2, rtol=5e-2), (
        f"max err {jnp.max(jnp.abs(out - ref))}")

    print("KERNEL_OK")
</pallas_src>

<mosaic_0001>
module attributes {stable_mosaic.version = 11 : i64} {
  func.func @_resblock_kernel(%arg0: i32, %arg1: i32, %arg2: memref<1x20x18x4xf32, #tpu.memory_space<vmem>>, %arg3: memref<36x8xbf16, #tpu.memory_space<vmem>>, %arg4: memref<1x8xf32, #tpu.memory_space<vmem>>, %arg5: memref<1x8xf32, #tpu.memory_space<vmem>>, %arg6: memref<72x4xbf16, #tpu.memory_space<vmem>>, %arg7: memref<1x4xf32, #tpu.memory_space<vmem>>, %arg8: memref<1x8x64xf32, #tpu.memory_space<vmem>>) attributes {dimension_semantics = [#tpu.dimension_semantics<parallel>, #tpu.dimension_semantics<parallel>], iteration_bounds = array<i64: 2, 2>, scalar_prefetch = 0 : i64, scratch_operands = 0 : i64, tpu.core_type = #tpu.core_type<tc>, window_params = [{transform_indices = @transform_0, window_bounds = array<i64: 1, 20, 18, 4>}, {pipeline_mode = #tpu.pipeline_mode<synchronous>, transform_indices = @transform_1, window_bounds = array<i64: 36, 8>}, {pipeline_mode = #tpu.pipeline_mode<synchronous>, transform_indices = @transform_2, window_bounds = array<i64: 1, 8>}, {pipeline_mode = #tpu.pipeline_mode<synchronous>, transform_indices = @transform_3, window_bounds = array<i64: 1, 8>}, {pipeline_mode = #tpu.pipeline_mode<synchronous>, transform_indices = @transform_4, window_bounds = array<i64: 72, 4>}, {pipeline_mode = #tpu.pipeline_mode<synchronous>, transform_indices = @transform_5, window_bounds = array<i64: 1, 4>}, {transform_indices = @transform_6, window_bounds = array<i64: 1, 8, 64>}]} {
    %c8_i32 = arith.constant 8 : i32
    %0 = arith.muli %arg1, %c8_i32 : i32
    %1 = tpu.assume_multiple %0, 8 : i32
    %c0 = arith.constant 0 : index
    %2 = arith.index_cast %1 : i32 to index
    %c0_0 = arith.constant 0 : index
    %c0_1 = arith.constant 0 : index
    %3 = vector.load %arg2[%c0, %2, %c0_0, %c0_1] : memref<1x20x18x4xf32, #tpu.memory_space<vmem>>, vector<1x12x18x4xf32>
    %4 = vector.shape_cast %3 : vector<1x12x18x4xf32> to vector<12x18x4xf32>
    %5 = vector.extract_strided_slice %4 {offsets = [0, 0, 0], sizes = [10, 16, 4], strides = [1, 1, 1]} : vector<12x18x4xf32> to vector<10x16x4xf32>
    %6 = vector.extract_strided_slice %4 {offsets = [0, 1, 0], sizes = [10, 16, 4], strides = [1, 1, 1]} : vector<12x18x4xf32> to vector<10x16x4xf32>
    %7 = vector.extract_strided_slice %4 {offsets = [0, 2, 0], sizes = [10, 16, 4], strides = [1, 1, 1]} : vector<12x18x4xf32> to vector<10x16x4xf32>
    %8 = vector.extract_strided_slice %4 {offsets = [1, 0, 0], sizes = [10, 16, 4], strides = [1, 1, 1]} : vector<12x18x4xf32> to vector<10x16x4xf32>
    %9 = vector.extract_strided_slice %4 {offsets = [1, 1, 0], sizes = [10, 16, 4], strides = [1, 1, 1]} : vector<12x18x4xf32> to vector<10x16x4xf32>
    %10 = vector.extract_strided_slice %4 {offsets = [1, 2, 0], sizes = [10, 16, 4], strides = [1, 1, 1]} : vector<12x18x4xf32> to vector<10x16x4xf32>
    %11 = vector.extract_strided_slice %4 {offsets = [2, 0, 0], sizes = [10, 16, 4], strides = [1, 1, 1]} : vector<12x18x4xf32> to vector<10x16x4xf32>
    %12 = vector.extract_strided_slice %4 {offsets = [2, 1, 0], sizes = [10, 16, 4], strides = [1, 1, 1]} : vector<12x18x4xf32> to vector<10x16x4xf32>
    %13 = vector.extract_strided_slice %4 {offsets = [2, 2, 0], sizes = [10, 16, 4], strides = [1, 1, 1]} : vector<12x18x4xf32> to vector<10x16x4xf32>
    %14 = tpu.concatenate %5, %6, %7, %8, %9, %10, %11, %12, %13 in 2 : vector<10x16x4xf32>, vector<10x16x4xf32>, vector<10x16x4xf32>, vector<10x16x4xf32>, vector<10x16x4xf32>, vector<10x16x4xf32>, vector<10x16x4xf32>, vector<10x16x4xf32>, vector<10x16x4xf32> -> vector<10x16x36xf32>
    %15 = vector.shape_cast %14 : vector<10x16x36xf32> to vector<160x36xf32>
    %16 = arith.truncf %15 : vector<160x36xf32> to vector<160x36xbf16>
    %c0_2 = arith.constant 0 : index
    %c0_3 = arith.constant 0 : index
    %17 = vector.load %arg3[%c0_2, %c0_3] : memref<36x8xbf16, #tpu.memory_space<vmem>>, vector<36x8xbf16>
    %cst = arith.constant dense<0.000000e+00> : vector<160x8xf32>
    %18 = tpu.matmul %16, %17, %cst {dimension_numbers = #tpu.dot_dimension_numbers<[1], [0], [0], [1], [0, 0, 1, 1], [], []>} : vector<160x36xbf16>, vector<36x8xbf16>, vector<160x8xf32> -> vector<160x8xf32>
    %c0_4 = arith.constant 0 : index
    %c0_5 = arith.constant 0 : index
    %19 = vector.load %arg4[%c0_4, %c0_5] : memref<1x8xf32, #tpu.memory_space<vmem>>, vector<1x8xf32>
    %20 = vector.broadcast %19 : vector<1x8xf32> to vector<160x8xf32>
    %21 = arith.mulf %18, %20 : vector<160x8xf32>
    %c0_6 = arith.constant 0 : index
    %c0_7 = arith.constant 0 : index
    %22 = vector.load %arg5[%c0_6, %c0_7] : memref<1x8xf32, #tpu.memory_space<vmem>>, vector<1x8xf32>
    %23 = vector.broadcast %22 : vector<1x8xf32> to vector<160x8xf32>
    %24 = arith.addf %21, %23 : vector<160x8xf32>
    %cst_8 = arith.constant 0.000000e+00 : f32
    %25 = vector.broadcast %cst_8 : f32 to vector<160x8xf32>
    %26 = arith.maximumf %24, %25 : vector<160x8xf32>
    %27 = vector.shape_cast %26 : vector<160x8xf32> to vector<10x16x8xf32>
    %c1_i32 = arith.constant 1 : i32
    %28 = arith.subi %1, %c1_i32 : i32
    %29 = tpu.iota {dimensions = array<i32: 0>} : vector<10x1x1xi32>
    %30 = vector.broadcast %28 : i32 to vector<10x1x1xi32>
    %31 = arith.addi %30, %29 : vector<10x1x1xi32>
    %c0_i32 = arith.constant 0 : i32
    %32 = vector.broadcast %c0_i32 : i32 to vector<10x1x1xi32>
    %33 = arith.cmpi sge, %31, %32 : vector<10x1x1xi32>
    %c16_i32 = arith.constant 16 : i32
    %34 = vector.broadcast %c16_i32 : i32 to vector<10x1x1xi32>
    %35 = arith.cmpi slt, %31, %34 : vector<10x1x1xi32>
    %36 = arith.andi %33, %35 : vector<10x1x1xi1>
    %37 = arith.extui %36 : vector<10x1x1xi1> to vector<10x1x1xi32>
    %38 = arith.sitofp %37 : vector<10x1x1xi32> to vector<10x1x1xf32>
    %39 = vector.broadcast %38 : vector<10x1x1xf32> to vector<10x16x8xf32>
    %40 = arith.mulf %27, %39 : vector<10x16x8xf32>
    %cst_9 = arith.constant 0.000000e+00 : f32
    %41 = vector.broadcast %cst_9 : f32 to vector<10x1x8xf32>
    %42 = tpu.concatenate %41, %40, %41 in 1 : vector<10x1x8xf32>, vector<10x16x8xf32>, vector<10x1x8xf32> -> vector<10x18x8xf32>
    %43 = vector.extract_strided_slice %42 {offsets = [0, 0, 0], sizes = [8, 16, 8], strides = [1, 1, 1]} : vector<10x18x8xf32> to vector<8x16x8xf32>
    %44 = vector.extract_strided_slice %42 {offsets = [0, 1, 0], sizes = [8, 16, 8], strides = [1, 1, 1]} : vector<10x18x8xf32> to vector<8x16x8xf32>
    %45 = vector.extract_strided_slice %42 {offsets = [0, 2, 0], sizes = [8, 16, 8], strides = [1, 1, 1]} : vector<10x18x8xf32> to vector<8x16x8xf32>
    %46 = vector.extract_strided_slice %42 {offsets = [1, 0, 0], sizes = [8, 16, 8], strides = [1, 1, 1]} : vector<10x18x8xf32> to vector<8x16x8xf32>
    %47 = vector.extract_strided_slice %42 {offsets = [1, 1, 0], sizes = [8, 16, 8], strides = [1, 1, 1]} : vector<10x18x8xf32> to vector<8x16x8xf32>
    %48 = vector.extract_strided_slice %42 {offsets = [1, 2, 0], sizes = [8, 16, 8], strides = [1, 1, 1]} : vector<10x18x8xf32> to vector<8x16x8xf32>
    %49 = vector.extract_strided_slice %42 {offsets = [2, 0, 0], sizes = [8, 16, 8], strides = [1, 1, 1]} : vector<10x18x8xf32> to vector<8x16x8xf32>
    %50 = vector.extract_strided_slice %42 {offsets = [2, 1, 0], sizes = [8, 16, 8], strides = [1, 1, 1]} : vector<10x18x8xf32> to vector<8x16x8xf32>
    %51 = vector.extract_strided_slice %42 {offsets = [2, 2, 0], sizes = [8, 16, 8], strides = [1, 1, 1]} : vector<10x18x8xf32> to vector<8x16x8xf32>
    %52 = tpu.concatenate %43, %44, %45, %46, %47, %48, %49, %50, %51 in 2 : vector<8x16x8xf32>, vector<8x16x8xf32>, vector<8x16x8xf32>, vector<8x16x8xf32>, vector<8x16x8xf32>, vector<8x16x8xf32>, vector<8x16x8xf32>, vector<8x16x8xf32>, vector<8x16x8xf32> -> vector<8x16x72xf32>
    %53 = vector.shape_cast %52 : vector<8x16x72xf32> to vector<128x72xf32>
    %54 = arith.truncf %53 : vector<128x72xf32> to vector<128x72xbf16>
    %c0_10 = arith.constant 0 : index
    %c0_11 = arith.constant 0 : index
    %55 = vector.load %arg6[%c0_10, %c0_11] : memref<72x4xbf16, #tpu.memory_space<vmem>>, vector<72x4xbf16>
    %cst_12 = arith.constant dense<0.000000e+00> : vector<128x4xf32>
    %56 = tpu.matmul %54, %55, %cst_12 {dimension_numbers = #tpu.dot_dimension_numbers<[1], [0], [0], [1], [0, 0, 1, 1], [], []>} : vector<128x72xbf16>, vector<72x4xbf16>, vector<128x4xf32> -> vector<128x4xf32>
    %c0_13 = arith.constant 0 : index
    %c0_14 = arith.constant 0 : index
    %57 = vector.load %arg7[%c0_13, %c0_14] : memref<1x4xf32, #tpu.memory_space<vmem>>, vector<1x4xf32>
    %58 = vector.broadcast %57 : vector<1x4xf32> to vector<128x4xf32>
    %59 = arith.addf %56, %58 : vector<128x4xf32>
    %60 = vector.shape_cast %59 : vector<128x4xf32> to vector<8x16x4xf32>
    %c2_i32 = arith.constant 2 : i32
    %61 = arith.addi %1, %c2_i32 : i32
    %c0_15 = arith.constant 0 : index
    %62 = arith.index_cast %61 : i32 to index
    %c1 = arith.constant 1 : index
    %c0_16 = arith.constant 0 : index
    %63 = vector.load %arg2[%c0_15, %62, %c1, %c0_16] : memref<1x20x18x4xf32, #tpu.memory_space<vmem>>, vector<1x8x16x4xf32>
    %64 = vector.shape_cast %63 : vector<1x8x16x4xf32> to vector<8x16x4xf32>
    %cst_17 = arith.constant 1.000000e+00 : f32
    %65 = vector.broadcast %cst_17 : f32 to vector<8x16x4xf32>
    %66 = arith.mulf %65, %60 : vector<8x16x4xf32>
    %67 = arith.addf %64, %66 : vector<8x16x4xf32>
    %68 = vector.extract_strided_slice %67 {offsets = [0, 0, 0], sizes = [8, 1, 4], strides = [1, 1, 1]} : vector<8x16x4xf32> to vector<8x1x4xf32>
    %69 = vector.shape_cast %68 : vector<8x1x4xf32> to vector<8x4xf32>
    %70 = vector.extract_strided_slice %67 {offsets = [0, 1, 0], sizes = [8, 1, 4], strides = [1, 1, 1]} : vector<8x16x4xf32> to vector<8x1x4xf32>
    %71 = vector.shape_cast %70 : vector<8x1x4xf32> to vector<8x4xf32>
    %72 = vector.extract_strided_slice %67 {offsets = [0, 2, 0], sizes = [8, 1, 4], strides = [1, 1, 1]} : vector<8x16x4xf32> to vector<8x1x4xf32>
    %73 = vector.shape_cast %72 : vector<8x1x4xf32> to vector<8x4xf32>
    %74 = vector.extract_strided_slice %67 {offsets = [0, 3, 0], sizes = [8, 1, 4], strides = [1, 1, 1]} : vector<8x16x4xf32> to vector<8x1x4xf32>
    %75 = vector.shape_cast %74 : vector<8x1x4xf32> to vector<8x4xf32>
    %76 = vector.extract_strided_slice %67 {offsets = [0, 4, 0], sizes = [8, 1, 4], strides = [1, 1, 1]} : vector<8x16x4xf32> to vector<8x1x4xf32>
    %77 = vector.shape_cast %76 : vector<8x1x4xf32> to vector<8x4xf32>
    %78 = vector.extract_strided_slice %67 {offsets = [0, 5, 0], sizes = [8, 1, 4], strides = [1, 1, 1]} : vector<8x16x4xf32> to vector<8x1x4xf32>
    %79 = vector.shape_cast %78 : vector<8x1x4xf32> to vector<8x4xf32>
    %80 = vector.extract_strided_slice %67 {offsets = [0, 6, 0], sizes = [8, 1, 4], strides = [1, 1, 1]} : vector<8x16x4xf32> to vector<8x1x4xf32>
    %81 = vector.shape_cast %80 : vector<8x1x4xf32> to vector<8x4xf32>
    %82 = vector.extract_strided_slice %67 {offsets = [0, 7, 0], sizes = [8, 1, 4], strides = [1, 1, 1]} : vector<8x16x4xf32> to vector<8x1x4xf32>
    %83 = vector.shape_cast %82 : vector<8x1x4xf32> to vector<8x4xf32>
    %84 = vector.extract_strided_slice %67 {offsets = [0, 8, 0], sizes = [8, 1, 4], strides = [1, 1, 1]} : vector<8x16x4xf32> to vector<8x1x4xf32>
    %85 = vector.shape_cast %84 : vector<8x1x4xf32> to vector<8x4xf32>
    %86 = vector.extract_strided_slice %67 {offsets = [0, 9, 0], sizes = [8, 1, 4], strides = [1, 1, 1]} : vector<8x16x4xf32> to vector<8x1x4xf32>
    %87 = vector.shape_cast %86 : vector<8x1x4xf32> to vector<8x4xf32>
    %88 = vector.extract_strided_slice %67 {offsets = [0, 10, 0], sizes = [8, 1, 4], strides = [1, 1, 1]} : vector<8x16x4xf32> to vector<8x1x4xf32>
    %89 = vector.shape_cast %88 : vector<8x1x4xf32> to vector<8x4xf32>
    %90 = vector.extract_strided_slice %67 {offsets = [0, 11, 0], sizes = [8, 1, 4], strides = [1, 1, 1]} : vector<8x16x4xf32> to vector<8x1x4xf32>
    %91 = vector.shape_cast %90 : vector<8x1x4xf32> to vector<8x4xf32>
    %92 = vector.extract_strided_slice %67 {offsets = [0, 12, 0], sizes = [8, 1, 4], strides = [1, 1, 1]} : vector<8x16x4xf32> to vector<8x1x4xf32>
    %93 = vector.shape_cast %92 : vector<8x1x4xf32> to vector<8x4xf32>
    %94 = vector.extract_strided_slice %67 {offsets = [0, 13, 0], sizes = [8, 1, 4], strides = [1, 1, 1]} : vector<8x16x4xf32> to vector<8x1x4xf32>
    %95 = vector.shape_cast %94 : vector<8x1x4xf32> to vector<8x4xf32>
    %96 = vector.extract_strided_slice %67 {offsets = [0, 14, 0], sizes = [8, 1, 4], strides = [1, 1, 1]} : vector<8x16x4xf32> to vector<8x1x4xf32>
    %97 = vector.shape_cast %96 : vector<8x1x4xf32> to vector<8x4xf32>
    %98 = vector.extract_strided_slice %67 {offsets = [0, 15, 0], sizes = [8, 1, 4], strides = [1, 1, 1]} : vector<8x16x4xf32> to vector<8x1x4xf32>
    %99 = vector.shape_cast %98 : vector<8x1x4xf32> to vector<8x4xf32>
    %100 = tpu.concatenate %69, %71, %73, %75, %77, %79, %81, %83, %85, %87, %89, %91, %93, %95, %97, %99 in 1 : vector<8x4xf32>, vector<8x4xf32>, vector<8x4xf32>, vector<8x4xf32>, vector<8x4xf32>, vector<8x4xf32>, vector<8x4xf32>, vector<8x4xf32>, vector<8x4xf32>, vector<8x4xf32>, vector<8x4xf32>, vector<8x4xf32>, vector<8x4xf32>, vector<8x4xf32>, vector<8x4xf32>, vector<8x4xf32> -> vector<8x64xf32>
    %101 = vector.shape_cast %100 : vector<8x64xf32> to vector<1x8x64xf32>
    %c0_18 = arith.constant 0 : index
    %c0_19 = arith.constant 0 : index
    %c0_20 = arith.constant 0 : index
    %102 = vector.load %arg8[%c0_18, %c0_19, %c0_20] : memref<1x8x64xf32, #tpu.memory_space<vmem>>, vector<1x8x64xf32>
    tpu.vector_store %arg8[%c0_18, %c0_19, %c0_20], %101 {strides = array<i32>} : memref<1x8x64xf32, #tpu.memory_space<vmem>>, vector<1x8x64xf32>,
    return
  }
  func.func @transform_0(%arg0: i32, %arg1: i32) -> (i32, i32, i32, i32) {
    %c0_i32 = arith.constant 0 : i32
    %c0_i32_0 = arith.constant 0 : i32
    %c0_i32_1 = arith.constant 0 : i32
    %c0_i32_2 = arith.constant 0 : i32
    return %arg0, %c0_i32, %c0_i32_0, %c0_i32_1 : i32, i32, i32, i32
  }
  func.func @transform_1(%arg0: i32, %arg1: i32) -> (i32, i32) {
    %c0_i32 = arith.constant 0 : i32
    %c0_i32_0 = arith.constant 0 : i32
    %c0_i32_1 = arith.constant 0 : i32
    return %c0_i32, %c0_i32_0 : i32, i32
  }
  func.func @transform_2(%arg0: i32, %arg1: i32) -> (i32, i32) {
    %c0_i32 = arith.constant 0 : i32
    %c0_i32_0 = arith.constant 0 : i32
    %c0_i32_1 = arith.constant 0 : i32
    return %c0_i32, %c0_i32_0 : i32, i32
  }
  func.func @transform_3(%arg0: i32, %arg1: i32) -> (i32, i32) {
    %c0_i32 = arith.constant 0 : i32
    %c0_i32_0 = arith.constant 0 : i32
    %c0_i32_1 = arith.constant 0 : i32
    return %c0_i32, %c0_i32_0 : i32, i32
  }
  func.func @transform_4(%arg0: i32, %arg1: i32) -> (i32, i32) {
    %c0_i32 = arith.constant 0 : i32
    %c0_i32_0 = arith.constant 0 : i32
    %c0_i32_1 = arith.constant 0 : i32
    return %c0_i32, %c0_i32_0 : i32, i32
  }
  func.func @transform_5(%arg0: i32, %arg1: i32) -> (i32, i32) {
    %c0_i32 = arith.constant 0 : i32
    %c0_i32_0 = arith.constant 0 : i32
    %c0_i32_1 = arith.constant 0 : i32
    return %c0_i32, %c0_i32_0 : i32, i32
  }
  func.func @transform_6(%arg0: i32, %arg1: i32) -> (i32, i32, i32) {
    %c0_i32 = arith.constant 0 : i32
    %c0_i32_0 = arith.constant 0 : i32
    return %arg0, %arg1, %c0_i32 : i32, i32, i32
  }
}

</mosaic_0001>

<bundles_post_ra>
// kernel: tpu_custom_call.1
= control target key start
LH: loop header
LB: loop body
LE: loop exit
PB: predicated region body
PF: predicated region fallthrough
CT: control target
= control target key end

     0   :  { %11 = vsyncpa [#allocation3], 0  ;;  %s5752_s0 = inlined_call_operand.vmem [shape: f32[2,20,18,4], index: 0, kind: input, shape index: {}]   ;;  %s5753_s1 = inlined_call_operand.vmem [shape: bf16[36,8], index: 1, kind: input, shape index: {}]   ;;  %s5754_s2 = inlined_call_operand.vmem [shape: f32[1,8], index: 2, kind: input, shape index: {}]   ;;  %s5755_s3 = inlined_call_operand.vmem [shape: f32[1,8], index: 3, kind: input, shape index: {}]   ;;  %s5756_s4 = inlined_call_operand.vmem [shape: bf16[72,4], index: 4, kind: input, shape index: {}]   ;;  %s5757_s5 = inlined_call_operand.vmem [shape: f32[1,4], index: 5, kind: input, shape index: {}]   ;;  %s5758_s6 = inlined_call_operand.hbm [shape: f32[2,16,64], index: 6, kind: output, shape index: {}]  }
   0x1   :  { %13 = vsyncpa [#allocation3 + $0x1], 0  ;;  %s3746_s21 = smov 0   ;;  %s3748_s22 = smov 0  }
   0x2   :  { %s3750_s23 = smov 0   ;;  %s3752_s24 = smov 0  }
   0x3   :  { %s3754_s25 = smov 0   ;;  %s3756_s26 = smov 0  }
   0x4   :  { %s3758_s27 = smov 0   ;;  %s3760_s28 = smov 0  }
   0x5 LB: > { %s2687_s29 = sadd.s32 4294967295, %s3692_s28   ;;  %s2688_s30 = sadd.s32 4294967294, %s3692_s28   ;;  %s3692_s28 = sphi %s3760_s28, %s19_s28   ;;  %s3688_s27 = sphi %s3758_s27, %s5809_s27   ;;  %s3684_s26 = sphi %s3756_s26, %s5808_s26   ;;  %s3680_s25 = sphi %s3754_s25, %s5807_s25   ;;  %s3676_s24 = sphi %s3752_s24, %s5806_s24   ;;  %s3672_s23 = sphi %s3750_s23, %s5805_s23   ;;  %s3668_s22 = sphi %s3748_s22, %s5804_s22   ;;  %s3664_s21 = sphi %s3746_s21, %s5803_s21  }
   0x6   : > { %s28_s7 = sadd.s32 1, %s3684_s26  ;;  %s31_s8 = sadd.s32 1, %s3688_s27 }
   0x7   : > { %p29_p0 = scmp.ge.s32.totalorder %s28_s7, 2  ;;  %p181_p1 = scmp.ne.s32.totalorder %s3672_s23, %s3668_s22 }
   0x8   : > { %p182_p2 = scmp.eq.s32.totalorder %s2687_s29, 3  ;;  %p187_p5 = scmp.ne.s32.totalorder %s3668_s22, %s3664_s21 }
   0x9   : > { %s5811_s7 = smov (%p29_p0, %s28_s7), 0  ;;  %s5813_s8 = smov (!%p29_p0, %s31_s8), %s3688_s27 }
   0xa   : > { %s167_s9 = ssub.s32 %s3684_s26, %s5811_s7  ;;  %p3797_p3 = por %p182_p2, %p181_p1 }
   0xb   : > { %p33_p4 = scmp.ge.s32.totalorder %s5813_s8, 2  ;;  %p188_p6 = scmp.eq.s32.totalorder %s2688_s30, 3 }
   0xc   : > { %p2691_p7 = scmp.ge.s32.totalorder %s3692_s28, 1  ;;  %p229_p9 = scmp.lt.s32.totalorder %s3692_s28, 5 }
   0xd   : > { %s5815_s8 = smov (%p33_p4, %s5813_s8), 0  ;;  %p3806_p8 = por %p188_p6, %p187_p5 }
   0xe   : > { %s166_s12 = ssub.s32 %s3688_s27, %s5815_s8  ;;  %s171_s13 = sadd.s32 1, %s3672_s23 }
   0xf   : > { %s168_s14 = sor.u32 %s167_s9, %s166_s12  ;;  %p230_p10 = pnand %p2691_p7, %p229_p9 }
  0x10   : > { %p169_p11 = scmp.eq.s32.totalorder %s168_s14, 0 }
  0x11   : > { %233 = sbr.rel (%p230_p10) target bundleno = 1070 (0x42e), region = 44 }
  0x12   : > { %s3815_s15 = scalar_select %p169_p11, %s3672_s23, %s171_s13  }
  0x16   : > { %p259_p12 = scmp.lt.s32.totalorder %s3680_s25, 1  ;;  %s2695_s17 = smul.u32 192, %s3676_s24  ;;  %vm334_vm0 = vcmask 1046528   ;;  %vm445_vm1 = vcmask 1045504   ;;  %vm942_vm2 = vcmask 31744   ;;  %vm963_vm3 = vcmask 64512  }
  0x17   : > { %s5769_s9 = smov 4   ;;  %s5774_s12 = smov 8   ;;  %vm984_vm4 = vcmask 97280   ;;  %vm1005_vm5 = vcmask 130048   ;;  %vm1026_vm6 = vcmask 162816   ;;  %vm1047_vm7 = vcmask 195584  }
  0x18   : > { %s260_s16 = scalar_select %p259_p12, %s3680_s25, 1  ;;  %vm1171_vm8 = vcmask 1041408   ;;  %vm5772_vm9 = vcmask 228352   ;;  %vm1089_vm10 = vcmask 261120   ;;  %vm5771_vm11 = vcmask 293888  }
  0x19   : > { %s5770_s13 = smov 12   ;;  %s3697_s14 = smov 16   ;;  %vm1403_vm15 = vcmask 1040384  }
  0x1a   : > { %s2786_s18 = smul.u32 480, %s260_s16  ;;  %s5768_s16 = smov 20  }
  0x1b   : > { %s3701_s19 = smov 32   ;;  %s3710_s20 = smov 60  }
  0x1c   : > { %s263_s29 = scalar_lea.vmem %s5752_s0, %s2786_s18  ;;  %s5767_s18 = smov 28  }
  0x1d   : > { %s3823_s30 = scalar_lea.vmem %s263_s29, %s2695_s17  ;;  %s5773_s17 = smov 24  }
  0x1e   : > { %v3826_v0 = vld [vmem:[%s3823_s30 + $0x60] sm:$0xff]  ;;  %v3829_v1 = vld [vmem:[%s3823_s30 + $0x68] sm:$0xff]  ;;  %v3832_v2 = vld [vmem:[%s3823_s30 + $0x70] sm:$0x3]  ;;  %s5793_s29 = smov 8  }
  0x1f   : > { %v355_v3 = vrot.slane %v3826_v0, 1  ;;  %v356_v4 = vrot.slane %v3829_v1, 1  ;;  %v358_v5 = vrot.slane %v3832_v2, 1  ;;  %v3838_v6 = vld [vmem:[%s3823_s30 + $0x30] sm:$0xff]  ;;  %v3841_v7 = vld [vmem:[%s3823_s30 + $0x38] sm:$0xff]  ;;  %v3849_v11 = vld [vmem:[%s3823_s30] sm:$0xff] }
  0x20   : > { %v3844_v8 = vld [vmem:[%s3823_s30 + $0x40] sm:$0x3]  ;;  %v345_v9 = vrot.slane %v3838_v6, 1  ;;  %v346_v10 = vrot.slane %v3841_v7, 1  ;;  %v3852_v12 = vld [vmem:[%s3823_s30 + $0x8] sm:$0xff]  ;;  %v3861_v17 = vld [vmem:[%s3823_s30 + $0x78] sm:$0xff] }
  0x21   : > { %v357_v13 = vsel %vm334_vm0, %v355_v3, %v356_v4  ;;  %v359_v14 = vsel %vm334_vm0, %v356_v4, %v358_v5  ;;  %v348_v15 = vrot.slane %v3844_v8, 1  ;;  %v3858_v16 = vld [vmem:[%s3823_s30 + $0x10] sm:$0x3]  ;;  %v3864_v18 = vld [vmem:[%s3823_s30 + $0x80] sm:$0xff]  ;;  %v335_v21 = vrot.slane %v3849_v11, 1  ;;  %v3875_v24 = vld [vmem:[%s3823_s30 + $0x48] sm:$0xff] }
  0x22   : > { %v3866_v19 = vpack.i.bf16 %v359_v14, %v357_v13  ;;  %v347_v20 = vsel %vm334_vm0, %v345_v9, %v346_v10  ;;  %v336_v22 = vrot.slane %v3852_v12, 1  ;;  %v3872_v23 = vld [vmem:[%s3823_s30 + $0x88] sm:$0x3]  ;;  %v3878_v25 = vld [vmem:[%s3823_s30 + $0x50] sm:$0xff]  ;;  %v338_v27 = vrot.slane %v3858_v16, 1  ;;  %v3887_v30 = vld [vmem:[%s3823_s30 + $0x18] sm:$0xff] }
  0x23   : > { %v349_v26 = vsel %vm334_vm0, %v346_v10, %v348_v15  ;;  %v360_v28 = vrot.slane %v3861_v17, 1  ;;  %v3884_v29 = vld [vmem:[%s3823_s30 + $0x58] sm:$0x3]  ;;  %v361_v33 = vrot.slane %v3864_v18, 1  ;;  %v363_v34 = vrot.slane %v3872_v23, 1  ;;  %v3897_v35 = vld [vmem:[%s3823_s30 + $0x20] sm:$0xff] }
  0x24   : > { %2896 = vrot.lane.b32.xlu2 %v3866_v19, %s5769_s9  ;;  %v3891_v31 = vpack.i.bf16 %v349_v26, %v347_v20  ;;  %v337_v32 = vsel %vm334_vm0, %v335_v21, %v336_v22  ;;  %v3900_v36 = vld [vmem:[%s3823_s30 + $0x28] sm:$0x3]  ;;  %v339_v37 = vsel %vm334_vm0, %v336_v22, %v338_v27  ;;  %v350_v38 = vrot.slane %v3875_v24, 1  ;;  %v3907_v41 = vld [vmem:[%s3823_s30 + $0xc0] sm:$0xff]  ;;  %v3918_v47 = vld [vmem:[%s3823_s30 + $0xd0] sm:$0x3] }
  0x25   : > { %v351_v39 = vrot.slane %v3878_v25, 1  ;;  %v353_v40 = vrot.slane %v3884_v29, 1  ;;  %v3910_v42 = vld [vmem:[%s3823_s30 + $0xc8] sm:$0xff]  ;;  %v2875_v43 = vpack.i.bf16 %v339_v37, %v337_v32  ;;  %v362_v44 = vsel %vm334_vm0, %v360_v28, %v361_v33  ;;  %v3933_v56 = vld [vmem:[%s3823_s30 + $0xb0] sm:$0xff]  ;;  %v3936_v57 = vld [vmem:[%s3823_s30 + $0xb8] sm:$0x3] }
  0x26   : > { %2886 = vrot.lane.b32.xlu1 %v3891_v31, %s5769_s9  ;;  %v364_v45 = vsel %vm334_vm0, %v361_v33, %v363_v34  ;;  %v340_v46 = vrot.slane %v3887_v30, 1  ;;  %v341_v50 = vrot.slane %v3897_v35, 1  ;;  %v3924_v51 = vld [vmem:[%s3823_s30 + $0xa8] sm:$0xff]  ;;  %v343_v53 = vrot.slane %v3900_v36, 1  ;;  %v3944_v62 = vld [vmem:[%s3823_s30 + $0x90] sm:$0xff]  ;;  %v3947_v63 = vld [vmem:[%s3823_s30 + $0x98] sm:$0xff] }
  0x27   : > { %v352_v48 = vsel %vm334_vm0, %v350_v38, %v351_v39  ;;  %v354_v49 = vsel %vm334_vm0, %v351_v39, %v353_v40  ;;  %2876 = vrot.lane.b32.xlu0 %v2875_v43, %s5769_s9  ;;  %v3927_v52 = vpack.i.bf16 %v364_v45, %v362_v44  ;;  %v375_v54 = vrot.slane %v3907_v41, 1  ;;  %v3950_v3 = vld [vmem:[%s3823_s30 + $0xa0] sm:$0x3]  ;;  %v3978_v38 = vld [vmem:[%s3823_s30 + $0xd8] sm:$0xff]  ;;  %v3986_v43 = vld [vmem:[%s3823_s30 + $0xe8] sm:$0x3] }
  0x28   : > { %v376_v55 = vrot.slane %v3910_v42, 1  ;;  %v342_v58 = vsel %vm334_vm0, %v340_v46, %v341_v50  ;;  %v378_v59 = vrot.slane %v3918_v47, 1  ;;  %v3940_v60 = vpack.i.bf16 %v354_v49, %v352_v48  ;;  %v3983_v40 = vld [vmem:[%s3823_s30 + $0xe0] sm:$0xff] }
  0x29   : > { %v344_v61 = vsel %vm334_vm0, %v341_v50, %v343_v53  ;;  %v370_v4 = vrot.slane %v3924_v51, 1  ;;  %v371_v5 = vrot.slane %v3933_v56, 1  ;;  %v373_v9 = vrot.slane %v3936_v57, 1 }
  0x2a   : > { %v3957_v10 = vpack.i.bf16 %v344_v61, %v342_v58  ;;  %v377_v13 = vsel %vm334_vm0, %v375_v54, %v376_v55  ;;  %v379_v14 = vsel %vm334_vm0, %v376_v55, %v378_v59  ;;  %v365_v15 = vrot.slane %v3944_v62, 1 }
  0x2b   : > { %v366_v20 = vrot.slane %v3947_v63, 1  ;;  %v368_v21 = vrot.slane %v3950_v3, 1  ;;  %v372_v22 = vsel %vm334_vm0, %v370_v4, %v371_v5  ;;  %v374_v26 = vsel %vm334_vm0, %v371_v5, %v373_v9 }
  0x2c   : > { %2901 = vrot.lane.b32.xlu2 %v3927_v52, %s5769_s9  ;;  %v3970_v27 = vpack.i.bf16 %v379_v14, %v377_v13  ;;  %v451_v28 = vrot.slane %v3887_v30, 2  ;;  %v452_v34 = vrot.slane %v3897_v35, 2  ;;  %v454_v37 = vrot.slane %v3900_v36, 2 }
  0x2d   : > { %v367_v32 = vsel %vm334_vm0, %v365_v15, %v366_v20  ;;  %v369_v33 = vsel %vm334_vm0, %v366_v20, %v368_v21  ;;  %v3980_v39 = vpack.i.bf16 %v374_v26, %v372_v22  ;;  %v449_v44 = vrot.slane %v3858_v16, 2 }
  0x2e   : > { %2891 = vrot.lane.b32.xlu1 %v3940_v60, %s5769_s9  ;;  %v446_v45 = vrot.slane %v3849_v11, 2  ;;  %v447_v46 = vrot.slane %v3852_v12, 2  ;;  %v3993_v48 = vpack.i.bf16 %v369_v33, %v367_v32  ;;  %v380_v36 = vrot.slane %v3978_v38, 1 }
  0x2f   : > { %2881 = vrot.lane.b32.xlu0 %v3957_v10, %s5769_s9  ;;  %v453_v49 = vsel %vm445_vm1, %v451_v28, %v452_v34  ;;  %v455_v50 = vsel %vm445_vm1, %v452_v34, %v454_v37  ;;  %v381_v53 = vrot.slane %v3983_v40, 1  ;;  %v383_v54 = vrot.slane %v3986_v43, 1 }
  0x30   : > { %v448_v16 = vsel %vm445_vm1, %v446_v45, %v447_v46  ;;  %v450_v55 = vsel %vm445_vm1, %v447_v46, %v449_v44  ;;  %v469_v58 = vrot.slane %v3832_v2, 2  ;;  %v4007_v59 = vpack.i.bf16 %v455_v50, %v453_v49 }
  0x31   : > { %v382_v61 = vsel %vm334_vm0, %v380_v36, %v381_v53  ;;  %v384_v4 = vsel %vm334_vm0, %v381_v53, %v383_v54  ;;  %v466_v5 = vrot.slane %v3826_v0, 2  ;;  %v467_v9 = vrot.slane %v3829_v1, 2 }
  0x32   : > { %v2925_v13 = vpack.i.bf16 %v450_v55, %v448_v16  ;;  %v461_v14 = vrot.slane %v3875_v24, 2  ;;  %v462_v15 = vrot.slane %v3878_v25, 2  ;;  %v464_v2 = vrot.slane %v3884_v29, 2 }
  0x33   : > { %v459_v20 = vrot.slane %v3844_v8, 2  ;;  %v4019_v21 = vpack.i.bf16 %v384_v4, %v382_v61  ;;  %v468_v22 = vsel %vm445_vm1, %v466_v5, %v467_v9  ;;  %v470_v26 = vsel %vm445_vm1, %v467_v9, %v469_v58 }
  0x34   : > { %2916 = vrot.lane.b32.xlu2 %v3970_v27, %s5769_s9  ;;  %v456_v28 = vrot.slane %v3838_v6, 2  ;;  %v457_v32 = vrot.slane %v3841_v7, 2  ;;  %v463_v29 = vsel %vm445_vm1, %v461_v14, %v462_v15  ;;  %v465_v8 = vsel %vm445_vm1, %v462_v15, %v464_v2 }
  0x35   : > { %v4030_v33 = vpack.i.bf16 %v470_v26, %v468_v22  ;;  %v481_v34 = vrot.slane %v3924_v51, 2  ;;  %v482_v37 = vrot.slane %v3933_v56, 2  ;;  %v484_v46 = vrot.slane %v3936_v57, 2 }
  0x36   : > { %2911 = vrot.lane.b32.xlu1 %v3980_v39, %s5769_s9  ;;  %v458_v44 = vsel %vm445_vm1, %v456_v28, %v457_v32  ;;  %v460_v45 = vsel %vm445_vm1, %v457_v32, %v459_v20  ;;  %v4037_v36 = vpack.i.bf16 %v465_v8, %v463_v29  ;;  %v476_v49 = vrot.slane %v3944_v62, 2 }
  0x37   : > { %2906 = vrot.lane.b32.xlu0 %v3993_v48, %s5769_s9  ;;  %v477_v50 = vrot.slane %v3947_v63, 2  ;;  %v479_v53 = vrot.slane %v3950_v3, 2  ;;  %v4044_v54 = vpack.i.bf16 %v460_v45, %v458_v44  ;;  %v483_v16 = vsel %vm445_vm1, %v481_v34, %v482_v37 }
  0x38   : > { %v485_v55 = vsel %vm445_vm1, %v482_v37, %v484_v46  ;;  %v471_v58 = vrot.slane %v3861_v17, 2  ;;  %v472_v57 = vrot.slane %v3864_v18, 2  ;;  %v474_v61 = vrot.slane %v3872_v23, 2 }
  0x39   : > { %v478_v3 = vsel %vm445_vm1, %v476_v49, %v477_v50  ;;  %v480_v4 = vsel %vm445_vm1, %v477_v50, %v479_v53  ;;  %v4057_v5 = vpack.i.bf16 %v485_v55, %v483_v16  ;;  %v491_v23 = vrot.slane %v3978_v38, 2  ;;  %v298_v16 = vld [vmem:[%s3823_s30 + $0xf0] sm:$0xff]  ;;  %v299_v55 = vld [vmem:[%s3823_s30 + $0xf8] sm:$0xff] }
  0x3a   : > { %v473_v9 = vsel %vm445_vm1, %v471_v58, %v472_v57  ;;  %v4061_v14 = vpack.i.bf16 %v480_v4, %v478_v3  ;;  %v492_v15 = vrot.slane %v3983_v40, 2  ;;  %v494_v2 = vrot.slane %v3986_v43, 2  ;;  %v300_v4 = vld [vmem:[%s3823_s30 + $0x100] sm:$0x3] }
  0x3b   : > { %v486_v22 = vrot.slane %v3907_v41, 2  ;;  %v487_v26 = vrot.slane %v3910_v42, 2  ;;  %v489_v28 = vrot.slane %v3918_v47, 2  ;;  %v2975_v43 = vpack.i.bf16 %v3897_v35, %v3887_v30 }
  0x3c   : > { %2931 = vrot.lane.b32.xlu2 %v4007_v59, %s5774_s12  ;;  %5778 = vst [vmem:[#allocation5_spill] sm:$0xff] %v4061_v14  ;;  %v493_v32 = vsel %vm445_vm1, %v491_v23, %v492_v15  ;;  %v495_v29 = vsel %vm445_vm1, %v492_v15, %v494_v2  ;;  %v4094_v44 = vpack.i.bf16 %v3829_v1, %v3826_v0  ;;  %v622_v23 = vrot.slane %v300_v4, 1 }
  0x3d   : > { %v488_v8 = vsel %vm445_vm1, %v486_v22, %v487_v26  ;;  %v490_v34 = vsel %vm445_vm1, %v487_v26, %v489_v28  ;;  %v4083_v37 = vpack.i.bf16 %v495_v29, %v493_v32  ;;  %v4098_v45 = vpack.i.bf16 %v3878_v25, %v3875_v24 }
  0x3e   : > { %2926 = vrot.lane.b32.xlu1 %v2925_v13, %s5774_s12  ;;  %v475_v13 = vsel %vm445_vm1, %v472_v57, %v474_v61  ;;  %v4086_v47 = vpack.i.bf16 %v490_v34, %v488_v8  ;;  %v2980_v46 = vpack.i.bf16 %v3841_v7, %v3838_v6  ;;  %v4109_v49 = vpack.i.bf16 %v3933_v56, %v3924_v51 }
  0x3f   : > { %2921 = vrot.lane.b32.xlu0 %v4019_v21, %s5769_s9  ;;  %v4068_v20 = vpack.i.bf16 %v475_v13, %v473_v9  ;;  %v4113_v50 = vpack.i.bf16 %v3947_v63, %v3944_v62  ;;  %v2995_v53 = vpack.i.bf16 %v3864_v18, %v3861_v17  ;;  %v4124_v58 = vpack.i.bf16 %v299_v55, %v298_v16  ;;  %s3703_s9 = smov 56  }
  0x40   : > { %5780 = vst [vmem:[#allocation7_spill] sm:$0xff] %v4086_v47  ;;  %v4128_v57 = vpack.i.bf16 %v3983_v40, %v3978_v38  ;;  %v3010_v61 = vpack.i.bf16 %v3910_v42, %v3907_v41  ;;  %v619_v9 = vrot.slane %v298_v16, 1  ;;  %v620_v13 = vrot.slane %v299_v55, 1 }
  0x41   : > { %5779 = vst [vmem:[#allocation6_spill] sm:$0xff] %v4068_v20  ;;  %v687_v8 = vrot.slane %v300_v4, 2 }
  0x42   : > { %v621_v15 = vsel %vm334_vm0, %v619_v9, %v620_v13  ;;  %v623_v2 = vsel %vm334_vm0, %v620_v13, %v622_v23 }
  0x43   : > { %v4164_v22 = vpack.i.bf16 %v623_v2, %v621_v15 }
  0x44   : > { %2946 = vrot.lane.b32.xlu2 %v4030_v33, %s5774_s12 }
  0x45   : > { %5781 = vst [vmem:[#allocation8_spill] sm:$0xff] %v4164_v22 }
  0x46   : > { %2941 = vrot.lane.b32.xlu1 %v4037_v36, %s5774_s12 }
  0x47   : > { %2936 = vrot.lane.b32.xlu0 %v4044_v54, %s5774_s12 }
  0x4c   : > { %2961 = vrot.lane.b32.xlu2 %v4057_v5, %s5774_s12 }
  0x4e   : > { %2956 = vrot.lane.b32.xlu1 %v4061_v14, %s5774_s12 }
  0x4f   : > { %2951 = vrot.lane.b32.xlu0 %v4068_v20, %s5774_s12 }
  0x54   : > { %2976 = vrot.lane.b32.xlu2 %v2975_v43, %s5770_s13  ;;  %v685_v43 = vrot.slane %v299_v55, 2 }
  0x56   : > { %2971 = vrot.lane.b32.xlu1 %v4083_v37, %s5774_s12  ;;  %v688_v13 = vsel %vm445_vm1, %v685_v43, %v687_v8 }
  0x57   : > { %2966 = vrot.lane.b32.xlu0 %v4086_v47, %s5774_s12 }
  0x5c   : > { %2991 = vrot.lane.b32.xlu2 %v4094_v44, %s5770_s13 }
  0x5e   : > { %2986 = vrot.lane.b32.xlu1 %v4098_v45, %s5770_s13 }
  0x5f   : > { %2981 = vrot.lane.b32.xlu0 %v2980_v46, %s5770_s13 }
  0x64   : > { %3006 = vrot.lane.b32.xlu2 %v4109_v49, %s5770_s13 }
  0x66   : > { %3001 = vrot.lane.b32.xlu1 %v4113_v50, %s5770_s13 }
  0x67   : > { %2996 = vrot.lane.b32.xlu0 %v2995_v53, %s5770_s13 }
  0x6c   : > { %3021 = vrot.lane.b32.xlu2 %v4124_v58, %s5770_s13 }
  0x6e   : > { %3016 = vrot.lane.b32.xlu1 %v4128_v57, %s5770_s13 }
  0x6f   : > { %3011 = vrot.lane.b32.xlu0 %v3010_v61, %s5770_s13  ;;  %s3704_s13 = smov 48  }
  0x74   : > { %3036 = vrot.lane.b32.xlu2 %v3940_v60, %s3697_s14 }
  0x76   : > { %3031 = vrot.lane.b32.xlu1 %v3891_v31, %s3697_s14 }
  0x77   : > { %3026 = vrot.lane.b32.xlu0 %v3957_v10, %s3697_s14 }
  0x7c   : > { %3051 = vrot.lane.b32.xlu2 %v3993_v48, %s3697_s14 }
  0x7e   : > { %3046 = vrot.lane.b32.xlu1 %v3927_v52, %s3697_s14  ;;  %v4147_v3 = vpop.permute.xlu2 %2896 }
  0x7f   : > { %3041 = vrot.lane.b32.xlu0 %v3866_v19, %s3697_s14 }
  0x84   : > { %3066 = vrot.lane.b32.xlu2 %v4019_v21, %s3697_s14 }
  0x86   : > { %3061 = vrot.lane.b32.xlu1 %v3970_v27, %s3697_s14  ;;  %v4156_v10 = vpop.permute.xlu2 %2901 }
  0x87   : > { %3056 = vrot.lane.b32.xlu0 %v3980_v39, %s3697_s14 }
  0x8c   : > { %3081 = vrot.lane.b32.xlu2 %v4044_v54, %s5768_s16 }
  0x8e   : > { %3076 = vrot.lane.b32.xlu1 %v4007_v59, %s5768_s16  ;;  %v4168_v26 = vpop.permute.xlu2 %2916  ;;  %v684_v59 = vrot.slane %v298_v16, 2 }
  0x8f   : > { %3071 = vrot.lane.b32.xlu0 %v4164_v22, %s3697_s14  ;;  %v4221_v22 = vld [vmem:[%s3823_s30 + $0x110] sm:$0xff] }
  0x90   : > { %v686_v9 = vsel %vm445_vm1, %v684_v59, %v685_v43 }
  0x91   : > { %v4196_v16 = vpack.i.bf16 %v688_v13, %v686_v9  ;;  %v4218_v13 = vld [vmem:[%s3823_s30 + $0x108] sm:$0xff] }
  0x92   : > { %5784 = vst [vmem:[#allocation11_spill] sm:$0xff] %v4218_v13 }
  0x93   : > { %5782 = vst [vmem:[#allocation9_spill] sm:$0xff] %v4196_v16 }
  0x94   : > { %3096 = vrot.lane.b32.xlu2 %v4068_v20, %s5768_s16 }
  0x96   : > { %3091 = vrot.lane.b32.xlu1 %v4030_v33, %s5768_s16  ;;  %v4176_v28 = vpop.permute.xlu2 %2931 }
  0x97   : > { %3086 = vrot.lane.b32.xlu0 %v4037_v36, %s5768_s16 }
  0x98   : > { %v4180_v32 = vpop.permute.xlu1 %2886 }
  0x99   : > { %v4182_v29 = vpop.permute.xlu0 %2876 }
  0x9c   : > { %3111 = vrot.lane.b32.xlu2 %v4086_v47, %s5768_s16 }
  0x9e   : > { %3106 = vrot.lane.b32.xlu1 %v4057_v5, %s5768_s16  ;;  %v4188_v34 = vpop.permute.xlu2 %2946 }
  0x9f   : > { %3101 = vrot.lane.b32.xlu0 %v4061_v14, %s5768_s16 }
  0xa0   : > { %v2892_v23 = vpop.permute.xlu1 %2891 }
  0xa1   : > { %v4194_v15 = vpop.permute.xlu0 %2881  ;;  %v2894_v8 = vunpack.i.h.bf16 %v2892_v23  ;;  %v2893_v9 = vunpack.i.l.bf16 %v2892_v23 }
  0xa3   : > { %v949_v23 = vsel %vm942_vm2, %v3875_v24, %v2893_v9 }
  0xa4   : > { %3126 = vrot.lane.b32.xlu2 %v2980_v46, %s5773_s17 }
  0xa6   : > { %3121 = vrot.lane.b32.xlu1 %v4196_v16, %s5768_s16  ;;  %v4201_v55 = vpop.permute.xlu2 %2961 }
  0xa7   : > { %3116 = vrot.lane.b32.xlu0 %v4083_v37, %s5768_s16  ;;  %s2694_s16 = sshll.u32 %s3676_s24, 3 }
  0xa8   : > { %v4205_v4 = vpop.permute.xlu1 %2911 }
  0xa9   : > { %v2907_v2 = vpop.permute.xlu0 %2906 }
  0xac   : > { %3141 = vrot.lane.b32.xlu2 %v2995_v53, %s5773_s17  ;;  %v3170_v53 = vpack.i.bf16 %v4221_v22, %v4218_v13 }
  0xae   : > { %3136 = vrot.lane.b32.xlu1 %v4094_v44, %s5773_s17  ;;  %v4210_v59 = vpop.permute.xlu2 %2976 }
  0xaf   : > { %5783 = vst [vmem:[#allocation10_spill] sm:$0xff] %v4210_v59  ;;  %3131 = vrot.lane.b32.xlu0 %v4098_v45, %s5773_s17  ;;  %v950_v45 = vsel %vm942_vm2, %v3878_v25, %v2894_v8  ;;  %v2908_v8 = vunpack.i.l.bf16 %v2907_v2 }
  0xb0   : > { %v4214_v46 = vpop.permute.xlu1 %2926 }
  0xb1   : > { %v2922_v43 = vpop.permute.xlu0 %2921 }
  0xb4   : > { %3156 = vrot.lane.b32.xlu2 %v3010_v61, %s5773_s17 }
  0xb6   : > { %3151 = vrot.lane.b32.xlu1 %v4109_v49, %s5773_s17  ;;  %v2992_v44 = vpop.permute.xlu2 %2991 }
  0xb7   : > { %3146 = vrot.lane.b32.xlu0 %v4113_v50, %s5773_s17  ;;  %v2994_v61 = vunpack.i.h.bf16 %v2992_v44  ;;  %v2993_v14 = vunpack.i.l.bf16 %v2992_v44  ;;  %v2909_v50 = vunpack.i.h.bf16 %v2907_v2 }
  0xb8   : > { %v2942_v16 = vpop.permute.xlu1 %2941 }
  0xb9   : > { %v2944_v47 = vunpack.i.h.bf16 %v2942_v16  ;;  %v2943_v20 = vunpack.i.l.bf16 %v2942_v16  ;;  %v4233_v49 = vpop.permute.xlu0 %2936 }
  0xbb   : > { %v971_v59 = vsel %vm963_vm3, %v950_v45, %v2944_v47  ;;  %v970_v13 = vsel %vm963_vm3, %v949_v23, %v2943_v20  ;;  %v2923_v23 = vunpack.i.l.bf16 %v2922_v43 }
  0xbc   : > { %3171 = vrot.lane.b32.xlu2 %v3170_v53, %s5773_s17  ;;  %v4239_v24 = vsel %vm984_vm4, %v970_v13, %v2993_v14  ;;  %v4242_v25 = vsel %vm984_vm4, %v971_v59, %v2994_v61  ;;  %v956_v14 = vsel %vm942_vm2, %v3947_v63, %v2909_v50  ;;  %v955_v59 = vsel %vm942_vm2, %v3944_v62, %v2908_v8 }
  0xbd   : > { %v2924_v63 = vunpack.i.h.bf16 %v2922_v43  ;;  %v2889_v43 = vunpack.i.h.bf16 %v4180_v32 }
  0xbe   : > { %3166 = vrot.lane.b32.xlu1 %v4124_v58, %s5773_s17  ;;  %v3007_v16 = vpop.permute.xlu2 %3006 }
  0xbf   : > { %3161 = vrot.lane.b32.xlu0 %v4128_v57, %s5773_s17  ;;  %v3009_v47 = vunpack.i.h.bf16 %v3007_v16  ;;  %v3008_v20 = vunpack.i.l.bf16 %v3007_v16 }
  0xc0   : > { %v2957_v9 = vpop.permute.xlu1 %2956 }
  0xc1   : > { %v2959_v44 = vunpack.i.h.bf16 %v2957_v9  ;;  %v2958_v53 = vunpack.i.l.bf16 %v2957_v9  ;;  %v4252_v13 = vpop.permute.xlu0 %2951 }
  0xc3   : > { %v976_v2 = vsel %vm963_vm3, %v955_v59, %v2958_v53  ;;  %v977_v58 = vsel %vm963_vm3, %v956_v14, %v2959_v44  ;;  %v2939_v14 = vunpack.i.h.bf16 %v4233_v49 }
  0xc4   : > { %3186 = vrot.lane.b32.xlu2 %v3866_v19, %s5767_s18  ;;  %v4259_v57 = vsel %vm984_vm4, %v976_v2, %v3008_v20  ;;  %v4262_v45 = vsel %vm984_vm4, %v977_v58, %v3009_v47  ;;  %v962_v20 = vsel %vm942_vm2, %v3983_v40, %v2924_v63  ;;  %v961_v47 = vsel %vm942_vm2, %v3978_v38, %v2923_v23 }
  0xc5   : > { %v2899_v38 = vunpack.i.h.bf16 %v4147_v3  ;;  %v2898_v2 = vunpack.i.l.bf16 %v4147_v3  ;;  %v948_v58 = vsel %vm942_vm2, %v3841_v7, %v2889_v43  ;;  %v2903_v23 = vunpack.i.l.bf16 %v4156_v10 }
  0xc6   : > { %3181 = vrot.lane.b32.xlu1 %v3940_v60, %s5767_s18  ;;  %v3022_v62 = vpop.permute.xlu2 %3021  ;;  %v2888_v60 = vunpack.i.l.bf16 %v4180_v32  ;;  %v2938_v32 = vunpack.i.l.bf16 %v4233_v49  ;;  %v969_v7 = vsel %vm963_vm3, %v948_v58, %v2939_v14  ;;  %v2934_v14 = vunpack.i.h.bf16 %v4176_v28 }
  0xc7   : > { %3176 = vrot.lane.b32.xlu0 %v3891_v31, %s5767_s18  ;;  %v3024_v61 = vunpack.i.h.bf16 %v3022_v62  ;;  %v3023_v50 = vunpack.i.l.bf16 %v3022_v62 }
  0xc8   : > { %v2972_v8 = vpop.permute.xlu1 %2971  ;;  %v947_v63 = vsel %vm942_vm2, %v3838_v6, %v2888_v60 }
  0xc9   : > { %v2974_v16 = vunpack.i.h.bf16 %v2972_v8  ;;  %v2973_v19 = vunpack.i.l.bf16 %v2972_v8  ;;  %v4272_v9 = vpop.permute.xlu0 %2966  ;;  %v2918_v8 = vunpack.i.l.bf16 %v4168_v26 }
  0xcb   : > { %v982_v44 = vsel %vm963_vm3, %v961_v47, %v2973_v19  ;;  %v983_v31 = vsel %vm963_vm3, %v962_v20, %v2974_v16  ;;  %v968_v16 = vsel %vm963_vm3, %v947_v63, %v2938_v32  ;;  %v2948_v47 = vunpack.i.l.bf16 %v4188_v34 }
  0xcc   : > { %3201 = vrot.lane.b32.xlu2 %v4044_v54, %s3701_s19  ;;  %v4281_v53 = vsel %vm984_vm4, %v982_v44, %v3023_v50  ;;  %v4284_v40 = vsel %vm984_vm4, %v983_v31, %v3024_v61  ;;  %v2904_v54 = vunpack.i.h.bf16 %v4156_v10  ;;  %v952_v10 = vsel %vm942_vm2, %v3829_v1, %v2899_v38 }
  0xcd   : > { %v951_v1 = vsel %vm942_vm2, %v3826_v0, %v2898_v2  ;;  %v953_v44 = vsel %vm942_vm2, %v3861_v17, %v2903_v23  ;;  %v2954_v31 = vunpack.i.h.bf16 %v4252_v13  ;;  %v2953_v38 = vunpack.i.l.bf16 %v4252_v13 }
  0xce   : > { %3196 = vrot.lane.b32.xlu1 %v3993_v48, %s5767_s18  ;;  %v3037_v59 = vpop.permute.xlu2 %3036  ;;  %v2919_v48 = vunpack.i.h.bf16 %v4168_v26  ;;  %v954_v60 = vsel %vm942_vm2, %v3864_v18, %v2904_v54  ;;  %v2879_v18 = vunpack.i.h.bf16 %v4182_v29  ;;  %v2878_v17 = vunpack.i.l.bf16 %v4182_v29 }
  0xcf   : > { %3191 = vrot.lane.b32.xlu0 %v3927_v52, %s5767_s18  ;;  %v3039_v49 = vunpack.i.h.bf16 %v3037_v59  ;;  %v3038_v62 = vunpack.i.l.bf16 %v3037_v59  ;;  %v2949_v52 = vunpack.i.h.bf16 %v4188_v34  ;;  %v2884_v2 = vunpack.i.h.bf16 %v4194_v15 }
  0xd0   : > { %v2987_v61 = vpop.permute.xlu1 %2986  ;;  %v960_v34 = vsel %vm942_vm2, %v3910_v42, %v2919_v48  ;;  %v972_v42 = vsel %vm963_vm3, %v951_v1, %v2948_v47  ;;  %v2913_v63 = vunpack.i.l.bf16 %v4205_v4  ;;  %v975_v29 = vsel %vm963_vm3, %v954_v60, %v2954_v31 }
  0xd1   : > { %v2989_v50 = vunpack.i.h.bf16 %v2987_v61  ;;  %v2988_v3 = vunpack.i.l.bf16 %v2987_v61  ;;  %v4304_v6 = vpop.permute.xlu0 %2981  ;;  %v973_v32 = vsel %vm963_vm3, %v952_v10, %v2949_v52  ;;  %v974_v23 = vsel %vm963_vm3, %v953_v44, %v2953_v38 }
  0xd2   : > { %v2969_v52 = vunpack.i.h.bf16 %v4272_v9  ;;  %v944_v47 = vsel %vm942_vm2, %v3852_v12, %v2879_v18  ;;  %v943_v1 = vsel %vm942_vm2, %v3849_v11, %v2878_v17  ;;  %v2928_v11 = vunpack.i.l.bf16 %v4214_v46 }
  0xd3   : > { %v989_v19 = vsel %vm984_vm4, %v968_v16, %v2988_v3  ;;  %v990_v20 = vsel %vm984_vm4, %v969_v7, %v2989_v50  ;;  %v2883_v50 = vunpack.i.l.bf16 %v4194_v15  ;;  %v2963_v7 = vunpack.i.l.bf16 %v4201_v55 }
  0xd4   : > { %3216 = vrot.lane.b32.xlu2 %v4037_v36, %s3701_s19  ;;  %v4315_v26 = vsel %vm1005_vm5, %v989_v19, %v3038_v62  ;;  %v4318_v43 = vsel %vm1005_vm5, %v990_v20, %v3039_v49  ;;  %v959_v36 = vsel %vm942_vm2, %v3907_v41, %v2918_v8  ;;  %v2964_v8 = vunpack.i.h.bf16 %v4201_v55 }
  0xd5   : > { %v2968_v19 = vunpack.i.l.bf16 %v4272_v9  ;;  %v2933_v20 = vunpack.i.l.bf16 %v4176_v28 }
  0xd6   : > { %3211 = vrot.lane.b32.xlu1 %v3970_v27, %s5767_s18  ;;  %v3052_v0 = vpop.permute.xlu2 %3051  ;;  %v2914_v27 = vunpack.i.h.bf16 %v4205_v4 }
  0xd7   : > { %3206 = vrot.lane.b32.xlu0 %v3980_v39, %s5767_s18  ;;  %v3054_v41 = vunpack.i.h.bf16 %v3052_v0  ;;  %v3053_v59 = vunpack.i.l.bf16 %v3052_v0  ;;  %v981_v0 = vsel %vm963_vm3, %v960_v34, %v2969_v52 }
  0xd8   : > { %v3002_v13 = vpop.permute.xlu1 %3001  ;;  %v958_v15 = vsel %vm942_vm2, %v3933_v56, %v2914_v27  ;;  %v946_v56 = vsel %vm942_vm2, %v3897_v35, %v2884_v2  ;;  %v980_v35 = vsel %vm963_vm3, %v959_v36, %v2968_v19  ;;  %v5785_v36 = vld [vmem:[#allocation10_spill] sm:$0xff] }
  0xd9   : > { %v3004_v54 = vunpack.i.h.bf16 %v3002_v13  ;;  %v3003_v58 = vunpack.i.l.bf16 %v3002_v13  ;;  %v2997_v49 = vpop.permute.xlu0 %2996  ;;  %v979_v44 = vsel %vm963_vm3, %v958_v15, %v2964_v8  ;;  %v813_v13 = vrot.slane %v4221_v22, 1 }
  0xda   : > { %v2999_v61 = vunpack.i.h.bf16 %v2997_v49  ;;  %v2998_v48 = vunpack.i.l.bf16 %v2997_v49  ;;  %v5787_v49 = vld [vmem:[#allocation11_spill] sm:$0xff] }
  0xdb   : > { %v995_v62 = vsel %vm984_vm4, %v974_v23, %v3003_v58  ;;  %v996_v39 = vsel %vm984_vm4, %v975_v29, %v3004_v54  ;;  %v2984_v54 = vunpack.i.h.bf16 %v4304_v6  ;;  %v2983_v58 = vunpack.i.l.bf16 %v4304_v6 }
  0xdc   : > { %3231 = vrot.lane.b32.xlu2 %v4019_v21, %s5767_s18  ;;  %v4352_v3 = vsel %vm1005_vm5, %v995_v62, %v3053_v59  ;;  %v4355_v4 = vsel %vm1005_vm5, %v996_v39, %v3054_v41  ;;  %v4360_v16 = vsel %vm984_vm4, %v973_v32, %v2999_v61  ;;  %v4363_v10 = vsel %vm984_vm4, %v972_v42, %v2998_v48  ;;  %v303_v48 = vld [vmem:[%s3823_s30 + $0x118] sm:$0x3] }
  0xdd   : > { %v957_v21 = vsel %vm942_vm2, %v3924_v51, %v2913_v63  ;;  %v945_v51 = vsel %vm942_vm2, %v3887_v30, %v2883_v50  ;;  %v2929_v42 = vunpack.i.h.bf16 %v4214_v46  ;;  %v2978_v59 = vunpack.i.l.bf16 %v5785_v36  ;;  %v5786_v63 = vld [vmem:[#allocation6_spill] sm:$0xff]  ;;  %v5788_v50 = vld [vmem:[#allocation7_spill] sm:$0xff] }
  0xde   : > { %3226 = vrot.lane.b32.xlu1 %v4030_v33, %s3701_s19  ;;  %v3067_v55 = vpop.permute.xlu2 %3066  ;;  %v978_v31 = vsel %vm963_vm3, %v957_v21, %v2963_v7  ;;  %v964_v46 = vsel %vm963_vm3, %v943_v1, %v2928_v11  ;;  %v2979_v23 = vunpack.i.h.bf16 %v5785_v36  ;;  %v877_v62 = vrot.slane %v5787_v49, 2  ;;  %v5790_v11 = vld [vmem:[#allocation5_spill] sm:$0xff] }
  0xdf   : > { %3221 = vrot.lane.b32.xlu0 %v4057_v5, %s3701_s19  ;;  %v3069_v9 = vunpack.i.h.bf16 %v3067_v55  ;;  %v3068_v33 = vunpack.i.l.bf16 %v3067_v55  ;;  %v966_v39 = vsel %vm963_vm3, %v945_v51, %v2933_v20  ;;  %v967_v61 = vsel %vm963_vm3, %v946_v56, %v2934_v14 }
  0xe0   : > { %v3017_v60 = vpop.permute.xlu1 %3016  ;;  %v985_v52 = vsel %vm984_vm4, %v964_v46, %v2978_v59  ;;  %v987_v19 = vsel %vm984_vm4, %v966_v39, %v2983_v58  ;;  %v988_v28 = vsel %vm984_vm4, %v967_v61, %v2984_v54  ;;  %v880_v14 = vrot.slane %v303_v48, 2 }
  0xe1   : > { %v3019_v12 = vunpack.i.h.bf16 %v3017_v60  ;;  %v3018_v38 = vunpack.i.l.bf16 %v3017_v60  ;;  %v3012_v18 = vpop.permute.xlu0 %3011 }
  0xe2   : > { %v3014_v17 = vunpack.i.h.bf16 %v3012_v18  ;;  %v3013_v32 = vunpack.i.l.bf16 %v3012_v18 }
  0xe3   : > { %v1001_v30 = vsel %vm984_vm4, %v980_v35, %v3018_v38  ;;  %v1002_v5 = vsel %vm984_vm4, %v981_v0, %v3019_v12  ;;  %v815_v38 = vrot.slane %v303_v48, 1 }
  0xe4   : > { %3246 = vrot.lane.b32.xlu2 %v4083_v37, %s3701_s19  ;;  %v4395_v41 = vsel %vm1005_vm5, %v1001_v30, %v3068_v33  ;;  %v4398_v34 = vsel %vm1005_vm5, %v1002_v5, %v3069_v9  ;;  %v4403_v2 = vsel %vm984_vm4, %v979_v44, %v3014_v17  ;;  %v4406_v27 = vsel %vm984_vm4, %v978_v31, %v3013_v32  ;;  %v5789_v9 = vld [vmem:[#allocation9_spill] sm:$0xff]  ;;  %v5791_v30 = vld [vmem:[#allocation8_spill] sm:$0xff] }
  0xe5   : > { %v878_v37 = vrot.slane %v4221_v22, 2  ;;  %v965_v22 = vsel %vm963_vm3, %v944_v47, %v2929_v42  ;;  %v812_v44 = vrot.slane %v5787_v49, 1  ;;  %v816_v46 = vsel %vm334_vm0, %v813_v13, %v815_v38 }
  0xe6   : > { %3241 = vrot.lane.b32.xlu1 %v5786_v63, %s3701_s19  ;;  %v3082_v29 = vpop.permute.xlu2 %3081  ;;  %v986_v51 = vsel %vm984_vm4, %v965_v22, %v2979_v23 }
  0xe7   : > { %3236 = vrot.lane.b32.xlu0 %v5788_v50, %s3701_s19  ;;  %v3084_v6 = vunpack.i.h.bf16 %v3082_v29  ;;  %v3083_v8 = vunpack.i.l.bf16 %v3082_v29  ;;  %v879_v35 = vsel %vm445_vm1, %v877_v62, %v878_v37  ;;  %v881_v18 = vsel %vm445_vm1, %v878_v37, %v880_v14 }
  0xe8   : > { %v3032_v7 = vpop.permute.xlu1 %3031  ;;  %v814_v59 = vsel %vm334_vm0, %v812_v44, %v813_v13  ;;  %v3270_v58 = vpack.i.bf16 %v881_v18, %v879_v35 }
  0xe9   : > { %v3034_v15 = vunpack.i.h.bf16 %v3032_v7  ;;  %v3033_v21 = vunpack.i.l.bf16 %v3032_v7  ;;  %v3027_v55 = vpop.permute.xlu0 %3026  ;;  %v3265_v49 = vpack.i.bf16 %v816_v46, %v814_v59 }
  0xea   : > { %v3029_v1 = vunpack.i.h.bf16 %v3027_v55  ;;  %v3028_v56 = vunpack.i.l.bf16 %v3027_v55 }
  0xeb   : > { %v1008_v20 = vsel %vm1005_vm5, %v987_v19, %v3033_v21  ;;  %v1009_v47 = vsel %vm1005_vm5, %v988_v28, %v3034_v15 }
  0xec   : > { %3261 = vrot.lane.b32.xlu2 %v5789_v9, %s3701_s19  ;;  %v4433_v33 = vsel %vm1026_vm6, %v1008_v20, %v3083_v8  ;;  %v4436_v60 = vsel %vm1026_vm6, %v1009_v47, %v3084_v6  ;;  %v4440_v31 = vsel %vm1005_vm5, %v985_v52, %v3028_v56  ;;  %v4443_v12 = vsel %vm1005_vm5, %v986_v51, %v3029_v1 }
  0xee   : > { %3256 = vrot.lane.b32.xlu1 %v5790_v11, %s3701_s19  ;;  %v3097_v0 = vpop.permute.xlu2 %3096 }
  0xef   : > { %3251 = vrot.lane.b32.xlu0 %v5791_v30, %s5767_s18  ;;  %v3099_v5 = vunpack.i.h.bf16 %v3097_v0  ;;  %v3098_v17 = vunpack.i.l.bf16 %v3097_v0 }
  0xf0   : > { %v3047_v32 = vpop.permute.xlu1 %3046 }
  0xf1   : > { %v3049_v42 = vunpack.i.h.bf16 %v3047_v32  ;;  %v3048_v36 = vunpack.i.l.bf16 %v3047_v32  ;;  %v3042_v54 = vpop.permute.xlu0 %3041 }
  0xf2   : > { %v3044_v29 = vunpack.i.h.bf16 %v3042_v54  ;;  %v3043_v23 = vunpack.i.l.bf16 %v3042_v54 }
  0xf3   : > { %v1014_v63 = vsel %vm1005_vm5, %v4363_v10, %v3048_v36  ;;  %v1015_v37 = vsel %vm1005_vm5, %v4360_v16, %v3049_v42  ;;  %v1124_v42 = vld [vmem:[%s5753_s1 + $0x10] sm:$0x3] }
  0xf4   : > { %v4458_v62 = vsel %vm1026_vm6, %v1014_v63, %v3098_v17  ;;  %v4461_v39 = vsel %vm1026_vm6, %v1015_v37, %v3099_v5  ;;  %v1013_v13 = vsel %vm1005_vm5, %v4242_v25, %v3044_v29  ;;  %v1012_v61 = vsel %vm1005_vm5, %v4239_v24, %v3043_v23  ;;  %v2773_v29 = vld [vmem:[%s5753_s1 + $0x8] sm:$0xff] }
  0xf5   : > { %v1134_v46 = vunpack.c.l.b16 %v1124_v42 }
  0xf6   : > { %3271 = vrot.lane.b32.xlu1 %v3270_v58, %s3701_s19  ;;  %v3112_v10 = vpop.permute.xlu2 %3111 }
  0xf7   : > { %3266 = vrot.lane.b32.xlu0 %v3265_v49, %s5767_s18  ;;  %v3114_v16 = vunpack.i.h.bf16 %v3112_v10  ;;  %v3113_v48 = vunpack.i.l.bf16 %v3112_v10  ;;  %s2714_s18 = sadd.s32 4294967295, %s2694_s16  ;;  %s3705_s16 = smov 40  }
  0xf8   : > { %v3062_v22 = vpop.permute.xlu1 %3061 }
  0xf9   : > { %v3064_v50 = vunpack.i.h.bf16 %v3062_v22  ;;  %v3063_v6 = vunpack.i.l.bf16 %v3062_v22  ;;  %v3057_v8 = vpop.permute.xlu0 %3056 }
  0xfa   : > { %v3059_v15 = vunpack.i.h.bf16 %v3057_v8  ;;  %v3058_v21 = vunpack.i.l.bf16 %v3057_v8  ;;  %v2772_v8 = vld [vmem:[%s5753_s1] sm:$0xff] }
  0xfb   : > { %v1020_v7 = vsel %vm1005_vm5, %v4406_v27, %v3063_v6  ;;  %v1021_v25 = vsel %vm1005_vm5, %v4403_v2, %v3064_v50 }
  0xfc   : > { %v4474_v24 = vsel %vm1026_vm6, %v1020_v7, %v3113_v48  ;;  %v4477_v52 = vsel %vm1026_vm6, %v1021_v25, %v3114_v16  ;;  %v1018_v19 = vsel %vm1005_vm5, %v4259_v57, %v3058_v21  ;;  %v1019_v28 = vsel %vm1005_vm5, %v4262_v45, %v3059_v15 }
  0xfe   : > { %v4483_v55 = vpop.permute.xlu2 %3126 }
 0x100   : > { %v4485_v27 = vpop.permute.xlu1 %3076 }
 0x101   : > { %v3072_v14 = vpop.permute.xlu0 %3071 }
 0x102   : > { %v3074_v2 = vunpack.i.h.bf16 %v3072_v14  ;;  %v3073_v20 = vunpack.i.l.bf16 %v3072_v14 }
 0x104   : > { %v1024_v47 = vsel %vm1005_vm5, %v4281_v53, %v3073_v20  ;;  %v1025_v1 = vsel %vm1005_vm5, %v4284_v40, %v3074_v2 }
 0x106   : > { %v3142_v56 = vpop.permute.xlu2 %3141 }
 0x107   : > { %v3144_v51 = vunpack.i.h.bf16 %v3142_v56  ;;  %v3143_v9 = vunpack.i.l.bf16 %v3142_v56 }
 0x108   : > { %v3092_v57 = vpop.permute.xlu1 %3091 }
 0x109   : > { %v3094_v44 = vunpack.i.h.bf16 %v3092_v57  ;;  %v3093_v38 = vunpack.i.l.bf16 %v3092_v57  ;;  %v3087_v45 = vpop.permute.xlu0 %3086  ;;  %v3078_v57 = vunpack.i.l.bf16 %v4485_v27 }
 0x10a   : > { %v3089_v35 = vunpack.i.h.bf16 %v3087_v45  ;;  %v3088_v18 = vunpack.i.l.bf16 %v3087_v45 }
 0x10b   : > { %v1033_v11 = vsel %vm1026_vm6, %v1012_v61, %v3093_v38  ;;  %v1034_v0 = vsel %vm1026_vm6, %v1013_v13, %v3094_v44 }
 0x10c   : > { %v4494_v30 = vsel %vm1047_vm7, %v1033_v11, %v3143_v9  ;;  %v4497_v53 = vsel %vm1047_vm7, %v1034_v0, %v3144_v51  ;;  %v4501_v40 = vsel %vm1026_vm6, %v4315_v26, %v3088_v18  ;;  %v4505_v5 = vsel %vm1026_vm6, %v4318_v43, %v3089_v35 }
 0x10d   : > { %v1137_v43 = vpack.c.b16 %v1134_v46, %v1134_v46  ;;  %v3079_v9 = vunpack.i.h.bf16 %v4485_v27  ;;  %v3129_v0 = vunpack.i.h.bf16 %v4483_v55  ;;  %v3128_v35 = vunpack.i.l.bf16 %v4483_v55 }
 0x10e   : > { %v4507_v17 = vpop.permute.xlu2 %3156 }
 0x10f   : > { %v1173_v37 = vsel %vm1171_vm8, %v1137_v43, 0  ;;  %v1028_v27 = vsel %vm1026_vm6, %v4443_v12, %v3079_v9 }
 0x110   : > { %v3107_v32 = vpop.permute.xlu1 %3106  ;;  %1180 = vmatpush.bf16.msra.mxu0 %v1173_v37  ;;  %2778 = vmatpush.bf16.msra.mxu2 %v1173_v37  ;;  %v1049_v46 = vsel %vm1047_vm7, %v1028_v27, %v3129_v0 }
 0x111   : > { %v3109_v36 = vunpack.i.h.bf16 %v3107_v32  ;;  %v3108_v59 = vunpack.i.l.bf16 %v3107_v32  ;;  %v4512_v54 = vpop.permute.xlu0 %3101 }
 0x113   : > { %v4515_v58 = vsel %vm1026_vm6, %v1018_v19, %v3108_v59  ;;  %v4518_v26 = vsel %vm1026_vm6, %v1019_v28, %v3109_v36 }
 0x114   : > { %1181 = vmatpush.bf16.msra.mxu0 %v2773_v29  ;;  %2779 = vmatpush.bf16.msra.mxu2 %v2773_v29 }
 0x116   : > { %v3172_v63 = vpop.permute.xlu2 %3171 }
 0x117   : > { %v3174_v23 = vunpack.i.h.bf16 %v3172_v63  ;;  %v3173_v49 = vunpack.i.l.bf16 %v3172_v63 }
 0x118   : > { %v3122_v13 = vpop.permute.xlu1 %3121  ;;  %1182 = vmatpush.bf16.msra.mxu0 %v2772_v8  ;;  %2780 = vmatpush.bf16.msra.mxu2 %v2772_v8 }
 0x119   : > { %v3124_v61 = vunpack.i.h.bf16 %v3122_v13  ;;  %v3123_v10 = vunpack.i.l.bf16 %v3122_v13  ;;  %v3117_v16 = vpop.permute.xlu0 %3116 }
 0x11a   : > { %v3119_v50 = vunpack.i.h.bf16 %v3117_v16  ;;  %v3118_v6 = vunpack.i.l.bf16 %v3117_v16 }
 0x11b   : > { %v1045_v48 = vsel %vm1026_vm6, %v1024_v47, %v3123_v10  ;;  %v1046_v22 = vsel %vm1026_vm6, %v1025_v1, %v3124_v61 }
 0x11c   : > { %v4529_v7 = vsel %vm1047_vm7, %v1045_v48, %v3173_v49  ;;  %v4532_v25 = vsel %vm1047_vm7, %v1046_v22, %v3174_v23  ;;  %v1043_v15 = vsel %vm1026_vm6, %v4395_v41, %v3118_v6  ;;  %v1044_v21 = vsel %vm1026_vm6, %v4398_v34, %v3119_v50 }
 0x11e   : > { %v4538_v19 = vpop.permute.xlu2 %3186 }
 0x120   : > { %v4540_v28 = vpop.permute.xlu1 %3136 }
 0x121   : > { %v3132_v14 = vpop.permute.xlu0 %3131 }
 0x122   : > { %v3134_v32 = vunpack.i.h.bf16 %v3132_v14  ;;  %v3133_v42 = vunpack.i.l.bf16 %v3132_v14 }
 0x124   : > { %v1050_v37 = vsel %vm1047_vm7, %v4433_v33, %v3133_v42  ;;  %v3138_v42 = vunpack.i.l.bf16 %v4540_v28 }
 0x126   : > { %v3202_v2 = vpop.permute.xlu2 %3201 }
 0x127   : > { %v3204_v23 = vunpack.i.h.bf16 %v3202_v2  ;;  %v3203_v49 = vunpack.i.l.bf16 %v3202_v2 }
 0x128   : > { %v4542_v20 = vpop.permute.xlu1 %3151 }
 0x129   : > { %v3147_v47 = vpop.permute.xlu0 %3146 }
 0x12a   : > { %v3149_v1 = vunpack.i.h.bf16 %v3147_v47  ;;  %v3148_v56 = vunpack.i.l.bf16 %v3147_v47 }
 0x12c   : > { %v4546_v51 = vsel %vm1047_vm7, %v4458_v62, %v3148_v56  ;;  %v4550_v41 = vsel %vm1047_vm7, %v4461_v39, %v3149_v1  ;;  %v1027_v39 = vsel %vm1026_vm6, %v4440_v31, %v3078_v57  ;;  %v1051_v31 = vsel %vm1047_vm7, %v4436_v60, %v3134_v32 }
 0x12d   : > { %v1048_v59 = vsel %vm1047_vm7, %v1027_v39, %v3128_v35  ;;  %v3139_v32 = vunpack.i.h.bf16 %v4540_v28 }
 0x12e   : > { %v3217_v34 = vpop.permute.xlu2 %3216 }
 0x12f   : > { %v3219_v55 = vunpack.i.h.bf16 %v3217_v34  ;;  %v3218_v43 = vunpack.i.l.bf16 %v3217_v34 }
 0x130   : > { %v3167_v44 = vpop.permute.xlu1 %3166 }
 0x131   : > { %v3169_v38 = vunpack.i.h.bf16 %v3167_v44  ;;  %v3168_v45 = vunpack.i.l.bf16 %v3167_v44  ;;  %v3162_v11 = vpop.permute.xlu0 %3161 }
 0x132   : > { %v3164_v13 = vunpack.i.h.bf16 %v3162_v11  ;;  %v3163_v61 = vunpack.i.l.bf16 %v3162_v11 }
 0x133   : > { %v4557_v62 = vsel %vm1047_vm7, %v1043_v15, %v3168_v45  ;;  %v4560_v18 = vsel %vm1047_vm7, %v1044_v21, %v3169_v38 }
 0x134   : > { %v1062_v2 = vsel %vm1047_vm7, %v4474_v24, %v3163_v61  ;;  %v1063_v34 = vsel %vm1047_vm7, %v4477_v52, %v3164_v13 }
 0x136   : > { %v3232_v36 = vpop.permute.xlu2 %3231 }
 0x137   : > { %v3234_v6 = vunpack.i.h.bf16 %v3232_v36  ;;  %v3233_v8 = vunpack.i.l.bf16 %v3232_v36  ;;  %v3104_v36 = vunpack.i.h.bf16 %v4512_v54 }
 0x138   : > { %v3182_v63 = vpop.permute.xlu1 %3181 }
 0x139   : > { %v3184_v29 = vunpack.i.h.bf16 %v3182_v63  ;;  %v3183_v12 = vunpack.i.l.bf16 %v3182_v63  ;;  %v3177_v10 = vpop.permute.xlu0 %3176  ;;  %v1083_v38 = vsel %vm5772_vm9, %v1062_v2, %v3233_v8  ;;  %v1084_v45 = vsel %vm5772_vm9, %v1063_v34, %v3234_v6 }
 0x13a   : > { %v3179_v22 = vunpack.i.h.bf16 %v3177_v10  ;;  %v3178_v50 = vunpack.i.l.bf16 %v3177_v10  ;;  %v3153_v63 = vunpack.i.l.bf16 %v4542_v20  ;;  %v3159_v6 = vunpack.i.h.bf16 %v4507_v17 }
 0x13b   : > { %v1071_v16 = vsel %vm5772_vm9, %v1050_v37, %v3183_v12  ;;  %v1072_v48 = vsel %vm5772_vm9, %v1051_v31, %v3184_v29  ;;  %v1052_v37 = vsel %vm1047_vm7, %v4501_v40, %v3138_v42  ;;  %v1053_v31 = vsel %vm1047_vm7, %v4505_v5, %v3139_v32 }
 0x13c   : > { %v1092_v33 = vsel %vm1089_vm10, %v1071_v16, %v3218_v43  ;;  %v1093_v15 = vsel %vm1089_vm10, %v1072_v48, %v3219_v55  ;;  %v1069_v60 = vsel %vm5772_vm9, %v1048_v59, %v3178_v50  ;;  %v1070_v21 = vsel %vm5772_vm9, %v1049_v46, %v3179_v22 }
 0x13d   : > { %v1111_v14 = vpack.c.bf16 %v1093_v15, %v1092_v33  ;;  %v1090_v47 = vsel %vm1089_vm10, %v1069_v60, %v3203_v49  ;;  %v1091_v1 = vsel %vm1089_vm10, %v1070_v21, %v3204_v23  ;;  %v3103_v59 = vunpack.i.l.bf16 %v4512_v54 }
 0x13e   : > { %v3247_v56 = vpop.permute.xlu2 %3246  ;;  %v1110_v9 = vpack.c.bf16 %v1091_v1, %v1090_v47  ;;  %v3189_v46 = vunpack.i.h.bf16 %v4538_v19  ;;  %v3188_v55 = vunpack.i.l.bf16 %v4538_v19  ;;  %v3154_v43 = vunpack.i.h.bf16 %v4542_v20 }
 0x13f   : > { %v3249_v57 = vunpack.i.h.bf16 %v3247_v56  ;;  %v3248_v44 = vunpack.i.l.bf16 %v3247_v56  ;;  %v1037_v54 = vsel %vm1026_vm6, %v4352_v3, %v3103_v59  ;;  %v1038_v23 = vsel %vm1026_vm6, %v4355_v4, %v3104_v36 }
 0x140   : > { %v4586_v11 = vpop.permute.xlu1 %3196  ;;  %2704 = vmatmul.msk.bf16.vlgmr.msra.gmra.mxu0 %vm5771_vm11, %v1110_v9  ;;  %v1058_v20 = vsel %vm1047_vm7, %v1037_v54, %v3153_v63  ;;  %v1059_v40 = vsel %vm1047_vm7, %v1038_v23, %v3154_v43  ;;  %v1073_v5 = vsel %vm5772_vm9, %v1052_v37, %v3188_v55  ;;  %v1074_v61 = vsel %vm5772_vm9, %v1053_v31, %v3189_v46 }
 0x141   : > { %v4590_v24 = vsel %vm1089_vm10, %v1083_v38, %v3248_v44  ;;  %v4593_v0 = vsel %vm1089_vm10, %v1084_v45, %v3249_v57  ;;  %v3192_v35 = vpop.permute.xlu0 %3191  ;;  %v3158_v15 = vunpack.i.l.bf16 %v4507_v17  ;;  %v1061_v17 = vsel %vm1047_vm7, %v4518_v26, %v3159_v6 }
 0x142   : > { %v1117_v52 = vpack.c.bf16 %v4593_v0, %v4590_v24  ;;  %v3194_v60 = vunpack.i.h.bf16 %v3192_v35  ;;  %v3193_v21 = vunpack.i.l.bf16 %v3192_v35  ;;  %v3198_v26 = vunpack.i.l.bf16 %v4586_v11  ;;  %v4682_v24 = vld [vmem:[%s5755_s3] ss:$0 sm:$0xff] }
 0x143   : > { %v1060_v44 = vsel %vm1047_vm7, %v4515_v58, %v3158_v15  ;;  %v3199_v58 = vunpack.i.h.bf16 %v4586_v11 }
 0x144   : > { %v1075_v9 = vsel %vm5772_vm9, %v4494_v30, %v3193_v21  ;;  %v1076_v57 = vsel %vm5772_vm9, %v4497_v53, %v3194_v60  ;;  %v1077_v37 = vsel %vm5772_vm9, %v4546_v51, %v3198_v26 }
 0x145   : > { %v1078_v31 = vsel %vm5772_vm9, %v4550_v41, %v3199_v58 }
 0x146   : > { %v3262_v46 = vpop.permute.xlu2 %3261 }
 0x148   : > { %v3212_v39 = vpop.permute.xlu1 %3211 }
 0x149   : > { %v3207_v27 = vpop.permute.xlu0 %3206  ;;  %v3214_v2 = vunpack.i.h.bf16 %v3212_v39  ;;  %v3213_v47 = vunpack.i.l.bf16 %v3212_v39 }
 0x14a   : > { %v3209_v29 = vunpack.i.h.bf16 %v3207_v27  ;;  %v3208_v28 = vunpack.i.l.bf16 %v3207_v27 }
 0x14b   : > { %v1081_v32 = vsel %vm5772_vm9, %v1060_v44, %v3213_v47  ;;  %v1082_v30 = vsel %vm5772_vm9, %v1061_v17, %v3214_v2 }
 0x14c   : > { %v1079_v4 = vsel %vm5772_vm9, %v1058_v20, %v3208_v28  ;;  %v1080_v22 = vsel %vm5772_vm9, %v1059_v40, %v3209_v29  ;;  %v3264_v28 = vunpack.i.h.bf16 %v3262_v46 }
 0x150   : > { %v3227_v12 = vpop.permute.xlu1 %3226  ;;  %2705 = vmatmul.msk.bf16.gmra.mxu0 %vm5771_vm11, %v1111_v14 }
 0x151   : > { %v3229_v19 = vunpack.i.h.bf16 %v3227_v12  ;;  %v3228_v49 = vunpack.i.l.bf16 %v3227_v12  ;;  %v3222_v13 = vpop.permute.xlu0 %3221  ;;  %v3263_v12 = vunpack.i.l.bf16 %v3262_v46 }
 0x152   : > { %v3224_v10 = vunpack.i.h.bf16 %v3222_v13  ;;  %v3223_v16 = vunpack.i.l.bf16 %v3222_v13 }
 0x153   : > { %v1094_v3 = vsel %vm1089_vm10, %v1073_v5, %v3228_v49  ;;  %v1095_v48 = vsel %vm1089_vm10, %v1074_v61, %v3229_v19 }
 0x154   : > { %v1112_v50 = vpack.c.bf16 %v1095_v48, %v1094_v3  ;;  %v1100_v8 = vsel %vm1089_vm10, %v1079_v4, %v3223_v16  ;;  %v1101_v33 = vsel %vm1089_vm10, %v1080_v22, %v3224_v10 }
 0x155   : > { %v1115_v14 = vpack.c.bf16 %v1101_v33, %v1100_v8  ;;  %v3702_v33 = vmov 0.0  }
 0x157   : > { %2709 = vmatmul.msk.bf16.vlgmr.msra.gmra.mxu2 %vm5771_vm11, %v1115_v14 }
 0x158   : > { %v3242_v1 = vpop.permute.xlu1 %3241 }
 0x159   : > { %v3244_v56 = vunpack.i.h.bf16 %v3242_v1  ;;  %v3243_v34 = vunpack.i.l.bf16 %v3242_v1  ;;  %v3237_v38 = vpop.permute.xlu0 %3236 }
 0x15a   : > { %v3239_v45 = vunpack.i.h.bf16 %v3237_v38  ;;  %v3238_v35 = vunpack.i.l.bf16 %v3237_v38 }
 0x15b   : > { %v1096_v39 = vsel %vm1089_vm10, %v1075_v9, %v3243_v34  ;;  %v1097_v27 = vsel %vm1089_vm10, %v1076_v57, %v3244_v56 }
 0x15c   : > { %v1113_v42 = vpack.c.bf16 %v1097_v27, %v1096_v39  ;;  %v1102_v53 = vsel %vm1089_vm10, %v1081_v32, %v3238_v35  ;;  %v1103_v36 = vsel %vm1089_vm10, %v1082_v30, %v3239_v45 }
 0x15d   : > { %v1116_v59 = vpack.c.bf16 %v1103_v36, %v1102_v53 }
 0x160   : > { %v3257_v55 = vpop.permute.xlu1 %3256  ;;  %2706 = vmatmul.msk.bf16.gmra.mxu0 %vm5771_vm11, %v1112_v50 }
 0x161   : > { %v3259_v43 = vunpack.i.h.bf16 %v3257_v55  ;;  %v3258_v63 = vunpack.i.l.bf16 %v3257_v55  ;;  %v3252_v29 = vpop.permute.xlu0 %3251 }
 0x162   : > { %v3254_v54 = vunpack.i.h.bf16 %v3252_v29  ;;  %v3253_v23 = vunpack.i.l.bf16 %v3252_v29 }
 0x163   : > { %v1098_v11 = vsel %vm1089_vm10, %v1077_v37, %v3258_v63  ;;  %v1099_v19 = vsel %vm1089_vm10, %v1078_v31, %v3259_v43 }
 0x164   : > { %v1114_v49 = vpack.c.bf16 %v1099_v19, %v1098_v11  ;;  %v1085_v20 = vsel %vm5772_vm9, %v4557_v62, %v3253_v23  ;;  %v1086_v40 = vsel %vm5772_vm9, %v4560_v18, %v3254_v54 }
 0x165   : > { %v1106_v51 = vsel %vm1089_vm10, %v1085_v20, %v3263_v12  ;;  %v1107_v41 = vsel %vm1089_vm10, %v1086_v40, %v3264_v28 }
 0x166   : > { %v1118_v13 = vpack.c.bf16 %v1107_v41, %v1106_v51 }
 0x167   : > { %2710 = vmatmul.msk.bf16.gmra.mxu2 %vm5771_vm11, %v1116_v59 }
 0x168   : > { %v3272_v5 = vpop.permute.xlu1 %3271 }
 0x169   : > { %v3267_v61 = vpop.permute.xlu0 %3266  ;;  %v3274_v10 = vunpack.i.h.bf16 %v3272_v5  ;;  %v3273_v16 = vunpack.i.l.bf16 %v3272_v5 }
 0x16a   : > { %v3269_v3 = vunpack.i.h.bf16 %v3267_v61  ;;  %v3268_v48 = vunpack.i.l.bf16 %v3267_v61 }
 0x16c   : > { %v1087_v62 = vsel %vm5772_vm9, %v4529_v7, %v3268_v48  ;;  %v1088_v18 = vsel %vm5772_vm9, %v4532_v25, %v3269_v3  ;;  %v4672_v7 = vstv %s2714_s18  ;;  %v4677_v25 = vld [vmem:[%s5754_s2] ss:$0 sm:$0xff]  ;;  %s3706_s18 = smov 64  }
 0x16d   : > { %v1108_v4 = vsel %vm1089_vm10, %v1087_v62, %v3273_v16  ;;  %v1109_v22 = vsel %vm1089_vm10, %v1088_v18, %v3274_v10  ;;  %vm1313_vm12 = vcmp.ge.s32.totalorder %v4672_v7, 0  ;;  %vm1323_vm13 = vcmp.lt.s32.totalorder %v4672_v7, 16 }
 0x16e   : > { %v1119_v50 = vpack.c.bf16 %v1109_v22, %v1108_v4  ;;  %vm1333_vm14 = vmand %vm1313_vm12, %vm1323_vm13  ;;  %v1308_v59 = vadd.s32 5, %v4672_v7  ;;  %v1304_v63 = vadd.s32 1, %v4672_v7  ;;  %v1309_v4 = vadd.s32 6, %v4672_v7 }
 0x16f   : > { %v2715_v15 = vsel %vm1333_vm14, 1.0, %v3702_v33 }
 0x170   : > { %2707 = vmatmul.msk.bf16.gmra.mxu0 %vm5771_vm11, %v1113_v42  ;;  %vm1318_vm8 = vcmp.ge.s32.totalorder %v1308_v59, 0  ;;  %vm1328_vm12 = vcmp.lt.s32.totalorder %v1308_v59, 16  ;;  %vm1314_vm14 = vcmp.ge.s32.totalorder %v1304_v63, 0  ;;  %v1305_v59 = vadd.s32 2, %v4672_v7 }
 0x171   : > { %vm1338_vm13 = vmand %vm1318_vm8, %vm1328_vm12 }
 0x172   : > { %v2720_v54 = vsel %vm1338_vm13, 1.0, %v3702_v33  ;;  %vm1315_vm12 = vcmp.ge.s32.totalorder %v1305_v59, 0  ;;  %vm1325_vm13 = vcmp.lt.s32.totalorder %v1305_v59, 16 }
 0x177   : > { %2711 = vmatmul.msk.bf16.gmra.mxu2 %vm5771_vm11, %v1117_v52 }
 0x180   : > { %2708 = vmatmul.msk.bf16.gmra.mxu0 %vm5771_vm11, %v1114_v49 }
 0x187   : > { %2712 = vmatmul.msk.bf16.gmra.mxu2 %vm5771_vm11, %v1118_v13 }
 0x197   : > { %2713 = vmatmul.msk.bf16.gmra.mxu2 %vm5771_vm11, %v1119_v50  ;;  %vm1324_vm11 = vcmp.lt.s32.totalorder %v1304_v63, 16 }
 0x198   : > { %vm1334_vm9 = vmand %vm1314_vm14, %vm1324_vm11  ;;  %vm1329_vm11 = vcmp.lt.s32.totalorder %v1309_v4, 16 }
 0x199   : > { %v2716_v41 = vsel %vm1334_vm9, 1.0, %v3702_v33  ;;  %vm1319_vm9 = vcmp.ge.s32.totalorder %v1309_v4, 0  ;;  %vm1335_vm14 = vmand %vm1315_vm12, %vm1325_vm13 }
 0x19a   : > { %vm1339_vm8 = vmand %vm1319_vm9, %vm1329_vm11 }
 0x19b   : > { %v2721_v63 = vsel %vm1339_vm8, 1.0, %v3702_v33 }
 0x1bd   : > { %v1184_v0 = vpop.f32.mrf.mxu0 }
 0x1be   : > { %v1238_v52 = vmul.f32 %v4677_v25, %v1184_v0 }
 0x1c0   : > { %v1262_v6 = vadd.f32 %v4682_v24, %v1238_v52 }
 0x1c2   : > { %v1282_v8 = vmax.f32 %v1262_v6, 0.0 }
 0x1c4   : > { %v1363_v60 = vmul.f32 %v2715_v15, %v1282_v8 }
 0x1c5   : > { %v1186_v21 = vpop.f32.mrf.mxu0 }
 0x1c6   : > { %v1239_v14 = vmul.f32 %v4677_v25, %v1186_v21  ;;  %v1404_v47 = vrot.slane %v1363_v60, 7 }
 0x1c8   : > { %v1263_v2 = vadd.f32 %v4682_v24, %v1239_v14  ;;  %v4692_v34 = vsel %vm1403_vm15, 0.0, %v1404_v47 }
 0x1c9   : > { %v1586_v38 = vrot.slane %v4692_v34, 2  ;;  %v1498_v45 = vrot.slane %v4692_v34, 1 }
 0x1ca   : > { %v1283_v1 = vmax.f32 %v1263_v2, 0.0 }
 0x1cc   : > { %v1364_v56 = vmul.f32 %v2715_v15, %v1283_v1 }
 0x1cd   : > { %v1189_v17 = vpop.f32.mrf.mxu0 }
 0x1ce   : > { %v1405_v9 = vrot.slane %v1364_v56, 7  ;;  %v1240_v29 = vmul.f32 %v4677_v25, %v1189_v17 }
 0x1d0   : > { %v4695_v57 = vsel %vm1403_vm15, %v1404_v47, %v1405_v9  ;;  %v1472_v44 = vsel %vm1403_vm15, %v1405_v9, 0.0  ;;  %v1264_v23 = vadd.f32 %v4682_v24, %v1240_v29 }
 0x1d1   : > { %v1501_v35 = vrot.slane %v1472_v44, 1  ;;  %v1589_v39 = vrot.slane %v1472_v44, 2  ;;  %v1587_v27 = vrot.slane %v4695_v57, 2  ;;  %v1499_v32 = vrot.slane %v4695_v57, 1 }
 0x1d2   : > { %v1284_v51 = vmax.f32 %v1264_v23, 0.0 }
 0x1d3   : > { %v1588_v30 = vsel %vm445_vm1, %v1586_v38, %v1587_v27  ;;  %v1590_v42 = vsel %vm445_vm1, %v1587_v27, %v1589_v39  ;;  %v1500_v53 = vsel %vm334_vm0, %v1498_v45, %v1499_v32  ;;  %v1502_v36 = vsel %vm334_vm0, %v1499_v32, %v1501_v35 }
 0x1d4   : > { %v3280_v58 = vpack.i.bf16 %v1590_v42, %v1588_v30  ;;  %v3275_v26 = vpack.i.bf16 %v1502_v36, %v1500_v53  ;;  %v1365_v3 = vmul.f32 %v2716_v41, %v1284_v51 }
 0x1d5   : > { %v1191_v46 = vpop.f32.mrf.mxu0 }
 0x1d6   : > { %3281 = vrot.lane.b32.xlu1 %v3280_v58, %s3697_s14  ;;  %3276 = vrot.lane.b32.xlu2 %v3275_v26, %s5774_s12  ;;  %v1241_v37 = vmul.f32 %v4677_v25, %v1191_v46  ;;  %v1407_v52 = vrot.slane %v1365_v3, 7 }
 0x1d8   : > { %v1265_v12 = vadd.f32 %v4682_v24, %v1241_v37  ;;  %v4746_v27 = vsel %vm1403_vm15, 0.0, %v1407_v52 }
 0x1da   : > { %v1209_v55 = vpop.f32.mrf.mxu2  ;;  %v1285_v20 = vmax.f32 %v1265_v12, 0.0 }
 0x1db   : > { %v1248_v43 = vmul.f32 %v4677_v25, %v1209_v55  ;;  %v1591_v55 = vrot.slane %v4746_v27, 2 }
 0x1dc   : > { %v1366_v10 = vmul.f32 %v2716_v41, %v1285_v20 }
 0x1dd   : > { %v1272_v31 = vadd.f32 %v4682_v24, %v1248_v43  ;;  %v1194_v61 = vpop.f32.mrf.mxu0 }
 0x1de   : > { %v1408_v22 = vrot.slane %v1366_v10, 7  ;;  %v1242_v43 = vmul.f32 %v4677_v25, %v1194_v61  ;;  %v2717_v61 = vsel %vm1335_vm14, 1.0, %v3702_v33 }
 0x1df   : > { %v1292_v28 = vmax.f32 %v1272_v31, 0.0 }
 0x1e0   : > { %v1473_v1 = vsel %vm1403_vm15, %v1408_v22, 0.0  ;;  %v4739_v9 = vsel %vm1403_vm15, %v1407_v52, %v1408_v22  ;;  %v1266_v23 = vadd.f32 %v4682_v24, %v1242_v43 }
 0x1e1   : > { %v1373_v49 = vmul.f32 %v2720_v54, %v1292_v28  ;;  %v1594_v53 = vrot.slane %v1473_v1, 2  ;;  %v1592_v36 = vrot.slane %v4739_v9, 2 }
 0x1e2   : > { %v1211_v11 = vpop.f32.mrf.mxu2 }
 0x1e3   : > { %v1249_v19 = vmul.f32 %v4677_v25, %v1211_v11  ;;  %v1419_v5 = vrot.slane %v1373_v49, 7  ;;  %v1593_v31 = vsel %vm445_vm1, %v1591_v55, %v1592_v36  ;;  %v1595_v29 = vsel %vm445_vm1, %v1592_v36, %v1594_v53 }
 0x1e4   : > { %v3310_v11 = vpack.i.bf16 %v4739_v9, %v4746_v27  ;;  %v1506_v49 = vrot.slane %v1473_v1, 1 }
 0x1e5   : > { %v1273_v40 = vadd.f32 %v4682_v24, %v1249_v19  ;;  %v4721_v18 = vsel %vm1403_vm15, 0.0, %v1419_v5  ;;  %v1196_v44 = vpop.f32.mrf.mxu0  ;;  %v3320_v19 = vpack.i.bf16 %v1595_v29, %v1593_v31  ;;  %v1310_v29 = vadd.s32 7, %v4672_v7 }
 0x1e6   : > { %v1611_v21 = vrot.slane %v4721_v18, 2  ;;  %v1523_v47 = vrot.slane %v4721_v18, 1  ;;  %v1243_v58 = vmul.f32 %v4677_v25, %v1196_v44 }
 0x1e7   : > { %v1293_v13 = vmax.f32 %v1273_v40, 0.0  ;;  %v1504_v40 = vrot.slane %v4739_v9, 1  ;;  %vm1320_vm9 = vcmp.ge.s32.totalorder %v1310_v29, 0  ;;  %vm1330_vm11 = vcmp.lt.s32.totalorder %v1310_v29, 16 }
 0x1e8   : > { %v1267_v28 = vadd.f32 %v4682_v24, %v1243_v58  ;;  %vm1340_vm8 = vmand %vm1320_vm9, %vm1330_vm11 }
 0x1e9   : > { %v1374_v16 = vmul.f32 %v2720_v54, %v1293_v13  ;;  %v1503_v13 = vrot.slane %v4746_v27, 1  ;;  %v1507_v3 = vsel %vm334_vm0, %v1504_v40, %v1506_v49 }
 0x1ea   : > { %v1214_v48 = vpop.f32.mrf.mxu2  ;;  %v1287_v51 = vmax.f32 %v1267_v28, 0.0 }
 0x1eb   : > { %v1420_v62 = vrot.slane %v1374_v16, 7  ;;  %v1250_v15 = vmul.f32 %v4677_v25, %v1214_v48  ;;  %v1505_v16 = vsel %vm334_vm0, %v1503_v13, %v1504_v40  ;;  %v2722_v13 = vsel %vm1340_vm8, 1.0, %v3702_v33 }
 0x1ec   : > { %v1368_v48 = vmul.f32 %v2717_v61, %v1287_v51  ;;  %v3315_v52 = vpack.i.bf16 %v1507_v3, %v1505_v16 }
 0x1ed   : > { %v4725_v50 = vsel %vm1403_vm15, %v1419_v5, %v1420_v62  ;;  %v1477_v0 = vsel %vm1403_vm15, %v1420_v62, 0.0  ;;  %v1274_v17 = vadd.f32 %v4682_v24, %v1250_v15  ;;  %v1286_v5 = vmax.f32 %v1266_v23, 0.0 }
 0x1ee   : > { %v1526_v6 = vrot.slane %v1477_v0, 1  ;;  %v1614_v8 = vrot.slane %v1477_v0, 2  ;;  %v3285_v60 = vpack.i.bf16 %v4725_v50, %v4721_v18  ;;  %v1612_v14 = vrot.slane %v4725_v50, 2 }
 0x1ef   : > { %v1524_v2 = vrot.slane %v4725_v50, 1  ;;  %v1294_v46 = vmax.f32 %v1274_v17, 0.0  ;;  %v1367_v22 = vmul.f32 %v2717_v61, %v1286_v5  ;;  %v1411_v15 = vrot.slane %v1368_v48, 7 }
 0x1f0   : > { %3286 = vrot.lane.b32.xlu1 %v3285_v60, %s5773_s17  ;;  %v1613_v56 = vsel %vm445_vm1, %v1611_v21, %v1612_v14  ;;  %v1615_v45 = vsel %vm445_vm1, %v1612_v14, %v1614_v8  ;;  %v1306_v48 = vadd.s32 3, %v4672_v7 }
 0x1f1   : > { %v1525_v35 = vsel %vm334_vm0, %v1523_v47, %v1524_v2  ;;  %v1527_v39 = vsel %vm334_vm0, %v1524_v2, %v1526_v6  ;;  %v4749_v30 = vpack.i.bf16 %v1615_v45, %v1613_v56  ;;  %v1375_v54 = vmul.f32 %v2721_v63, %v1294_v46 }
 0x1f2   : > { %v1216_v38 = vpop.f32.mrf.mxu2  ;;  %v4751_v42 = vpack.i.bf16 %v1527_v39, %v1525_v35  ;;  %v1410_v21 = vrot.slane %v1367_v22, 7  ;;  %v1474_v17 = vsel %vm1403_vm15, %v1411_v15, 0.0  ;;  %vm1316_vm12 = vcmp.ge.s32.totalorder %v1306_v48, 0 }
 0x1f3   : > { %v1251_v32 = vmul.f32 %v4677_v25, %v1216_v38  ;;  %3301 = vrot.lane.b32.xlu0 %v4749_v30, %s3697_s14  ;;  %v1422_v41 = vrot.slane %v1375_v54, 7  ;;  %v1599_v39 = vrot.slane %v1474_v17, 2  ;;  %v1199_v54 = vpop.f32.mrf.mxu0  ;;  %vm1326_vm13 = vcmp.lt.s32.totalorder %v1306_v48, 16 }
 0x1f4   : > { %3306 = vrot.lane.b32.xlu2 %v4751_v42, %s3703_s9  ;;  %v4802_v44 = vsel %vm1403_vm15, %v1410_v21, %v1411_v15  ;;  %v4808_v45 = vsel %vm1403_vm15, 0.0, %v1410_v21  ;;  %vm1336_vm14 = vmand %vm1316_vm12, %vm1326_vm13 }
 0x1f5   : > { %v1275_v26 = vadd.f32 %v4682_v24, %v1251_v32  ;;  %v4787_v4 = vsel %vm1403_vm15, 0.0, %v1422_v41  ;;  %v1597_v36 = vrot.slane %v4802_v44, 2  ;;  %v1596_v58 = vrot.slane %v4808_v45, 2 }
 0x1f6   : > { %v1616_v38 = vrot.slane %v4787_v4, 2  ;;  %v1509_v31 = vrot.slane %v4802_v44, 1 }
 0x1f7   : > { %v1295_v37 = vmax.f32 %v1275_v26, 0.0  ;;  %v1598_v59 = vsel %vm445_vm1, %v1596_v58, %v1597_v36  ;;  %v1600_v46 = vsel %vm445_vm1, %v1597_v36, %v1599_v39  ;;  %v2718_v36 = vsel %vm1336_vm14, 1.0, %v3702_v33 }
 0x1f8   : > { %3291 = vrot.lane.b32.xlu1 %v3285_v60, %s3704_s13  ;;  %v1528_v60 = vrot.slane %v4787_v4, 1  ;;  %v4825_v43 = vpack.i.bf16 %v1600_v46, %v1598_v59 }
 0x1f9   : > { %v1376_v12 = vmul.f32 %v2721_v63, %v1295_v37  ;;  %v1511_v63 = vrot.slane %v1474_v17, 1 }
 0x1fa   : > { %v1219_v2 = vpop.f32.mrf.mxu2 }
 0x1fb   : > { %v1423_v20 = vrot.slane %v1376_v12, 7  ;;  %3311 = vrot.lane.b32.xlu0 %v3310_v11, %s5773_s17  ;;  %v1252_v28 = vmul.f32 %v4677_v25, %v1219_v2  ;;  %v1508_v12 = vrot.slane %v4808_v45, 1  ;;  %v1201_v61 = vpop.f32.mrf.mxu0 }
 0x1fc   : > { %3321 = vrot.lane.b32.xlu2 %v3320_v19, %s3697_s14 }
 0x1fd   : > { %v4779_v10 = vsel %vm1403_vm15, %v1422_v41, %v1423_v20  ;;  %v1478_v62 = vsel %vm1403_vm15, %v1423_v20, 0.0  ;;  %v1510_v11 = vsel %vm334_vm0, %v1508_v12, %v1509_v31  ;;  %v1276_v49 = vadd.f32 %v4682_v24, %v1252_v28 }
 0x1fe   : > { %v4791_v0 = vpack.i.bf16 %v4779_v10, %v4787_v4  ;;  %v1531_v6 = vrot.slane %v1478_v62, 1  ;;  %v1529_v8 = vrot.slane %v4779_v10, 1  ;;  %v1619_v14 = vrot.slane %v1478_v62, 2 }
 0x1ff   : > { %v1617_v56 = vrot.slane %v4779_v10, 2  ;;  %v3365_v20 = vpack.i.bf16 %v4802_v44, %v4808_v45  ;;  %v1296_v41 = vmax.f32 %v1276_v49, 0.0  ;;  %v1245_v62 = vmul.f32 %v4677_v25, %v1201_v61 }
 0x200   : > { %3296 = vrot.lane.b32.xlu1 %v4751_v42, %s5774_s12  ;;  %v1530_v47 = vsel %vm334_vm0, %v1528_v60, %v1529_v8  ;;  %v1532_v1 = vsel %vm334_vm0, %v1529_v8, %v1531_v6 }
 0x201   : > { %v4810_v35 = vpack.i.bf16 %v1532_v1, %v1530_v47  ;;  %v1618_v32 = vsel %vm445_vm1, %v1616_v38, %v1617_v56  ;;  %v1620_v53 = vsel %vm445_vm1, %v1617_v56, %v1619_v14  ;;  %v1377_v16 = vmul.f32 %v2722_v13, %v1296_v41 }
 0x202   : > { %v4819_v26 = vpack.i.bf16 %v1620_v53, %v1618_v32  ;;  %v1221_v55 = vpop.f32.mrf.mxu2  ;;  %v1269_v15 = vadd.f32 %v4682_v24, %v1245_v62 }
 0x203   : > { %3316 = vrot.lane.b32.xlu0 %v3315_v52, %s5774_s12  ;;  %v1253_v37 = vmul.f32 %v4677_v25, %v1221_v55  ;;  %v1425_v22 = vrot.slane %v1377_v16, 7 }
 0x204   : > { %3336 = vrot.lane.b32.xlu2 %v4791_v0, %s5773_s17  ;;  %v1289_v38 = vmax.f32 %v1269_v15, 0.0  ;;  %v1307_v15 = vadd.s32 4, %v4672_v7 }
 0x205   : > { %v1277_v23 = vadd.f32 %v4682_v24, %v1253_v37  ;;  %v4861_v21 = vsel %vm1403_vm15, 0.0, %v1425_v22 }
 0x206   : > { %v1621_v39 = vrot.slane %v4861_v21, 2  ;;  %v1533_v32 = vrot.slane %v4861_v21, 1  ;;  %vm1317_vm12 = vcmp.ge.s32.totalorder %v1307_v15, 0  ;;  %vm1327_vm13 = vcmp.lt.s32.totalorder %v1307_v15, 16 }
 0x207   : > { %v1297_v51 = vmax.f32 %v1277_v23, 0.0  ;;  %v1311_v23 = vadd.s32 8, %v4672_v7  ;;  %vm1337_vm14 = vmand %vm1317_vm12, %vm1327_vm13  ;;  %vm2191_vm12 = vcmask 1043456   ;;  %vm5775_vm13 = vcmask 523264  }
 0x208   : > { %3331 = vrot.lane.b32.xlu1 %v3320_v19, %s3705_s16  ;;  %v1512_v19 = vsel %vm334_vm0, %v1509_v31, %v1511_v63  ;;  %v1370_v63 = vmul.f32 %v2718_v36, %v1289_v38 }
 0x209   : > { %v3380_v40 = vpack.i.bf16 %v1512_v19, %v1510_v11  ;;  %v1378_v5 = vmul.f32 %v2722_v13, %v1297_v51  ;;  %v1204_v19 = vpop.f32.mrf.mxu0  ;;  %vm1321_vm9 = vcmp.ge.s32.totalorder %v1311_v23, 0  ;;  %vm1331_vm11 = vcmp.lt.s32.totalorder %v1311_v23, 16 }
 0x20a   : > { %v1224_v8 = vpop.f32.mrf.mxu2  ;;  %v1414_v12 = vrot.slane %v1370_v63, 7  ;;  %vm1341_vm8 = vmand %vm1321_vm9, %vm1331_vm11 }
 0x20b   : > { %3326 = vrot.lane.b32.xlu0 %v3315_v52, %s3701_s19  ;;  %v1426_v3 = vrot.slane %v1378_v5, 7  ;;  %v1244_v52 = vmul.f32 %v4677_v25, %v1199_v54  ;;  %v1254_v49 = vmul.f32 %v4677_v25, %v1224_v8  ;;  %v2723_v48 = vsel %vm1341_vm8, 1.0, %v3702_v33 }
 0x20c   : > { %3341 = vrot.lane.b32.xlu2 %v4810_v35, %s5774_s12 }
 0x20d   : > { %v4855_v6 = vsel %vm1403_vm15, %v1425_v22, %v1426_v3  ;;  %v1479_v60 = vsel %vm1403_vm15, %v1426_v3, 0.0  ;;  %v1268_v14 = vadd.f32 %v4682_v24, %v1244_v52  ;;  %v1278_v41 = vadd.f32 %v4682_v24, %v1254_v49 }
 0x20e   : > { %v3405_v2 = vpack.i.bf16 %v4855_v6, %v4861_v21  ;;  %v1536_v47 = vrot.slane %v1479_v60, 1  ;;  %v1624_v1 = vrot.slane %v1479_v60, 2  ;;  %v1622_v56 = vrot.slane %v4855_v6, 2 }
 0x20f   : > { %v1534_v17 = vrot.slane %v4855_v6, 1  ;;  %v1288_v53 = vmax.f32 %v1268_v14, 0.0  ;;  %v1298_v3 = vmax.f32 %v1278_v41, 0.0 }
 0x210   : > { %3346 = vrot.lane.b32.xlu1 %v4819_v26, %s3697_s14  ;;  %v1623_v58 = vsel %vm445_vm1, %v1621_v39, %v1622_v56  ;;  %v1625_v59 = vsel %vm445_vm1, %v1622_v56, %v1624_v1  ;;  %v1246_v39 = vmul.f32 %v4677_v25, %v1204_v19 }
 0x211   : > { %v1535_v46 = vsel %vm334_vm0, %v1533_v32, %v1534_v17  ;;  %v1537_v55 = vsel %vm334_vm0, %v1534_v17, %v1536_v47  ;;  %v1369_v31 = vmul.f32 %v2718_v36, %v1288_v53  ;;  %v3415_v29 = vpack.i.bf16 %v1625_v59, %v1623_v58  ;;  %v1206_v52 = vpop.f32.mrf.mxu0 }
 0x212   : > { %v1226_v37 = vpop.f32.mrf.mxu2  ;;  %v3410_v28 = vpack.i.bf16 %v1537_v55, %v1535_v46  ;;  %v1379_v60 = vmul.f32 %v2723_v48, %v1298_v3  ;;  %v1247_v56 = vmul.f32 %v4677_v25, %v1206_v52 }
 0x213   : > { %3376 = vrot.lane.b32.xlu0 %v4825_v43, %s3697_s14  ;;  %v1255_v54 = vmul.f32 %v4677_v25, %v1226_v37  ;;  %v1413_v11 = vrot.slane %v1369_v31, 7 }
 0x214   : > { %3356 = vrot.lane.b32.xlu2 %v4819_v26, %s3705_s16  ;;  %v1428_v58 = vrot.slane %v1379_v60, 7  ;;  %v1271_v59 = vadd.f32 %v4682_v24, %v1247_v56 }
 0x215   : > { %v4891_v51 = vsel %vm1403_vm15, 0.0, %v1413_v11 }
 0x216   : > { %v1601_v16 = vrot.slane %v4891_v51, 2  ;;  %v1513_v36 = vrot.slane %v4891_v51, 1 }
 0x218   : > { %3351 = vrot.lane.b32.xlu1 %v4810_v35, %s3701_s19 }
 0x21b   : > { %3381 = vrot.lane.b32.xlu0 %v3380_v40, %s3703_s9 }
 0x21c   : > { %3366 = vrot.lane.b32.xlu2 %v3365_v20, %s3704_s13 }
 0x220   : > { %3361 = vrot.lane.b32.xlu1 %v3365_v20, %s5773_s17  ;;  %v4885_v20 = vsel %vm1403_vm15, %v1413_v11, %v1414_v12  ;;  %v1470_v11 = vsel %vm1403_vm15, 0.0, %v1428_v58 }
 0x221   : > { %v1602_v5 = vrot.slane %v4885_v20, 2  ;;  %v1514_v17 = vrot.slane %v4885_v20, 1 }
 0x223   : > { %3396 = vrot.lane.b32.xlu0 %v4825_v43, %s3705_s16  ;;  %v1603_v62 = vsel %vm445_vm1, %v1601_v16, %v1602_v5  ;;  %v1515_v55 = vsel %vm334_vm0, %v1513_v36, %v1514_v17 }
 0x224   : > { %3391 = vrot.lane.b32.xlu2 %v3380_v40, %s3701_s19 }
 0x228   : > { %3371 = vrot.lane.b32.xlu1 %v3380_v40, %s5774_s12  ;;  %v1279_v40 = vadd.f32 %v4682_v24, %v1255_v54 }
 0x22a   : > { %v1299_v61 = vmax.f32 %v1279_v40, 0.0  ;;  %v1291_v40 = vmax.f32 %v1271_v59, 0.0 }
 0x22b   : > { %3401 = vrot.lane.b32.xlu0 %v3405_v2, %s3704_s13 }
 0x22c   : > { %3406 = vrot.lane.b32.xlu2 %v3405_v2, %s5773_s17  ;;  %v1380_v8 = vmul.f32 %v2723_v48, %v1299_v61  ;;  %v3440_v2 = vpack.i.bf16 %v4885_v20, %v4891_v51 }
 0x22e   : > { %v1429_v38 = vrot.slane %v1380_v8, 7 }
 0x230   : > { %3386 = vrot.lane.b32.xlu1 %v4825_v43, %s3706_s18  ;;  %v1475_v43 = vsel %vm1403_vm15, %v1414_v12, 0.0  ;;  %v3277_v14 = vpop.permute.xlu2 %3276  ;;  %v1430_v37 = vsel %vm1403_vm15, %v1428_v58, %v1429_v38  ;;  %v1480_v31 = vsel %vm1403_vm15, %v1429_v38, 0.0  ;;  %v1270_v12 = vadd.f32 %v4682_v24, %v1246_v39 }
 0x231   : > { %v1604_v13 = vrot.slane %v1475_v43, 2  ;;  %v1516_v1 = vrot.slane %v1475_v43, 1  ;;  %v3279_v32 = vunpack.i.h.bf16 %v3277_v14  ;;  %v3278_v53 = vunpack.i.l.bf16 %v3277_v14 }
 0x232   : > { %v1780_v41 = vrot.slane %v1480_v31, 2  ;;  %v3480_v38 = vpack.i.bf16 %v1430_v37, %v1470_v11 }
 0x233   : > { %3411 = vrot.lane.b32.xlu0 %v3410_v28, %s5774_s12  ;;  %v1605_v22 = vsel %vm445_vm1, %v1602_v5, %v1604_v13  ;;  %v1517_v63 = vsel %vm334_vm0, %v1514_v17, %v1516_v1  ;;  %v1987_v54 = vsel %vm963_vm3, %v4695_v57, %v3279_v32  ;;  %v1986_v23 = vsel %vm963_vm3, %v4692_v34, %v3278_v53 }
 0x234   : > { %3416 = vrot.lane.b32.xlu2 %v3415_v29, %s3697_s14  ;;  %v3465_v47 = vpack.i.bf16 %v1605_v22, %v1603_v62  ;;  %v3450_v43 = vpack.i.bf16 %v1517_v63, %v1515_v55  ;;  %v1778_v13 = vrot.slane %v1430_v37, 2  ;;  %v1290_v34 = vmax.f32 %v1270_v12, 0.0  ;;  %v1229_v22 = vpop.f32.mrf.mxu2 }
 0x235   : > { %v1777_v57 = vrot.slane %v1470_v11, 2  ;;  %v2719_v5 = vsel %vm1337_vm14, 1.0, %v3702_v33  ;;  %v1725_v1 = vrot.slane %v1430_v37, 1  ;;  %v1724_v17 = vrot.slane %v1470_v11, 1 }
 0x236   : > { %v1372_v16 = vmul.f32 %v2719_v5, %v1291_v40  ;;  %v1781_v48 = vsel %vm445_vm1, %v1778_v13, %v1780_v41  ;;  %v1371_v62 = vmul.f32 %v2719_v5, %v1290_v34  ;;  %vm2166_vm14 = vcmask 588800  }
 0x237   : > { %v1779_v3 = vsel %vm445_vm1, %v1777_v57, %v1778_v13  ;;  %v1726_v53 = vsel %vm334_vm0, %v1724_v17, %v1725_v1 }
 0x238   : > { %3426 = vrot.lane.b32.xlu1 %v3415_v29, %s3706_s18  ;;  %v4939_v52 = vpack.i.bf16 %v1781_v48, %v1779_v3  ;;  %v1417_v8 = vrot.slane %v1372_v16, 7  ;;  %v1416_v15 = vrot.slane %v1371_v62, 7 }
 0x23a   : > { %v4947_v14 = vsel %vm1403_vm15, %v1416_v15, %v1417_v8  ;;  %v4952_v56 = vsel %vm1403_vm15, 0.0, %v1416_v15 }
 0x23b   : > { %3431 = vrot.lane.b32.xlu0 %v3410_v28, %s3701_s19  ;;  %v3495_v39 = vpack.i.bf16 %v4947_v14, %v4952_v56  ;;  %v1519_v58 = vrot.slane %v4947_v14, 1  ;;  %v1607_v12 = vrot.slane %v4947_v14, 2  ;;  %v1606_v11 = vrot.slane %v4952_v56, 2 }
 0x23c   : > { %3421 = vrot.lane.b32.xlu2 %v3410_v28, %s3703_s9  ;;  %v1231_v59 = vpop.f32.mrf.mxu2 }
 0x23d   : > { %v1608_v13 = vsel %vm445_vm1, %v1606_v11, %v1607_v12 }
 0x240   : > { %3436 = vrot.lane.b32.xlu1 %v3415_v29, %s3705_s16 }
 0x243   : > { %3466 = vrot.lane.b32.xlu0 %v3465_v47, %s3706_s18 }
 0x244   : > { %3441 = vrot.lane.b32.xlu2 %v3440_v2, %s5773_s17 }
 0x248   : > { %v3282_v46 = vpop.permute.xlu1 %3281  ;;  %3446 = vrot.lane.b32.xlu1 %v3440_v2, %s3704_s13  ;;  %v1727_v2 = vrot.slane %v1480_v31, 1  ;;  %v1257_v31 = vmul.f32 %v4677_v25, %v1231_v59 }
 0x249   : > { %v3284_v29 = vunpack.i.h.bf16 %v3282_v46  ;;  %v3283_v28 = vunpack.i.l.bf16 %v3282_v46  ;;  %v1518_v46 = vrot.slane %v4952_v56, 1 }
 0x24a   : > { %v1728_v36 = vsel %vm334_vm0, %v1725_v1, %v1727_v2  ;;  %v1281_v41 = vadd.f32 %v4682_v24, %v1257_v31 }
 0x24b   : > { %v4924_v19 = vsel %vm1005_vm5, %v1986_v23, %v3283_v28  ;;  %v4927_v49 = vsel %vm1005_vm5, %v1987_v54, %v3284_v29  ;;  %3476 = vrot.lane.b32.xlu0 %v3465_v47, %s3705_s16  ;;  %v3485_v37 = vpack.i.bf16 %v1728_v36, %v1726_v53  ;;  %v1520_v29 = vsel %vm334_vm0, %v1518_v46, %v1519_v58 }
 0x24c   : > { %3451 = vrot.lane.b32.xlu2 %v3450_v43, %s5774_s12  ;;  %v1312_v54 = vadd.s32 9, %v4672_v7  ;;  %v1256_v23 = vmul.f32 %v4677_v25, %v1229_v22  ;;  %v1301_v16 = vmax.f32 %v1281_v41, 0.0  ;;  %v2776_v41 = vld [vmem:[%s5756_s4 + $0x10] sm:$0xff] }
 0x24e   : > { %v4934_v61 = vpop.permute.xlu2 %3306  ;;  %vm1322_vm9 = vcmp.ge.s32.totalorder %v1312_v54, 0  ;;  %vm1332_vm11 = vcmp.lt.s32.totalorder %v1312_v54, 16  ;;  %v1280_v7 = vadd.f32 %v4682_v24, %v1256_v23 }
 0x24f   : > { %vm1342_vm8 = vmand %vm1322_vm9, %vm1332_vm11  ;;  %vm2288_vm9 = vcmask 1041409   ;;  %vm2291_vm11 = vcmask 1042434  }
 0x250   : > { %3456 = vrot.lane.b32.xlu1 %v3465_v47, %s3697_s14  ;;  %v1476_v47 = vsel %vm1403_vm15, %v1417_v8, 0.0  ;;  %v1300_v3 = vmax.f32 %v1280_v7, 0.0  ;;  %v2724_v48 = vsel %vm1342_vm8, 1.0, %v3702_v33  ;;  %vm2294_vm8 = vcmask 1043459  }
 0x251   : > { %v1521_v32 = vrot.slane %v1476_v47, 1  ;;  %v1609_v55 = vrot.slane %v1476_v47, 2  ;;  %v1382_v22 = vmul.f32 %v2724_v48, %v1301_v16 }
 0x252   : > { %v1381_v24 = vmul.f32 %v2724_v48, %v1300_v3 }
 0x253   : > { %3491 = vrot.lane.b32.xlu0 %v4939_v52, %s3706_s18  ;;  %v1522_v28 = vsel %vm334_vm0, %v1519_v58, %v1521_v32  ;;  %v1610_v34 = vsel %vm445_vm1, %v1607_v12, %v1609_v55  ;;  %v1432_v2 = vrot.slane %v1382_v22, 7 }
 0x254   : > { %3461 = vrot.lane.b32.xlu2 %v3450_v43, %s3703_s9  ;;  %v3505_v40 = vpack.i.bf16 %v1522_v28, %v1520_v29  ;;  %v3520_v5 = vpack.i.bf16 %v1610_v34, %v1608_v13  ;;  %v1431_v1 = vrot.slane %v1381_v24, 7  ;;  %v2775_v24 = vld [vmem:[%s5756_s4 + $0x8] sm:$0xff] }
 0x256   : > { %v4944_v60 = vpop.permute.xlu2 %3321  ;;  %v1433_v33 = vsel %vm1403_vm15, %v1431_v1, %v1432_v2  ;;  %v1471_v17 = vsel %vm1403_vm15, 0.0, %v1431_v1 }
 0x257   : > { %v3555_v36 = vpack.i.bf16 %v1433_v33, %v1471_v17  ;;  %v3324_v46 = vunpack.i.h.bf16 %v4944_v60  ;;  %v3323_v55 = vunpack.i.l.bf16 %v4944_v60  ;;  %v2777_v60 = vld [vmem:[%s5756_s4 + $0x18] sm:$0xff]  ;;  %v1881_v7 = vrot.slane %v1433_v33, 1 }
 0x258   : > { %3471 = vrot.lane.b32.xlu1 %v3450_v43, %s3701_s19  ;;  %v1934_v3 = vrot.slane %v1433_v33, 2  ;;  %v1933_v1 = vrot.slane %v1471_v17, 2 }
 0x25b   : > { %3496 = vrot.lane.b32.xlu0 %v3495_v39, %s5773_s17 }
 0x25c   : > { %3481 = vrot.lane.b32.xlu2 %v3480_v38, %s3704_s13 }
 0x25e   : > { %v4962_v63 = vpop.permute.xlu2 %3336 }
 0x260   : > { %3486 = vrot.lane.b32.xlu1 %v3485_v37, %s3703_s9 }
 0x262   : > { %v4972_v43 = vpop.permute.xlu1 %3286 }
 0x263   : > { %3506 = vrot.lane.b32.xlu0 %v3505_v40, %s5774_s12  ;;  %s5794_s12 = smov 4  }
 0x264   : > { %3501 = vrot.lane.b32.xlu2 %v3495_v39, %s3704_s13  ;;  %v2134_v39 = vld [vmem:[%s5756_s4 + $0x20] sm:$0xf] }
 0x265   : > { %v4980_v25 = vpop.permute.xlu0 %3301 }
 0x266   : > { %v4982_v57 = vpop.permute.xlu2 %3341 }
 0x267   : > { %v3344_v13 = vunpack.i.h.bf16 %v4982_v57  ;;  %v3343_v34 = vunpack.i.l.bf16 %v4982_v57 }
 0x268   : > { %3521 = vrot.lane.b32.xlu1 %v3520_v5, %s3706_s18 }
 0x269   : > { %v1998_v57 = vsel %vm963_vm3, %v4787_v4, %v3343_v34 }
 0x26a   : > { %v4986_v62 = vpop.permute.xlu1 %3291 }
 0x26b   : > { %3516 = vrot.lane.b32.xlu0 %v3505_v40, %s3703_s9 }
 0x26c   : > { %3511 = vrot.lane.b32.xlu2 %v3520_v5, %s3697_s14 }
 0x26d   : > { %v4990_v8 = vpop.permute.xlu0 %3311 }
 0x26e   : > { %v4992_v15 = vpop.permute.xlu2 %3356 }
 0x270   : > { %3536 = vrot.lane.b32.xlu1 %v3480_v38, %s5773_s17  ;;  %v2156_v38 = vunpack.c.l.b16 %v2134_v39  ;;  %s5796_s17 = smov 20  }
 0x272   : > { %v4995_v47 = vpop.permute.xlu1 %3296  ;;  %v2161_v31 = vpack.c.b16 %v2156_v38, %v2156_v38 }
 0x273   : > { %3526 = vrot.lane.b32.xlu0 %v3505_v40, %s3701_s19  ;;  %v1481_v40 = vsel %vm1403_vm15, %v1432_v2, 0.0  ;;  %v1999_v2 = vsel %vm963_vm3, %v4779_v10, %v3344_v13  ;;  %vm2084_vm15 = vcmask 457728  }
 0x274   : > { %3541 = vrot.lane.b32.xlu2 %v3520_v5, %s3705_s16  ;;  %v2193_v11 = vsel %vm2191_vm12, %v2161_v31, 0  ;;  %v1936_v16 = vrot.slane %v1481_v40, 2  ;;  %vm2297_vm12 = vcmask 1044484  }
 0x275   : > { %v3317_v32 = vpop.permute.xlu0 %3316  ;;  %2198 = vmatpush.bf16.msra.mxu1 %v2193_v11  ;;  %2781 = vmatpush.bf16.msra.mxu3 %v2193_v11  ;;  %v3299_v11 = vunpack.i.h.bf16 %v4995_v47 }
 0x276   : > { %v5004_v53 = vpop.permute.xlu2 %3366  ;;  %v3319_v58 = vunpack.i.h.bf16 %v3317_v32  ;;  %v3318_v59 = vunpack.i.l.bf16 %v3317_v32 }
 0x278   : > { %3556 = vrot.lane.b32.xlu1 %v3555_v36, %s3704_s13  ;;  %v1989_v29 = vsel %vm963_vm3, %v4739_v9, %v3319_v58  ;;  %v1988_v28 = vsel %vm963_vm3, %v4746_v27, %v3318_v59  ;;  %v1935_v36 = vsel %vm445_vm1, %v1933_v1, %v1934_v3  ;;  %v3369_v1 = vunpack.i.h.bf16 %v5004_v53 }
 0x279   : > { %v5016_v54 = vsel %vm1005_vm5, %v1988_v28, %v3323_v55  ;;  %v5019_v23 = vsel %vm1005_vm5, %v1989_v29, %v3324_v46  ;;  %2199 = vmatpush.bf16.msra.mxu1 %v2777_v60  ;;  %2782 = vmatpush.bf16.msra.mxu3 %v2777_v60  ;;  %v3314_v29 = vunpack.i.h.bf16 %v4990_v8  ;;  %v3313_v28 = vunpack.i.l.bf16 %v4990_v8 }
 0x27a   : > { %v5013_v12 = vpop.permute.xlu1 %3331  ;;  %v3298_v60 = vunpack.i.l.bf16 %v4995_v47  ;;  %v1997_v8 = vsel %vm963_vm3, %v4725_v50, %v3299_v11  ;;  %v3304_v47 = vunpack.i.h.bf16 %v4980_v25  ;;  %v3338_v50 = vunpack.i.l.bf16 %v4962_v63 }
 0x27b   : > { %3531 = vrot.lane.b32.xlu0 %v4749_v30, %s3706_s18  ;;  %v2018_v34 = vsel %vm1047_vm7, %v4924_v19, %v3313_v28  ;;  %v3339_v19 = vunpack.i.h.bf16 %v4962_v63 }
 0x27c   : > { %3546 = vrot.lane.b32.xlu2 %v3485_v37, %s3701_s19  ;;  %v1883_v37 = vrot.slane %v1481_v40, 1 }
 0x27d   : > { %v5027_v9 = vpop.permute.xlu0 %3326  ;;  %2200 = vmatpush.bf16.msra.mxu1 %v2776_v41  ;;  %2783 = vmatpush.bf16.msra.mxu3 %v2776_v41 }
 0x27e   : > { %v5029_v27 = vpop.permute.xlu2 %3391  ;;  %v1884_v38 = vsel %vm334_vm0, %v1881_v7, %v1883_v37  ;;  %v3329_v40 = vunpack.i.h.bf16 %v5027_v9  ;;  %v3328_v41 = vunpack.i.l.bf16 %v5027_v9  ;;  %v1996_v37 = vsel %vm963_vm3, %v4721_v18, %v3298_v60 }
 0x280   : > { %3571 = vrot.lane.b32.xlu1 %v4749_v30, %s3705_s16  ;;  %v1880_v30 = vrot.slane %v1471_v17, 1 }
 0x281   : > { %2201 = vmatpush.bf16.msra.mxu1 %v2775_v24  ;;  %2784 = vmatpush.bf16.msra.mxu3 %v2775_v24 }
 0x282   : > { %v3347_v5 = vpop.permute.xlu1 %3346  ;;  %v1882_v4 = vsel %vm334_vm0, %v1880_v30, %v1881_v7  ;;  %vm2050_vm0 = vcmask 326656   ;;  %v2034_v7 = vsel %vm1089_vm10, %v2018_v34, %v3328_v41  ;;  %v3359_v41 = vunpack.i.h.bf16 %v4992_v15 }
 0x283   : > { %v3349_v48 = vunpack.i.h.bf16 %v3347_v5  ;;  %v3348_v22 = vunpack.i.l.bf16 %v3347_v5  ;;  %3551 = vrot.lane.b32.xlu0 %v4939_v52, %s3705_s16  ;;  %v2774_v52 = vld [vmem:[%s5756_s4] sm:$0xff]  ;;  %v3565_v59 = vpack.i.bf16 %v1884_v38, %v1882_v4  ;;  %v3303_v5 = vunpack.i.l.bf16 %v4980_v25 }
 0x284   : > { %3561 = vrot.lane.b32.xlu2 %v4751_v42, %s3701_s19  ;;  %v1937_v42 = vsel %vm445_vm1, %v1934_v3, %v1936_v16  ;;  %v3333_v16 = vunpack.i.l.bf16 %v5013_v12  ;;  %v2013_v3 = vsel %vm1005_vm5, %v1997_v8, %v3304_v47  ;;  %vm2067_vm1 = vcmask 392192  }
 0x285   : > { %v5051_v33 = vsel %vm1005_vm5, %v1998_v57, %v3348_v22  ;;  %v5054_v39 = vsel %vm1005_vm5, %v1999_v2, %v3349_v48  ;;  %v5056_v32 = vpop.permute.xlu0 %3376  ;;  %v3575_v58 = vpack.i.bf16 %v1937_v42, %v1935_v36  ;;  %2202 = vmatpush.bf16.msra.mxu1 %v2774_v52  ;;  %2785 = vmatpush.bf16.msra.mxu3 %v2774_v52  ;;  %v3368_v22 = vunpack.i.l.bf16 %v5004_v53 }
 0x286   : > { %v5058_v10 = vpop.permute.xlu2 %3406  ;;  %v2012_v18 = vsel %vm1005_vm5, %v1996_v37, %v3303_v5  ;;  %v2051_v25 = vsel %vm2050_vm0, %v2034_v7, %v3333_v16  ;;  %v2029_v4 = vsel %vm1047_vm7, %v2013_v3, %v3339_v19 }
 0x287   : > { %v2028_v63 = vsel %vm1047_vm7, %v2012_v18, %v3338_v50  ;;  %v2068_v36 = vsel %vm2067_vm1, %v2051_v25, %v3368_v22 }
 0x288   : > { %3586 = vrot.lane.b32.xlu1 %v4810_v35, %s3703_s9 }
 0x28a   : > { %v3352_v17 = vpop.permute.xlu1 %3351 }
 0x28b   : > { %3566 = vrot.lane.b32.xlu0 %v3565_v59, %s3703_s9  ;;  %v3354_v2 = vunpack.i.h.bf16 %v3352_v17  ;;  %v3353_v57 = vunpack.i.l.bf16 %v3352_v17 }
 0x28c   : > { %3576 = vrot.lane.b32.xlu2 %v3575_v58, %s3706_s18 }
 0x28d   : > { %v3382_v55 = vpop.permute.xlu0 %3381  ;;  %v2044_v17 = vsel %vm1089_vm10, %v2028_v63, %v3353_v57  ;;  %v2045_v53 = vsel %vm1089_vm10, %v2029_v4, %v3354_v2 }
 0x28e   : > { %v5071_v46 = vpop.permute.xlu2 %3416  ;;  %v3384_v30 = vunpack.i.h.bf16 %v3382_v55 }
 0x28f   : > { %v3418_v7 = vunpack.i.l.bf16 %v5071_v46 }
 0x292   : > { %v5073_v31 = vpop.permute.xlu1 %3361 }
 0x293   : > { %3581 = vrot.lane.b32.xlu0 %v4791_v0, %s3704_s13  ;;  %v2019_v0 = vsel %vm1047_vm7, %v4927_v49, %v3314_v29  ;;  %v3334_v49 = vunpack.i.h.bf16 %v5013_v12  ;;  %v3383_v12 = vunpack.i.l.bf16 %v3382_v55  ;;  %v3363_v63 = vunpack.i.l.bf16 %v5073_v31 }
 0x294   : > { %3591 = vrot.lane.b32.xlu2 %v4819_v26, %s3706_s18  ;;  %v2035_v9 = vsel %vm1089_vm10, %v2019_v0, %v3329_v40  ;;  %v3358_v0 = vunpack.i.l.bf16 %v4992_v15  ;;  %s5797_s18 = smov 28  }
 0x295   : > { %v5079_v35 = vpop.permute.xlu0 %3396  ;;  %v2052_v24 = vsel %vm2050_vm0, %v2035_v9, %v3334_v49  ;;  %v2085_v29 = vsel %vm2084_vm15, %v2068_v36, %v3383_v12  ;;  %v3419_v9 = vunpack.i.h.bf16 %v5071_v46  ;;  %v2062_v49 = vsel %vm2050_vm0, %v2045_v53, %v3359_v41 }
 0x296   : > { %v5087_v13 = vpop.permute.xlu2 %3421  ;;  %v2069_v52 = vsel %vm2067_vm1, %v2052_v24, %v3369_v1  ;;  %v2061_v5 = vsel %vm2050_vm0, %v2044_v17, %v3358_v0  ;;  %v3364_v1 = vunpack.i.h.bf16 %v5073_v31  ;;  %v3393_v17 = vunpack.i.l.bf16 %v5029_v27 }
 0x297   : > { %v2086_v55 = vsel %vm2084_vm15, %v2069_v52, %v3384_v30  ;;  %v3424_v3 = vunpack.i.h.bf16 %v5087_v13  ;;  %v3423_v46 = vunpack.i.l.bf16 %v5087_v13  ;;  %v3399_v53 = vunpack.i.h.bf16 %v5079_v35 }
 0x298   : > { %v2021_v36 = vsel %vm1047_vm7, %v5019_v23, %v3364_v1 }
 0x29a   : > { %v5089_v26 = vpop.permute.xlu1 %3371 }
 0x29d   : > { %v3402_v48 = vpop.permute.xlu0 %3401 }
 0x29e   : > { %v5116_v42 = vpop.permute.xlu2 %3441  ;;  %v3404_v28 = vunpack.i.h.bf16 %v3402_v48  ;;  %v3403_v11 = vunpack.i.l.bf16 %v3402_v48 }
 0x2a0   : > { %v2079_v16 = vsel %vm2067_vm1, %v2062_v49, %v3404_v28  ;;  %v2078_v19 = vsel %vm2067_vm1, %v2061_v5, %v3403_v11 }
 0x2a1   : > { %v2096_v57 = vsel %vm2084_vm15, %v2079_v16, %v3424_v3  ;;  %v3374_v3 = vunpack.i.h.bf16 %v5089_v26 }
 0x2a2   : > { %v3387_v38 = vpop.permute.xlu1 %3386 }
 0x2a3   : > { %v3389_v58 = vunpack.i.h.bf16 %v3387_v38  ;;  %v3388_v59 = vunpack.i.l.bf16 %v3387_v38  ;;  %v2020_v38 = vsel %vm1047_vm7, %v5016_v54, %v3363_v63  ;;  %v3379_v63 = vunpack.i.h.bf16 %v5056_v32 }
 0x2a5   : > { %v2102_v60 = vsel %vm5775_vm13, %v2085_v29, %v3388_v59  ;;  %v2103_v40 = vsel %vm5775_vm13, %v2086_v55, %v3389_v58  ;;  %v3412_v34 = vpop.permute.xlu0 %3411  ;;  %v3394_v59 = vunpack.i.h.bf16 %v5029_v27  ;;  %v3398_v55 = vunpack.i.l.bf16 %v5079_v35 }
 0x2a6   : > { %v2118_v8 = vpack.c.bf16 %v2103_v40, %v2102_v60  ;;  %v3414_v47 = vunpack.i.h.bf16 %v3412_v34  ;;  %v3413_v37 = vunpack.i.l.bf16 %v3412_v34  ;;  %v5146_v2 = vpop.permute.xlu2 %3451  ;;  %v2036_v29 = vsel %vm1089_vm10, %v2020_v38, %v3393_v17 }
 0x2a7   : > { %v2037_v31 = vsel %vm1089_vm10, %v2021_v36, %v3394_v59  ;;  %v2053_v54 = vsel %vm2050_vm0, %v2036_v29, %v3398_v55 }
 0x2a8   : > { %2741 = vmatmul.msk.bf16.vlgmr.msra.gmra.mxu1 %vm2166_vm14, %v2118_v8  ;;  %v2001_v15 = vsel %vm963_vm3, %v4855_v6, %v3414_v47  ;;  %v2000_v50 = vsel %vm963_vm3, %v4861_v21, %v3413_v37  ;;  %v2095_v6 = vsel %vm2084_vm15, %v2078_v19, %v3423_v46  ;;  %v2054_v60 = vsel %vm2050_vm0, %v2037_v31, %v3399_v53 }
 0x2a9   : > { %v5141_v18 = vsel %vm1005_vm5, %v2000_v50, %v3418_v7  ;;  %v5144_v22 = vsel %vm1005_vm5, %v2001_v15, %v3419_v9  ;;  %v3373_v46 = vunpack.i.l.bf16 %v5089_v26  ;;  %v3378_v26 = vunpack.i.l.bf16 %v5056_v32 }
 0x2aa   : > { %v3427_v48 = vpop.permute.xlu1 %3426 }
 0x2ab   : > { %v3429_v24 = vunpack.i.h.bf16 %v3427_v48  ;;  %v3428_v25 = vunpack.i.l.bf16 %v3427_v48  ;;  %v3409_v48 = vunpack.i.h.bf16 %v5058_v10 }
 0x2ad   : > { %v2112_v21 = vsel %vm5775_vm13, %v2095_v6, %v3428_v25  ;;  %v2113_v30 = vsel %vm5775_vm13, %v2096_v57, %v3429_v24  ;;  %v3432_v13 = vpop.permute.xlu0 %3431  ;;  %v3408_v24 = vunpack.i.l.bf16 %v5058_v10  ;;  %v2031_v10 = vsel %vm1047_vm7, %v5054_v39, %v3409_v48 }
 0x2ae   : > { %v2123_v12 = vpack.c.bf16 %v2113_v30, %v2112_v21  ;;  %v3462_v52 = vpop.permute.xlu2 %3461  ;;  %v3434_v25 = vunpack.i.h.bf16 %v3432_v13  ;;  %v3433_v6 = vunpack.i.l.bf16 %v3432_v13  ;;  %v1991_v21 = vsel %vm963_vm3, %v4802_v44, %v3374_v3 }
 0x2af   : > { %v3464_v40 = vunpack.i.h.bf16 %v3462_v52  ;;  %v3463_v41 = vunpack.i.l.bf16 %v3462_v52  ;;  %v1990_v30 = vsel %vm963_vm3, %v4808_v45, %v3373_v46  ;;  %v2030_v13 = vsel %vm1047_vm7, %v5051_v33, %v3408_v24 }
 0x2b0   : > { %2746 = vmatmul.msk.bf16.vlgmr.msra.gmra.mxu3 %vm2166_vm14, %v2123_v12  ;;  %v2006_v52 = vsel %vm1005_vm5, %v1990_v30, %v3378_v26  ;;  %v2007_v44 = vsel %vm1005_vm5, %v1991_v21, %v3379_v63  ;;  %v2047_v45 = vsel %vm1089_vm10, %v2031_v10, %v3434_v25  ;;  %v3454_v63 = vunpack.i.h.bf16 %v5146_v2 }
 0x2b1   : > { %v3453_v26 = vunpack.i.l.bf16 %v5146_v2 }
 0x2b2   : > { %v3437_v4 = vpop.permute.xlu1 %3436 }
 0x2b3   : > { %v3439_v12 = vunpack.i.h.bf16 %v3437_v4  ;;  %v3438_v1 = vunpack.i.l.bf16 %v3437_v4  ;;  %v2046_v4 = vsel %vm1089_vm10, %v2030_v13, %v3433_v6  ;;  %v1992_v2 = vsel %vm963_vm3, %v4891_v51, %v3453_v26 }
 0x2b5   : > { %v3467_v58 = vpop.permute.xlu0 %3466  ;;  %v2064_v59 = vsel %vm2050_vm0, %v2047_v45, %v3439_v12  ;;  %v2063_v32 = vsel %vm2050_vm0, %v2046_v4, %v3438_v1  ;;  %v1993_v45 = vsel %vm963_vm3, %v4885_v20, %v3454_v63  ;;  %v3294_v20 = vunpack.i.h.bf16 %v4986_v62 }
 0x2b6   : > { %v3469_v34 = vunpack.i.h.bf16 %v3467_v58  ;;  %v3468_v8 = vunpack.i.l.bf16 %v3467_v58  ;;  %v3482_v9 = vpop.permute.xlu2 %3481 }
 0x2b7   : > { %v3484_v36 = vunpack.i.h.bf16 %v3482_v9  ;;  %v3483_v38 = vunpack.i.l.bf16 %v3482_v9 }
 0x2b9   : > { %v2081_v39 = vsel %vm2067_vm1, %v2064_v59, %v3484_v36  ;;  %v2080_v55 = vsel %vm2067_vm1, %v2063_v32, %v3483_v38 }
 0x2ba   : > { %v3447_v28 = vpop.permute.xlu1 %3446 }
 0x2bb   : > { %v3449_v11 = vunpack.i.h.bf16 %v3447_v28  ;;  %v3448_v23 = vunpack.i.l.bf16 %v3447_v28  ;;  %v3444_v28 = vunpack.i.h.bf16 %v5116_v42 }
 0x2bd   : > { %v2071_v0 = vsel %vm2067_vm1, %v2054_v60, %v3449_v11  ;;  %v2070_v27 = vsel %vm2067_vm1, %v2053_v54, %v3448_v23  ;;  %v5169_v35 = vpop.permute.xlu0 %3476  ;;  %v3443_v11 = vunpack.i.l.bf16 %v5116_v42 }
 0x2be   : > { %v2087_v47 = vsel %vm2084_vm15, %v2070_v27, %v3463_v41  ;;  %v2088_v37 = vsel %vm2084_vm15, %v2071_v0, %v3464_v40  ;;  %v5178_v15 = vpop.permute.xlu2 %3501  ;;  %v3479_v9 = vunpack.i.h.bf16 %v5169_v35 }
 0x2bf   : > { %v2104_v7 = vsel %vm5775_vm13, %v2087_v47, %v3468_v8  ;;  %v2105_v5 = vsel %vm5775_vm13, %v2088_v37, %v3469_v34  ;;  %v2023_v8 = vsel %vm1047_vm7, %v2007_v44, %v3444_v28  ;;  %v2022_v47 = vsel %vm1047_vm7, %v2006_v52, %v3443_v11 }
 0x2c0   : > { %v2119_v49 = vpack.c.bf16 %v2105_v5, %v2104_v7  ;;  %v3478_v7 = vunpack.i.l.bf16 %v5169_v35  ;;  %v3503_v3 = vunpack.i.l.bf16 %v5178_v15  ;;  %v3309_v11 = vunpack.i.h.bf16 %v4934_v61 }
 0x2c2   : > { %v5175_v16 = vpop.permute.xlu1 %3456  ;;  %2742 = vmatmul.msk.bf16.gmra.mxu1 %vm2166_vm14, %v2119_v49 }
 0x2c3   : > { %v3459_v38 = vunpack.i.h.bf16 %v5175_v16  ;;  %v3458_v10 = vunpack.i.l.bf16 %v5175_v16 }
 0x2c5   : > { %v3492_v19 = vpop.permute.xlu0 %3491  ;;  %v2009_v59 = vsel %vm1005_vm5, %v1993_v45, %v3459_v38 }
 0x2c6   : > { %v3494_v33 = vunpack.i.h.bf16 %v3492_v19  ;;  %v3493_v29 = vunpack.i.l.bf16 %v3492_v19  ;;  %v5204_v31 = vpop.permute.xlu2 %3511 }
 0x2ca   : > { %v3472_v50 = vpop.permute.xlu1 %3471 }
 0x2cb   : > { %v3474_v54 = vunpack.i.h.bf16 %v3472_v50  ;;  %v3473_v40 = vunpack.i.l.bf16 %v3472_v50  ;;  %v3504_v50 = vunpack.i.h.bf16 %v5178_v15 }
 0x2cd   : > { %v5184_v57 = vpop.permute.xlu0 %3496  ;;  %v2039_v37 = vsel %vm1089_vm10, %v2023_v8, %v3474_v54  ;;  %v2038_v42 = vsel %vm1089_vm10, %v2022_v47, %v3473_v40 }
 0x2ce   : > { %v2056_v5 = vsel %vm2050_vm0, %v2039_v37, %v3479_v9  ;;  %v2055_v49 = vsel %vm2050_vm0, %v2038_v42, %v3478_v7  ;;  %v3542_v46 = vpop.permute.xlu2 %3541  ;;  %v3499_v52 = vunpack.i.h.bf16 %v5184_v57  ;;  %v3498_v44 = vunpack.i.l.bf16 %v5184_v57 }
 0x2cf   : > { %v2072_v30 = vsel %vm2067_vm1, %v2055_v49, %v3503_v3  ;;  %v2073_v12 = vsel %vm2067_vm1, %v2056_v5, %v3504_v50 }
 0x2d2   : > { %v3487_v58 = vpop.permute.xlu1 %3486 }
 0x2d3   : > { %v3489_v17 = vunpack.i.h.bf16 %v3487_v58  ;;  %v3488_v53 = vunpack.i.l.bf16 %v3487_v58  ;;  %v2008_v58 = vsel %vm1005_vm5, %v1992_v2, %v3458_v10 }
 0x2d4   : > { %v2024_v57 = vsel %vm1047_vm7, %v2008_v58, %v3498_v44 }
 0x2d5   : > { %v2097_v23 = vsel %vm2084_vm15, %v2080_v55, %v3488_v53  ;;  %v2098_v60 = vsel %vm2084_vm15, %v2081_v39, %v3489_v17  ;;  %v5210_v41 = vpop.permute.xlu0 %3506  ;;  %v2025_v53 = vsel %vm1047_vm7, %v2009_v59, %v3499_v52  ;;  %v3544_v39 = vunpack.i.h.bf16 %v3542_v46 }
 0x2d6   : > { %v2114_v0 = vsel %vm5775_vm13, %v2097_v23, %v3493_v29  ;;  %v2115_v27 = vsel %vm5775_vm13, %v2098_v60, %v3494_v33  ;;  %v3543_v55 = vunpack.i.l.bf16 %v3542_v46  ;;  %v3547_v33 = vpop.permute.xlu2 %3546  ;;  %v3293_v29 = vunpack.i.l.bf16 %v4986_v62 }
 0x2d7   : > { %v2124_v34 = vpack.c.bf16 %v2115_v27, %v2114_v0  ;;  %v3308_v23 = vunpack.i.l.bf16 %v4934_v61 }
 0x2d9   : > { %2747 = vmatmul.msk.bf16.gmra.mxu3 %vm2166_vm14, %v2124_v34 }
 0x2da   : > { %v3522_v19 = vpop.permute.xlu1 %3521 }
 0x2db   : > { %v3524_v6 = vunpack.i.h.bf16 %v3522_v19  ;;  %v3523_v21 = vunpack.i.l.bf16 %v3522_v19 }
 0x2dd   : > { %v3517_v48 = vpop.permute.xlu0 %3516 }
 0x2de   : > { %v3519_v24 = vunpack.i.h.bf16 %v3517_v48  ;;  %v3518_v25 = vunpack.i.l.bf16 %v3517_v48  ;;  %v3562_v9 = vpop.permute.xlu2 %3561 }
 0x2e0   : > { %v2090_v35 = vsel %vm2084_vm15, %v2073_v12, %v3519_v24  ;;  %v2089_v1 = vsel %vm2084_vm15, %v2072_v30, %v3518_v25  ;;  %v3549_v24 = vunpack.i.h.bf16 %v3547_v33  ;;  %v3548_v25 = vunpack.i.l.bf16 %v3547_v33 }
 0x2e1   : > { %v2106_v15 = vsel %vm5775_vm13, %v2089_v1, %v3523_v21  ;;  %v2107_v36 = vsel %vm5775_vm13, %v2090_v35, %v3524_v6  ;;  %v3509_v6 = vunpack.i.h.bf16 %v5210_v41  ;;  %v3508_v21 = vunpack.i.l.bf16 %v5210_v41 }
 0x2e2   : > { %v2120_v13 = vpack.c.bf16 %v2107_v36, %v2106_v15  ;;  %v3537_v32 = vpop.permute.xlu1 %3536 }
 0x2e3   : > { %v3539_v5 = vunpack.i.h.bf16 %v3537_v32  ;;  %v3538_v49 = vunpack.i.l.bf16 %v3537_v32  ;;  %v1995_v38 = vsel %vm963_vm3, %v4947_v14, %v3509_v6  ;;  %v1994_v41 = vsel %vm963_vm3, %v4952_v56, %v3508_v21 }
 0x2e4   : > { %2743 = vmatmul.msk.bf16.gmra.mxu1 %vm2166_vm14, %v2120_v13 }
 0x2e5   : > { %v3527_v4 = vpop.permute.xlu0 %3526  ;;  %v2033_v50 = vsel %vm1047_vm7, %v5144_v22, %v3539_v5  ;;  %v2032_v3 = vsel %vm1047_vm7, %v5141_v18, %v3538_v49  ;;  %v3514_v18 = vunpack.i.h.bf16 %v5204_v31 }
 0x2e6   : > { %v3529_v16 = vunpack.i.h.bf16 %v3527_v4  ;;  %v3528_v17 = vunpack.i.l.bf16 %v3527_v4  ;;  %v3577_v12 = vpop.permute.xlu2 %3576  ;;  %v2048_v35 = vsel %vm1089_vm10, %v2032_v3, %v3548_v25  ;;  %v2049_v1 = vsel %vm1089_vm10, %v2033_v50, %v3549_v24  ;;  %v5304_v50 = vld [vmem:[%s5757_s5] ss:$0 sm:$0xff]  ;;  %v2751_v25 = vld [vmem:[%s3823_s30 + $0x31] sm:$0xff] }
 0x2e7   : > { %v3579_v52 = vunpack.i.h.bf16 %v3577_v12  ;;  %v3578_v44 = vunpack.i.l.bf16 %v3577_v12  ;;  %v3513_v4 = vunpack.i.l.bf16 %v5204_v31  ;;  %v2011_v32 = vsel %vm1005_vm5, %v1995_v38, %v3514_v18 }
 0x2e8   : > { %v2041_v51 = vsel %vm1089_vm10, %v2025_v53, %v3529_v16  ;;  %v2040_v28 = vsel %vm1089_vm10, %v2024_v57, %v3528_v17  ;;  %v3564_v17 = vunpack.i.h.bf16 %v3562_v9  ;;  %v3563_v53 = vunpack.i.l.bf16 %v3562_v9 }
 0x2e9   : > { %v2058_v60 = vsel %vm2050_vm0, %v2041_v51, %v3544_v39  ;;  %v2057_v54 = vsel %vm2050_vm0, %v2040_v28, %v3543_v55  ;;  %v2010_v16 = vsel %vm1005_vm5, %v1994_v41, %v3513_v4  ;;  %v3289_v39 = vunpack.i.h.bf16 %v4972_v43 }
 0x2ea   : > { %v2074_v40 = vsel %vm2067_vm1, %v2057_v54, %v3293_v29  ;;  %v2075_v0 = vsel %vm2067_vm1, %v2058_v60, %v3294_v20  ;;  %v3557_v37 = vpop.permute.xlu1 %3556  ;;  %v3288_v55 = vunpack.i.l.bf16 %v4972_v43 }
 0x2eb   : > { %v2091_v27 = vsel %vm2084_vm15, %v2074_v40, %v3308_v23  ;;  %v2092_v62 = vsel %vm2084_vm15, %v2075_v0, %v3309_v11  ;;  %v3559_v26 = vunpack.i.h.bf16 %v3557_v37  ;;  %v3558_v15 = vunpack.i.l.bf16 %v3557_v37 }
 0x2ec   : > { %v2026_v29 = vsel %vm1047_vm7, %v2010_v16, %v3288_v55  ;;  %v2027_v51 = vsel %vm1047_vm7, %v2011_v32, %v3289_v39  ;;  %v2762_v32 = vld [vmem:[%s3823_s30 + $0xb1] sm:$0xff] }
 0x2ed   : > { %v3532_v34 = vpop.permute.xlu0 %3531  ;;  %v2042_v23 = vsel %vm1089_vm10, %v2026_v29, %v3563_v53  ;;  %v2043_v60 = vsel %vm1089_vm10, %v2027_v51, %v3564_v17 }
 0x2ee   : > { %v3534_v8 = vunpack.i.h.bf16 %v3532_v34  ;;  %v3533_v47 = vunpack.i.l.bf16 %v3532_v34  ;;  %v3592_v28 = vpop.permute.xlu2 %3591 }
 0x2ef   : > { %v3594_v34 = vunpack.i.h.bf16 %v3592_v28 }
 0x2f0   : > { %v2108_v42 = vsel %vm5775_vm13, %v2091_v27, %v3533_v47  ;;  %v2109_v61 = vsel %vm5775_vm13, %v2092_v62, %v3534_v8  ;;  %v3593_v8 = vunpack.i.l.bf16 %v3592_v28  ;;  %v2754_v28 = vld [vmem:[%s3823_s30 + $0x51] sm:$0xff] }
 0x2f1   : > { %v2121_v7 = vpack.c.bf16 %v2109_v61, %v2108_v42 }
 0x2f2   : > { %v3572_v30 = vpop.permute.xlu1 %3571 }
 0x2f3   : > { %v3574_v31 = vunpack.i.h.bf16 %v3572_v30  ;;  %v3573_v33 = vunpack.i.l.bf16 %v3572_v30 }
 0x2f4   : > { %2744 = vmatmul.msk.bf16.gmra.mxu1 %vm2166_vm14, %v2121_v7 }
 0x2f5   : > { %v3552_v19 = vpop.permute.xlu0 %3551  ;;  %v2059_v0 = vsel %vm2050_vm0, %v2042_v23, %v3573_v33  ;;  %v2060_v43 = vsel %vm2050_vm0, %v2043_v60, %v3574_v31 }
 0x2f6   : > { %v3554_v46 = vunpack.i.h.bf16 %v3552_v19  ;;  %v3553_v48 = vunpack.i.l.bf16 %v3552_v19 }
 0x2f8   : > { %v2066_v63 = vsel %vm2050_vm0, %v2049_v1, %v3554_v46  ;;  %v2065_v22 = vsel %vm2050_vm0, %v2048_v35, %v3553_v48  ;;  %v2753_v46 = vld [vmem:[%s3823_s30 + $0x49] sm:$0xff] }
 0x2f9   : > { %v2082_v45 = vsel %vm2067_vm1, %v2065_v22, %v3558_v15  ;;  %v2083_v2 = vsel %vm2067_vm1, %v2066_v63, %v3559_v26  ;;  %v2755_v22 = vld [vmem:[%s3823_s30 + $0x61] sm:$0xff] }
 0x2fa   : > { %v3587_v20 = vpop.permute.xlu1 %3586 }
 0x2fb   : > { %v3589_v27 = vunpack.i.h.bf16 %v3587_v20  ;;  %v3588_v62 = vunpack.i.l.bf16 %v3587_v20 }
 0x2fd   : > { %v3567_v36 = vpop.permute.xlu0 %3566 }
 0x2fe   : > { %v3569_v10 = vunpack.i.h.bf16 %v3567_v36  ;;  %v3568_v13 = vunpack.i.l.bf16 %v3567_v36 }
 0x300   : > { %v2099_v58 = vsel %vm2084_vm15, %v2082_v45, %v3568_v13  ;;  %v2100_v59 = vsel %vm2084_vm15, %v2083_v2, %v3569_v10  ;;  %v2752_v13 = vld [vmem:[%s3823_s30 + $0x39] sm:$0xff] }
 0x301   : > { %v2116_v14 = vsel %vm5775_vm13, %v2099_v58, %v3578_v44  ;;  %v2117_v56 = vsel %vm5775_vm13, %v2100_v59, %v3579_v52  ;;  %v2761_v44 = vld [vmem:[%s3823_s30 + $0xa9] sm:$0xff]  ;;  %v2757_v58 = vld [vmem:[%s3823_s30 + $0x79] sm:$0xff] }
 0x302   : > { %v2125_v57 = vpack.c.bf16 %v2117_v56, %v2116_v14 }
 0x304   : > { %2748 = vmatmul.msk.bf16.gmra.mxu3 %vm2166_vm14, %v2125_v57 }
 0x305   : > { %v3582_v11 = vpop.permute.xlu0 %3581 }
 0x306   : > { %v3584_v54 = vunpack.i.h.bf16 %v3582_v11  ;;  %v3583_v40 = vunpack.i.l.bf16 %v3582_v11 }
 0x308   : > { %v2076_v47 = vsel %vm2067_vm1, %v2059_v0, %v3583_v40  ;;  %v2077_v37 = vsel %vm2067_vm1, %v2060_v43, %v3584_v54 }
 0x309   : > { %v2093_v42 = vsel %vm2084_vm15, %v2076_v47, %v3588_v62  ;;  %v2094_v61 = vsel %vm2084_vm15, %v2077_v37, %v3589_v27 }
 0x30a   : > { %v2110_v9 = vsel %vm5775_vm13, %v2093_v42, %v3593_v8  ;;  %v2111_v7 = vsel %vm5775_vm13, %v2094_v61, %v3594_v34  ;;  %vm2306_vm13 = vcmask 1047559  }
 0x30b   : > { %v2122_v5 = vpack.c.bf16 %v2111_v7, %v2110_v9 }
 0x30d   : > { %2745 = vmatmul.msk.bf16.gmra.mxu1 %vm2166_vm14, %v2122_v5  ;;  %vm2300_vm14 = vcmask 1045509  }
 0x325   : > { %v2204_v49 = vpop.f32.mrf.mxu1 }
 0x326   : > { %v2205_v24 = vadd.f32 %v5304_v50, %v2204_v49 }
 0x328   : > { %v5312_v21 = vadd.f32 %v2751_v25, %v2205_v24 }
 0x32a   : > { %v2360_v56 = vrot.slane %v5312_v21, 4  ;;  %v2343_v16 = vrot.slane %v5312_v21, 3  ;;  %v2326_v53 = vrot.slane %v5312_v21, 2  ;;  %v2309_v57 = vrot.slane %v5312_v21, 1 }
 0x32b   : > { %v2394_v39 = vrot.slane %v5312_v21, 6  ;;  %v2377_v55 = vrot.slane %v5312_v21, 5  ;;  %v2411_v20 = vrot.slane %v5312_v21, 7 }
 0x32d   : > { %v2206_v19 = vpop.f32.mrf.mxu1 }
 0x32e   : > { %v2207_v10 = vadd.f32 %v5304_v50, %v2206_v19 }
 0x330   : > { %v5329_v45 = vadd.f32 %v2752_v13, %v2207_v10 }
 0x332   : > { %v2504_v29 = vrot.slane %v5329_v45, 4  ;;  %v2470_v11 = vrot.slane %v5329_v45, 2  ;;  %v2453_v23 = vrot.slane %v5329_v45, 1  ;;  %v2487_v60 = vrot.slane %v5329_v45, 3 }
 0x333   : > { %v2229_v1 = vpop.f32.mrf.mxu3  ;;  %v2521_v40 = vrot.slane %v5329_v45, 5  ;;  %v2555_v0 = vrot.slane %v5329_v45, 7  ;;  %v2538_v43 = vrot.slane %v5329_v45, 6 }
 0x334   : > { %v2230_v52 = vadd.f32 %v5304_v50, %v2229_v1 }
 0x336   : > { %v5333_v59 = vadd.f32 %v2761_v44, %v2230_v52 }
 0x338   : > { %v2368_v54 = vrot.slane %v5333_v59, 7  ;;  %v2351_v27 = vrot.slane %v5333_v59, 6  ;;  %v2334_v62 = vrot.slane %v5333_v59, 5  ;;  %v2317_v34 = vrot.slane %v5333_v59, 4 }
 0x339   : > { %v2403_v37 = vrot.slane %v5333_v59, 1  ;;  %v2420_v42 = vrot.slane %v5333_v59, 2  ;;  %v2299_v5 = vrot.slane %v5333_v59, 3 }
 0x33b   : > { %v2231_v38 = vpop.f32.mrf.mxu3 }
 0x33c   : > { %v2232_v2 = vadd.f32 %v5304_v50, %v2231_v38 }
 0x33e   : > { %v5348_v51 = vadd.f32 %v2762_v32, %v2232_v2 }
 0x33f   : > { %v2209_v3 = vpop.f32.mrf.mxu1 }
 0x340   : > { %v2210_v48 = vadd.f32 %v5304_v50, %v2209_v3  ;;  %v2512_v9 = vrot.slane %v5348_v51, 7  ;;  %v2444_v19 = vrot.slane %v5348_v51, 3  ;;  %v2478_v3 = vrot.slane %v5348_v51, 5 }
 0x341   : > { %v2495_v1 = vrot.slane %v5348_v51, 6 }
 0x342   : > { %v5310_v6 = vadd.f32 %v2753_v46, %v2210_v48  ;;  %v2461_v46 = vrot.slane %v5348_v51, 4 }
 0x344   : > { %v2287_v30 = vrot.slane %v5310_v6, 7  ;;  %v2361_v61 = vrot.slane %v5310_v6, 3  ;;  %v2344_v49 = vrot.slane %v5310_v6, 2  ;;  %v2327_v48 = vrot.slane %v5310_v6, 1 }
 0x345   : > { %v2395_v24 = vrot.slane %v5310_v6, 5  ;;  %v2378_v25 = vrot.slane %v5310_v6, 4 }
 0x346   : > { %v2289_v12 = vsel %vm2288_vm9, %v2287_v30, %v5312_v21  ;;  %v2412_v21 = vrot.slane %v5310_v6, 6  ;;  %v2345_v10 = vsel %vm2288_vm9, %v2344_v49, %v2343_v16  ;;  %v2328_v2 = vsel %vm2288_vm9, %v2327_v48, %v2326_v53 }
 0x347   : > { %v2211_v35 = vpop.f32.mrf.mxu1 }
 0x348   : > { %v2212_v31 = vadd.f32 %v5304_v50, %v2211_v35 }
 0x34a   : > { %v2266_v47 = vadd.f32 %v2754_v28, %v2212_v31  ;;  %v2756_v31 = vld [vmem:[%s3823_s30 + $0x69] sm:$0xff] }
 0x34c   : > { %v2505_v35 = vrot.slane %v2266_v47, 3  ;;  %v2471_v38 = vrot.slane %v2266_v47, 1  ;;  %v2522_v13 = vrot.slane %v2266_v47, 4  ;;  %v2556_v52 = vrot.slane %v2266_v47, 6 }
 0x34d   : > { %v2539_v44 = vrot.slane %v2266_v47, 5  ;;  %v5396_v16 = vsel %vm2288_vm9, %v2266_v47, %v2453_v23 }
 0x34e   : > { %v5414_v28 = vsel %vm2288_vm9, %v2522_v13, %v2521_v40  ;;  %v5417_v23 = vsel %vm2288_vm9, %v2556_v52, %v2555_v0 }
 0x35c   : > { %v2234_v17 = vpop.f32.mrf.mxu3 }
 0x35d   : > { %v2235_v30 = vadd.f32 %v5304_v50, %v2234_v17  ;;  %v2764_v17 = vld [vmem:[%s3823_s30 + $0xc9] sm:$0xff] }
 0x361   : > { %v2214_v63 = vpop.f32.mrf.mxu1 }
 0x362   : > { %v2215_v18 = vadd.f32 %v5304_v50, %v2214_v63  ;;  %v2763_v63 = vld [vmem:[%s3823_s30 + $0xc1] sm:$0xff] }
 0x363   : > { %v5389_v32 = vadd.f32 %v2763_v63, %v2235_v30 }
 0x364   : > { %v5319_v26 = vadd.f32 %v2755_v22, %v2215_v18  ;;  %v2236_v22 = vpop.f32.mrf.mxu3  ;;  %v2362_v18 = vsel %vm2288_vm9, %v2361_v61, %v2360_v56  ;;  %v5393_v56 = vsel %vm2288_vm9, %v2505_v35, %v2504_v29 }
 0x365   : > { %v2370_v40 = vrot.slane %v5389_v32, 6  ;;  %v2353_v61 = vrot.slane %v5389_v32, 5  ;;  %v2319_v48 = vrot.slane %v5389_v32, 3  ;;  %v2422_v30 = vrot.slane %v5389_v32, 1 }
 0x366   : > { %v2290_v15 = vrot.slane %v5319_v26, 6  ;;  %v2363_v29 = vrot.slane %v5319_v26, 2  ;;  %v2414_v0 = vrot.slane %v5319_v26, 5 }
 0x368   : > { %v2292_v41 = vsel %vm2291_vm11, %v2290_v15, %v2289_v12  ;;  %v2310_v12 = vsel %vm2288_vm9, %v5310_v6, %v2309_v57  ;;  %v2436_v15 = vrot.slane %v2266_v47, 7  ;;  %v2396_v6 = vsel %vm2288_vm9, %v2395_v24, %v2394_v39 }
 0x369   : > { %v5322_v36 = vpop.f32.mrf.mxu1  ;;  %v5406_v39 = vsel %vm2288_vm9, %v2471_v38, %v2470_v11  ;;  %v2311_v11 = vrot.slane %v5319_v26, 7  ;;  %v2387_v24 = vrot.slane %v5389_v32, 7 }
 0x36a   : > { %v2217_v53 = vadd.f32 %v5304_v50, %v5322_v36  ;;  %v5403_v57 = vsel %vm2288_vm9, %v2436_v15, %v5329_v45  ;;  %v5420_v36 = vsel %vm2288_vm9, %v2539_v44, %v2538_v43  ;;  %v2346_v45 = vrot.slane %v5319_v26, 1 }
 0x36b   : > { %v2336_v43 = vrot.slane %v5389_v32, 4  ;;  %v2312_v38 = vsel %vm2291_vm11, %v2311_v11, %v2310_v12 }
 0x36c   : > { %v5431_v49 = vadd.f32 %v2756_v31, %v2217_v53  ;;  %v2347_v15 = vsel %vm2291_vm11, %v2346_v45, %v2345_v10  ;;  %v2759_v53 = vld [vmem:[%s3823_s30 + $0x91] sm:$0xff] }
 0x36e   : > { %v2507_v12 = vrot.slane %v5431_v49, 2  ;;  %v2438_v11 = vrot.slane %v5431_v49, 6 }
 0x371   : > { %v2219_v4 = vpop.f32.mrf.mxu1 }
 0x372   : > { %v2220_v14 = vadd.f32 %v5304_v50, %v2219_v4  ;;  %v2379_v4 = vsel %vm2288_vm9, %v2378_v25, %v2377_v55  ;;  %v2364_v25 = vsel %vm2291_vm11, %v2363_v29, %v2362_v18  ;;  %v2758_v29 = vld [vmem:[%s3823_s30 + $0x81] sm:$0xff] }
 0x374   : > { %v5344_v33 = vadd.f32 %v2757_v58, %v2220_v14  ;;  %v2413_v58 = vsel %vm2288_vm9, %v2412_v21, %v2411_v20  ;;  %v2237_v14 = vadd.f32 %v5304_v50, %v2236_v22  ;;  %v2329_v21 = vsel %vm2291_vm11, %v5319_v26, %v2328_v2  ;;  %v2765_v22 = vld [vmem:[%s3823_s30 + $0xd9] sm:$0xff] }
 0x376   : > { %v2293_v8 = vrot.slane %v5344_v33, 5  ;;  %v2365_v2 = vrot.slane %v5344_v33, 1  ;;  %v2330_v10 = vrot.slane %v5344_v33, 7  ;;  %v2399_v31 = vrot.slane %v5344_v33, 3 }
 0x378   : > { %v5367_v7 = vsel %vm2294_vm8, %v2293_v8, %v2292_v41  ;;  %v2488_v41 = vrot.slane %v2266_v47, 2  ;;  %v2380_v8 = vrot.slane %v5319_v26, 3  ;;  %v5426_v47 = vadd.f32 %v2764_v17, %v2237_v14 }
 0x379   : > { %v2221_v20 = vpop.f32.mrf.mxu1 }
 0x37a   : > { %v5409_v55 = vsel %vm2288_vm9, %v2488_v41, %v2487_v60  ;;  %v2397_v60 = vrot.slane %v5319_v26, 4  ;;  %v5446_v13 = vsel %vm2291_vm11, %v2380_v8, %v2379_v4  ;;  %v5450_v26 = vsel %vm2291_vm11, %v2414_v0, %v2413_v58 }
 0x37b   : > { %v2514_v52 = vrot.slane %v5426_v47, 6  ;;  %v2446_v44 = vrot.slane %v5426_v47, 2  ;;  %v2222_v4 = vadd.f32 %v5304_v50, %v2221_v20  ;;  %v2313_v58 = vrot.slane %v5344_v33, 6 }
 0x37c   : > { %v2398_v41 = vsel %vm2291_vm11, %v2397_v60, %v2396_v6  ;;  %vm2303_vm9 = vcmask 1046534   ;;  %v2348_v20 = vsel %vm2294_vm8, %v5344_v33, %v2347_v15  ;;  %v2382_v60 = vrot.slane %v5344_v33, 2 }
 0x37d   : > { %v2366_v0 = vsel %vm2294_vm8, %v2365_v2, %v2364_v25  ;;  %v2314_v6 = vsel %vm2294_vm8, %v2313_v58, %v2312_v38  ;;  %v2400_v35 = vsel %vm2294_vm8, %v2399_v31, %v2398_v41 }
 0x387   : > { %v2239_v63 = vpop.f32.mrf.mxu3 }
 0x388   : > { %v2240_v18 = vadd.f32 %v5304_v50, %v2239_v63  ;;  %v2331_v63 = vsel %vm2294_vm8, %v2330_v10, %v2329_v21 }
 0x38a   : > { %v5459_v14 = vadd.f32 %v2765_v22, %v2240_v18  ;;  %v2224_v17 = vpop.f32.mrf.mxu1  ;;  %v2416_v22 = vrot.slane %v5344_v33, 4  ;;  %v5475_v18 = vadd.f32 %v2758_v29, %v2222_v4 }
 0x38b   : > { %v2225_v45 = vadd.f32 %v5304_v50, %v2224_v17 }
 0x38c   : > { %v2372_v17 = vrot.slane %v5459_v14, 5  ;;  %v2355_v2 = vrot.slane %v5459_v14, 4  ;;  %v2338_v10 = vrot.slane %v5459_v14, 3 }
 0x38d   : > { %v5470_v8 = vadd.f32 %v2759_v53, %v2225_v45  ;;  %v2760_v45 = vld [vmem:[%s3823_s30 + $0x99] sm:$0xff] }
 0x38f   : > { %v2367_v15 = vsel %vm2297_vm12, %v5470_v8, %v2366_v0  ;;  %v2349_v53 = vrot.slane %v5470_v8, 7  ;;  %v2332_v25 = vrot.slane %v5470_v8, 6  ;;  %v2315_v21 = vrot.slane %v5470_v8, 5 }
 0x390   : > { %v2369_v33 = vsel %vm2300_vm14, %v2368_v54, %v2367_v15  ;;  %v2401_v38 = vrot.slane %v5470_v8, 2 }
 0x391   : > { %v2371_v41 = vsel %vm2303_vm9, %v2370_v40, %v2369_v33  ;;  %v2350_v4 = vsel %vm2297_vm12, %v2349_v53, %v2348_v20  ;;  %v2333_v58 = vsel %vm2297_vm12, %v2332_v25, %v2331_v63  ;;  %v2316_v31 = vsel %vm2297_vm12, %v2315_v21, %v2314_v6 }
 0x392   : > { %v2226_v29 = vpop.f32.mrf.mxu1  ;;  %v2373_v0 = vsel %vm2306_vm13, %v2372_v17, %v2371_v41  ;;  %v2352_v54 = vsel %vm2300_vm14, %v2351_v27, %v2350_v4  ;;  %v2335_v15 = vsel %vm2300_vm14, %v2334_v62, %v2333_v58  ;;  %v2384_v40 = vrot.slane %v5470_v8, 1 }
 0x393   : > { %v2227_v20 = vadd.f32 %v5304_v50, %v2226_v29  ;;  %2374 = vrot.lane.b32.xlu0 %v2373_v0, %s3697_s14  ;;  %v2354_v6 = vsel %vm2303_vm9, %v2353_v61, %v2352_v54  ;;  %v2337_v63 = vsel %vm2303_vm9, %v2336_v43, %v2335_v15  ;;  %v2509_v27 = vrot.slane %v5475_v18, 1  ;;  %s5792_s14 = smov 12   ;;  %v2766_v0 = vld [vmem:[%s3823_s30 + $0xe1] sm:$0xff]  ;;  %s5795_s30 = smov 24  }
 0x394   : > { %v2356_v17 = vsel %vm2306_vm13, %v2355_v2, %v2354_v6  ;;  %v2339_v62 = vsel %vm2306_vm13, %v2338_v10, %v2337_v63  ;;  %v2318_v53 = vsel %vm2300_vm14, %v2317_v34, %v2316_v31  ;;  %v2402_v25 = vsel %vm2297_vm12, %v2401_v38, %v2400_v35  ;;  %v2241_v38 = vpop.f32.mrf.mxu3 }
 0x395   : > { %v5519_v21 = vadd.f32 %v2760_v45, %v2227_v20  ;;  %2357 = vrot.lane.b32.xlu2 %v2356_v17, %s5792_s14  ;;  %2340 = vrot.lane.b32.xlu1 %v2339_v62, %s5793_s29  ;;  %v2383_v61 = vsel %vm2294_vm8, %v2382_v60, %v5446_v13  ;;  %v2418_v43 = vrot.slane %v5470_v8, 3  ;;  %v2440_v33 = vrot.slane %v5475_v18, 5  ;;  %s256_s14 = sand.u32 1, %s3668_s22  }
 0x396   : > { %v2404_v2 = vsel %vm2300_vm14, %v2403_v37, %v2402_v25  ;;  %v2385_v34 = vsel %vm2297_vm12, %v2384_v40, %v2383_v61  ;;  %v2463_v35 = vrot.slane %v5426_v47, 3  ;;  %v2497_v10 = vrot.slane %v5426_v47, 5 }
 0x397   : > { %v2320_v41 = vsel %vm2303_vm9, %v2319_v48, %v2318_v53  ;;  %v2386_v13 = vsel %vm2300_vm14, %v5333_v59, %v2385_v34  ;;  %v2508_v37 = vsel %vm2291_vm11, %v2507_v12, %v5393_v56  ;;  %v2439_v60 = vsel %vm2291_vm11, %v2438_v11, %v5403_v57 }
 0x398   : > { %v2321_v4 = vrot.slane %v5459_v14, 2  ;;  %v2417_v58 = vsel %vm2294_vm8, %v2416_v22, %v5450_v26  ;;  %v2510_v31 = vsel %vm2294_vm8, %v2509_v27, %v2508_v37  ;;  %v2442_v48 = vrot.slane %v5519_v21, 4 }
 0x399   : > { %v2405_v29 = vsel %vm2303_vm9, %v5389_v32, %v2404_v2  ;;  %v2388_v45 = vsel %vm2303_vm9, %v2387_v24, %v2386_v13  ;;  %v2419_v56 = vsel %vm2297_vm12, %v2418_v43, %v2417_v58  ;;  %v2441_v57 = vsel %vm2294_vm8, %v2440_v33, %v2439_v60 }
 0x39a   : > { %v2242_v12 = vadd.f32 %v5304_v50, %v2241_v38  ;;  %v2322_v11 = vsel %vm2306_vm13, %v2321_v4, %v2320_v41  ;;  %v2406_v26 = vrot.slane %v5459_v14, 7  ;;  %v2389_v22 = vrot.slane %v5459_v14, 6 }
 0x39b   : > { %2323 = vrot.lane.b32.xlu0 %v2322_v11, %s5794_s12  ;;  %v2511_v54 = vsel %vm2297_vm12, %v5519_v21, %v2510_v31  ;;  %v2443_v24 = vsel %vm2297_vm12, %v2442_v48, %v2441_v57  ;;  %v2455_v15 = vrot.slane %v5431_v49, 7  ;;  %v2490_v40 = vrot.slane %v5431_v49, 1  ;;  %s2692_s12 = sshll.u32 %s256_s14, 3 }
 0x39c   : > { %v2407_v50 = vsel %vm2306_vm13, %v2406_v26, %v2405_v29  ;;  %v2390_v20 = vsel %vm2306_vm13, %v2389_v22, %v2388_v45  ;;  %v2421_v6 = vsel %vm2300_vm14, %v2420_v42, %v2419_v56  ;;  %v2474_v63 = vrot.slane %v5475_v18, 7 }
 0x39d   : > { %2408 = vrot.lane.b32.xlu2 %v2407_v50, %s5795_s30  ;;  %2391 = vrot.lane.b32.xlu1 %v2390_v20, %s5796_s17  ;;  %v2473_v27 = vsel %vm2291_vm11, %v5431_v49, %v5406_v39  ;;  %v2476_v17 = vrot.slane %v5519_v21, 6  ;;  %v2457_v62 = vrot.slane %v5475_v18, 6  ;;  %v2524_v53 = vrot.slane %v5431_v49, 3 }
 0x39e   : > { %v5581_v25 = vadd.f32 %v2766_v0, %v2242_v12  ;;  %v2513_v42 = vsel %vm2300_vm14, %v2512_v9, %v2511_v54  ;;  %v2445_v61 = vsel %vm2300_vm14, %v2444_v19, %v2443_v24  ;;  %v2558_v43 = vrot.slane %v5431_v49, 5 }
 0x39f   : > { %v2423_v39 = vsel %vm2303_vm9, %v2422_v30, %v2421_v6  ;;  %v2459_v33 = vrot.slane %v5519_v21, 5  ;;  %v2491_v2 = vsel %vm2291_vm11, %v2490_v40, %v5409_v55  ;;  %v2493_v34 = vrot.slane %v5519_v21, 7 }
 0x3a0   : > { %v2475_v38 = vsel %vm2294_vm8, %v2474_v63, %v2473_v27  ;;  %v2456_v9 = vsel %vm2291_vm11, %v2455_v15, %v5396_v16  ;;  %v2492_v19 = vsel %vm2294_vm8, %v5475_v18, %v2491_v2  ;;  %v2541_v41 = vrot.slane %v5431_v49, 4 }
 0x3a1   : > { %v2515_v30 = vsel %vm2303_vm9, %v2514_v52, %v2513_v42  ;;  %v2447_v55 = vsel %vm2303_vm9, %v2446_v44, %v2445_v61  ;;  %v2477_v13 = vsel %vm2297_vm12, %v2476_v17, %v2475_v38  ;;  %v2458_v37 = vsel %vm2294_vm8, %v2457_v62, %v2456_v9 }
 0x3a2   : > { %v2424_v16 = vsel %vm2306_vm13, %v5459_v14, %v2423_v39  ;;  %v2516_v60 = vrot.slane %v5581_v25, 5  ;;  %v2448_v4 = vrot.slane %v5581_v25, 1  ;;  %v2296_v49 = vrot.slane %v5470_v8, 4 }
 0x3a3   : > { %2425 = vrot.lane.b32.xlu0 %v2424_v16, %s5797_s18  ;;  %v2460_v52 = vsel %vm2297_vm12, %v2459_v33, %v2458_v37  ;;  %v2494_v58 = vsel %vm2297_vm12, %v2493_v34, %v2492_v19  ;;  %v2525_v44 = vsel %vm2291_vm11, %v2524_v53, %v5414_v28  ;;  %v2526_v31 = vrot.slane %v5475_v18, 2 }
 0x3a4   : > { %v2517_v48 = vsel %vm2306_vm13, %v2516_v60, %v2515_v30  ;;  %v2449_v29 = vsel %vm2306_vm13, %v2448_v4, %v2447_v55  ;;  %v2479_v45 = vsel %vm2300_vm14, %v2478_v3, %v2477_v13  ;;  %v2298_v8 = vsel %vm2297_vm12, %v2296_v49, %v5367_v7 }
 0x3a5   : > { %2518 = vrot.lane.b32.xlu2 %v2517_v48, %s3704_s13  ;;  %2450 = vrot.lane.b32.xlu1 %v2449_v29, %s3701_s19  ;;  %v2528_v56 = vrot.slane %v5519_v21, 1  ;;  %v2560_v28 = vrot.slane %v5475_v18, 4  ;;  %v2305_v57 = vrot.slane %v5459_v14, 1  ;;  %v2301_v12 = vsel %vm2300_vm14, %v2299_v5, %v2298_v8  ;;  %s3707_s19 = smov 36   ;;  %s3708_s13 = smov 44  }
 0x3a6   : > { %v2462_v3 = vsel %vm2300_vm14, %v2461_v46, %v2460_v52  ;;  %v2496_v7 = vsel %vm2300_vm14, %v2495_v1, %v2494_v58  ;;  %v2543_v11 = vrot.slane %v5475_v18, 3  ;;  %v5798_v26 = vrot.slane %v5389_v32, 2 }
 0x3a7   : > { %v5799_v14 = vrot.slane %v5426_v47, 4  ;;  %v2562_v5 = vrot.slane %v5519_v21, 3  ;;  %v2545_v0 = vrot.slane %v5519_v21, 2  ;;  %v2482_v54 = vrot.slane %v5581_v25, 3 }
 0x3a8   : > { %v2304_v22 = vsel %vm2303_vm9, %v5798_v26, %v2301_v12  ;;  %v2527_v1 = vsel %vm2294_vm8, %v2526_v31, %v2525_v44  ;;  %v2559_v18 = vsel %vm2291_vm11, %v2558_v43, %v5417_v23  ;;  %v2542_v32 = vsel %vm2291_vm11, %v2541_v41, %v5420_v36 }
 0x3a9   : > { %v2481_v59 = vsel %vm2303_vm9, %v5799_v14, %v2479_v45  ;;  %v2307_v46 = vsel %vm2306_vm13, %v2305_v57, %v2304_v22  ;;  %v2464_v24 = vsel %vm2303_vm9, %v2463_v35, %v2462_v3  ;;  %v2498_v21 = vsel %vm2303_vm9, %v2497_v10, %v2496_v7 }
 0x3aa   : > { %v2529_v15 = vsel %vm2297_vm12, %v2528_v56, %v2527_v1  ;;  %v2561_v40 = vsel %vm2294_vm8, %v2560_v28, %v2559_v18  ;;  %v2483_v50 = vsel %vm2306_vm13, %v2482_v54, %v2481_v59  ;;  %v2465_v20 = vrot.slane %v5581_v25, 2 }
 0x3ab   : > { %v2499_v23 = vrot.slane %v5581_v25, 4  ;;  %v2544_v36 = vsel %vm2294_vm8, %v2543_v11, %v2542_v32  ;;  %2484 = vrot.lane.b32.xlu0 %v2483_v50, %s3705_s16  ;;  %v2563_v35 = vsel %vm2297_vm12, %v2562_v5, %v2561_v40  ;;  %v2564_v6 = vrot.slane %v5348_v51, 2  ;;  %s3709_s16 = smov 52  }
 0x3ac   : > { %v2546_v10 = vsel %vm2297_vm12, %v2545_v0, %v2544_v36  ;;  %v2466_v63 = vsel %vm2306_vm13, %v2465_v20, %v2464_v24  ;;  %v2530_v17 = vsel %vm2300_vm14, %v5348_v51, %v2529_v15  ;;  %v2547_v62 = vrot.slane %v5348_v51, 1 }
 0x3ad   : > { %v2500_v27 = vsel %vm2306_vm13, %v2499_v23, %v2498_v21  ;;  %2467 = vrot.lane.b32.xlu2 %v2466_v63, %s3707_s19  ;;  %v2531_v53 = vrot.slane %v5426_v47, 7  ;;  %v2565_v42 = vsel %vm2300_vm14, %v2564_v6, %v2563_v35  ;;  %v2566_v39 = vrot.slane %v5426_v47, 1 }
 0x3ae   : > { %2501 = vrot.lane.b32.xlu1 %v2500_v27, %s3708_s13  ;;  %v2548_v61 = vsel %vm2300_vm14, %v2547_v62, %v2546_v10  ;;  %v2533_v33 = vrot.slane %v5581_v25, 6  ;;  %v2550_v38 = vrot.slane %v5581_v25, 7 }
 0x3af   : > { %v2532_v43 = vsel %vm2303_vm9, %v2531_v53, %v2530_v17  ;;  %v2567_v2 = vsel %vm2303_vm9, %v2566_v39, %v2565_v42  ;;  %v2549_v51 = vsel %vm2303_vm9, %v5426_v47, %v2548_v61 }
 0x3b0   : > { %v2534_v34 = vsel %vm2306_vm13, %v2533_v33, %v2532_v43  ;;  %v2568_v9 = vsel %vm2306_vm13, %v5581_v25, %v2567_v2  ;;  %v2551_v19 = vsel %vm2306_vm13, %v2550_v38, %v2549_v51  ;;  %vm5800_vm13 = vcmask 228352  }
 0x3b3   : > { %2535 = vrot.lane.b32.xlu0 %v2534_v34, %s3709_s16  ;;  %s2592_s16 = scalar_lea.sflag [#allocation3], %s256_s14 }
 0x3b5   : > { %2569 = vrot.lane.b32.xlu2 %v2568_v9, %s3710_s20 }
 0x3b6   : > { %2552 = vrot.lane.b32.xlu1 %v2551_v19, %s3703_s9  ;;  %s2768_s9 = sshll.u32 %s3680_s25, 1 }
 0x3b7   : > { %s2602_s29 = sadd.s32 %s3676_s24, %s2768_s9  ;;  %s258_s24 = scalar_lea.vmem [#allocation2], %s2692_s12 }
 0x3b8   : > { %s2769_s30 = sshll.u32 %s2602_s29, 3  ;;  %s2606_s25 = sshll.u32 %s258_s24, 4  ;;  %s2607_s25 = int_to_ptr.vmem [resolvable:$true] %s2606_s25 }
 0x3b9   : > { %s2604_s19 = scalar_lea.hbm %s5758_s6, %s2769_s30  ;;  %s3618_s30 = scalar_lea.hbm %s5758_s6, 32 }
 0x3ba   : > { %s2608_s13 = sshll.u32 %s2604_s19, 4  ;;  %s2609_s13 = int_to_ptr.hbm [resolvable:$true] %s2608_s13 }
 0x3bb   : > { %s3612_s20 = sshra.s32 %s2609_s13, 4  ;;  %s3613_s20 = int_to_ptr.hbm [resolvable:$true] %s3612_s20 }
 0x3bc   : > { %s3614_s9 = scalar_lea.hbm %s3613_s20, 8  ;;  %p3619_p2 = scmp.lt.s32.totalorder %s3613_s20, %s5758_s6 }
 0x3bd   : > { %p3615_p13 = scmp.ne.s32.totalorder %s3613_s20, %s3614_s9  ;;  %p3620_p4 = scmp.lt.s32.totalorder %s3618_s30, %s3614_s9 }
 0x3bf   : > { %p3616_p0 = pnand %p3615_p13, %p3797_p3  ;;  %p3621_p5 = por %p3620_p4, %p3619_p2 }
 0x3c1   : > { %p3617_p1 = pneg %p3616_p0 }
 0x3c3   : > { %p3622_p6 = pnand %p3621_p5, %p3617_p1 }
 0x3ef   : > { %v2358_v41 = vpop.permute.xlu2 %2357 }
 0x3f7   : > { %v2409_v47 = vpop.permute.xlu2 %2408 }
 0x3ff   : > { %v2519_v49 = vpop.permute.xlu2 %2518 }
 0x405   : > { %v2375_v30 = vpop.permute.xlu0 %2374 }
 0x407   : > { %v2341_v55 = vpop.permute.xlu1 %2340  ;;  %v2468_v45 = vpop.permute.xlu2 %2467 }
 0x40d   : > { %v2324_v13 = vpop.permute.xlu0 %2323 }
 0x40e   : > { %v2572_v37 = vsel %vm942_vm2, %v2307_v46, %v2324_v13  ;;  %vm5801_vm2 = vcmask 293888  }
 0x40f   : > { %v2573_v16 = vsel %vm963_vm3, %v2572_v37, %v2341_v55  ;;  %v2392_v60 = vpop.permute.xlu1 %2391  ;;  %vm2582_vm3 = vcmask 359424   ;;  %v2570_v22 = vpop.permute.xlu2 %2569 }
 0x410   : > { %v2574_v25 = vsel %vm984_vm4, %v2573_v16, %v2358_v41  ;;  %vm2585_vm4 = vcmask 424960  }
 0x411   : > { %v2575_v4 = vsel %vm1005_vm5, %v2574_v25, %v2375_v30  ;;  %vm2588_vm5 = vcmask 490496  }
 0x412   : > { %v2576_v52 = vsel %vm1026_vm6, %v2575_v4, %v2392_v60  ;;  %vm5802_vm6 = vcmask 523264  }
 0x413   : > { %v2577_v44 = vsel %vm1047_vm7, %v2576_v52, %v2409_v47 }
 0x415   : > { %v2426_v58 = vpop.permute.xlu0 %2425 }
 0x416   : > { %v2578_v48 = vsel %vm5800_vm13, %v2577_v44, %v2426_v58 }
 0x417   : > { %v2451_v31 = vpop.permute.xlu1 %2450 }
 0x418   : > { %v2579_v29 = vsel %vm1089_vm10, %v2578_v48, %v2451_v31 }
 0x419   : > { %v2580_v56 = vsel %vm5801_vm2, %v2579_v29, %v2468_v45 }
 0x41d   : > { %v2485_v8 = vpop.permute.xlu0 %2484 }
 0x41e   : > { %v2581_v28 = vsel %vm2050_vm0, %v2580_v56, %v2485_v8 }
 0x420   : > { %v2502_v57 = vpop.permute.xlu1 %2501 }
 0x421   : > { %v2583_v12 = vsel %vm2582_vm3, %v2581_v28, %v2502_v57 }
 0x422   : > { %v2584_v7 = vsel %vm2067_vm1, %v2583_v12, %v2519_v49 }
 0x425   : > { %v2536_v3 = vpop.permute.xlu0 %2535 }
 0x426   : > { %v2586_v11 = vsel %vm2585_vm4, %v2584_v7, %v2536_v3 }
 0x428   : > { %v2553_v26 = vpop.permute.xlu1 %2552 }
 0x429   : > { %v2587_v14 = vsel %vm2084_vm15, %v2586_v11, %v2553_v26 }
 0x42a   : > { %v2589_v59 = vsel %vm2588_vm5, %v2587_v14, %v2570_v22 }
 0x42b   : > { %2590 = vst.msk [vmem:[%s258_s24] sm:$0xff] %vm5802_vm6, %v2589_v59 }
 0x42c   : > { %3625 = shalt.err (!%p3622_p6)
}
 0x42d   : > { %2787 = dma.vmem_to_hbm [thread:$0]  (%p3797_p3), %s2607_s25, 128, %s2609_s13, %s2592_s16  }
 0x42e PF: > { %p2793_p7 = scmp.ge.s32.totalorder %s3692_s28, 2  ;;  %s2620_s14 = sand.u32 1, %s3664_s21  }
 0x42f   : > { %s2621_s19 = scalar_lea.sflag [#allocation3], %s2620_s14 }
 0x430   : > { %p2790_p9 = pnand %p2793_p7, %p3806_p8 }
 0x432   : > { %p2791_p10 = pneg %p2790_p9 }
 0x434   : > { %3659 = dma.done.wait (%p2791_p10), %s2621_s19, 128  }
 0x435   : > { %3661 = vsyncadd (%p2791_p10), %s2621_s19, 4294967168  ;;  %s19_s28 = sadd.s32 1, %s3692_s28   ;;  %s5803_s21 = smov %s3668_s22 }
 0x436   : > { %p16_p11 = scmp.ge.s32.totalorder %s19_s28, 6   ;;  %s5804_s22 = smov %s3672_s23 }
 0x437   : > { %s5805_s23 = smov %s3815_s15  ;;  %s5806_s24 = smov %s3684_s26 }
 0x438   : > { %s5807_s25 = smov %s3688_s27  ;;  %s5808_s26 = smov %s5811_s7 }
 0x439   : > { %s5809_s27 = smov %s5815_s8  ;;  %18 = sbr.rel (!%p16_p11) target bundleno = 5 (0x5), region = 81 }
 0x43e   :  { %2627 = vsyncpa [#allocation3], 1 }
 0x43f   :  { %2629 = vsyncpa [#allocation3 + $0x1], 1 }

</bundles_post_ra>
